<compile_context>
chip_gen: v7x
topology: tpu7x:2x2x1
jax: 0.10.0
libtpu: 0.0.40
codegen_flags: <defaults>
</compile_context>

<pallas_src>
import math
from functools import partial

import jax
import jax.numpy as jnp
from jax import lax
from jax.experimental import pallas as pl
from jax.experimental.pallas import tpu as pltpu


def _encoding_augment_kernel(x_ref, wd_ref, pmat_ref, bconv_ref, wproj_ref,
                             bproj_ref, o_ref, xpad_ref,
                             *, F, S, K, PAD, BT, CPG):
    """One grid step: BT batch rows, full sequence.

    x_ref    : (BT, S, F)             transposed input tile (seq=sublanes, feat=lanes)
    wd_ref   : (CPG, K, 1, F)         wd[d,k,0,c] = W[sigma_d(c), c % CPG, k]
    pmat_ref : (max(CPG-1,1), F, F)   within-group routing permutations (d = 1..CPG-1)
    bconv_ref: (1, F)                 grouped-conv bias
    wproj_ref: (3F, F)                1x1 projection weight with LN gamma folded in
    bproj_ref: (3F, 1)                projection bias with LN beta folded in
    o_ref    : (1, 3F, BT*S)          lane-dense output block
    xpad_ref : (BT, S + 2*PAD, F)     VMEM scratch holding the zero-padded tile
    """
    xin = x_ref[...].astype(jnp.float32)                     # (BT, S, F)

    # Zero-pad the sequence axis into VMEM scratch (pad never hits HBM).
    zpad = jnp.zeros((BT, PAD, F), jnp.float32)
    xpad_ref[:, :PAD, :] = zpad
    xpad_ref[:, PAD:PAD + S, :] = xin
    xpad_ref[:, PAD + S:, :] = zpad

    # Grouped Conv1d: for each within-group offset d, accumulate K VPU FMAs
    # over sublane-shifted windows, then route the partial sums to their
    # output channels with one small permutation matmul (identity for d == 0).
    conv = jnp.zeros((BT * S, F), jnp.float32)
    for d in range(CPG):                                     # static -> unrolled
        acc = jnp.zeros((BT, S, F), jnp.float32)
        for k in range(K):                                   # static -> unrolled
            acc = acc + xpad_ref[:, k:k + S, :] * wd_ref[d, k]
        acc2d = acc.reshape(BT * S, F)
        if d == 0:
            conv = conv + acc2d
        else:
            conv = conv + jnp.dot(acc2d, pmat_ref[d - 1],
                                  preferred_element_type=jnp.float32)
    conv = conv + bconv_ref[...]                             # (1, F) broadcast

    # Exact GELU (erf form -- nn.GELU() default), then residual add.
    pos = 0.5 * conv * (1.0 + lax.erf(conv * (1.0 / math.sqrt(2.0))))
    y = xin.reshape(BT * S, F) + pos

    # LayerNorm over features, single pass (affine folded into the projection).
    mu = jnp.mean(y, axis=-1, keepdims=True)
    ms = jnp.mean(y * y, axis=-1, keepdims=True)
    var = ms - mu * mu
    yn = (y - mu) * lax.rsqrt(var + 1e-5)
    # Dropout is identity in eval mode.

    # 1x1 Conv1d (F -> 3F). Contract the feature axis of both operands so the
    # result lands directly as (3F, BT*S): a lane-dense, unmasked store.
    out = lax.dot_general(wproj_ref[...], yn, (((1,), (1,)), ((), ())),
                          preferred_element_type=jnp.float32)
    out = out + bproj_ref[...]                               # (3F, 1) broadcast
    o_ref[0] = out.astype(o_ref.dtype)


def _pick_batch_tile(B, S):
    """Smallest divisor BT of B with BT*S a multiple of 128 (lane-dense store);
    falls back to the largest modest divisor otherwise. Keeps >=2 grid steps
    when possible (v7x megacore) and tiles well under VMEM limits."""
    best = 1
    for bt in range(1, B + 1):
        if B % bt:
            continue
        if bt * S > 2048:
            break
        best = bt
        if (bt * S) % 128 == 0:
            return bt
    return best


def encoding_augment_forward(x, params, *, position_encoder=25, groups=16):
    B, F, S = x.shape
    assert F % groups == 0, "in_features must be divisible by groups"
    K = position_encoder
    PAD = K // 2
    CPG = F // groups
    TD = 3 * F

    BT = _pick_batch_tile(B, S)
    NB = B // BT

    # ---- layout plumbing (wrapper side): features onto lanes ---------------
    x_t = jnp.transpose(x, (0, 2, 1))                        # (B, S, F)

    # ---- fold LayerNorm affine into the 1x1 projection ---------------------
    gamma = params["gamma"].reshape(F).astype(jnp.float32)
    beta = params["beta"].reshape(F).astype(jnp.float32)
    wproj = params["wproj"].reshape(TD, F).astype(jnp.float32)
    bproj = params["bproj"].reshape(TD).astype(jnp.float32)
    wproj_f = wproj * gamma[None, :]
    bproj_f = (bproj + wproj @ beta).reshape(TD, 1)

    # ---- reorganize grouped conv weight; keep block-diagonal structure -----
    # wg[o, j, k] is the PyTorch grouped layout (out_ch, in_ch_per_group, K).
    wg = params["wconv"].astype(jnp.float32)                 # (F, CPG, K)
    c = jnp.arange(F)
    gstart = (c // CPG) * CPG
    pos_in_grp = c % CPG
    wd_list, pmat_list = [], []
    for d in range(CPG):
        sigma_d = gstart + (pos_in_grp + d) % CPG            # out channel fed by input c
        wd = wg[sigma_d, pos_in_grp, :]                      # (F, K): wd[c, k]
        wd_list.append(wd.T.reshape(K, 1, F))
        if d > 0:
            pmat_list.append(jnp.zeros((F, F), jnp.float32).at[c, sigma_d].set(1.0))
    wd_all = jnp.stack(wd_list, axis=0)                      # (CPG, K, 1, F)
    pmats = (jnp.stack(pmat_list, axis=0) if CPG > 1
             else jnp.eye(F, dtype=jnp.float32)[None])       # dummy when CPG == 1
    bconv = params["bconv"].reshape(1, F).astype(jnp.float32)

    kernel = partial(_encoding_augment_kernel,
                     F=F, S=S, K=K, PAD=PAD, BT=BT, CPG=CPG)
    out = pl.pallas_call(
        kernel,
        out_shape=jax.ShapeDtypeStruct((NB, TD, BT * S), x.dtype),
        grid_spec=pltpu.PrefetchScalarGridSpec(
            num_scalar_prefetch=0,
            grid=(NB,),
            in_specs=[
                pl.BlockSpec((BT, S, F), lambda i: (i, 0, 0)),            # x (transposed)
                pl.BlockSpec((CPG, K, 1, F), lambda i: (0, 0, 0, 0)),     # conv weights
                pl.BlockSpec((pmats.shape[0], F, F), lambda i: (0, 0, 0)),
                pl.BlockSpec((1, F), lambda i: (0, 0)),                   # conv bias
                pl.BlockSpec((TD, F), lambda i: (0, 0)),                  # folded proj W
                pl.BlockSpec((TD, 1), lambda i: (0, 0)),                  # folded proj b
            ],
            out_specs=pl.BlockSpec((1, TD, BT * S), lambda i: (i, 0, 0)),
            scratch_shapes=[pltpu.VMEM((BT, S + 2 * PAD, F), jnp.float32)],
        ),
        compiler_params=pltpu.CompilerParams(
            dimension_semantics=("parallel",)),
    )(x_t, wd_all, pmats, bconv, wproj_f, bproj_f)

    # (NB, 3F, BT*S) -> (B, 3F, S): pure layout plumbing.
    return out.reshape(NB, TD, BT, S).transpose(0, 2, 1, 3).reshape(B, TD, S)


def init_params(key, in_features=32, position_encoder=25, groups=16):
    """Deterministic synthetic init matching the module's __init__ shapes."""
    F = in_features
    K = position_encoder
    TD = 3 * F
    cpg = F // groups
    k1, k2, k3 = jax.random.split(key, 3)

    # Grouped conv weight v: (F, F//groups, K), init N(0, 2/transformer_dim).
    v = (2.0 / TD) * jax.random.normal(k1, (F, cpg, K), jnp.float32)
    # weight_norm_mh with dim=2: g has shape (1,1,K); norm over dims (0,1); w == v at init.
    norm = jnp.sqrt(jnp.sum(v * v, axis=(0, 1), keepdims=True))
    wconv = norm * v / (norm + 1e-12)                        # (F, cpg, K) grouped layout

    bconv = jnp.zeros((F,), jnp.float32)                     # nn.init.constant_(bias, 0)
    gamma = jnp.ones((F,), jnp.float32)                      # LayerNorm defaults
    beta = jnp.zeros((F,), jnp.float32)
    wproj = (1.0 / math.sqrt(F)) * jax.random.normal(k2, (TD, F), jnp.float32)
    bproj = (1.0 / math.sqrt(F)) * jax.random.normal(k3, (TD,), jnp.float32)
    return dict(wconv=wconv, bconv=bconv, gamma=gamma, beta=beta,
                wproj=wproj, bproj=bproj)


def reference(x, params, position_encoder=25, groups=16):
    """Pure-JAX reference of the same forward pass (independent of the kernel's
    weight reorganization: uses lax.conv with feature_group_count directly)."""
    B, F, S = x.shape
    K = position_encoder
    PAD = K // 2
    conv = lax.conv_general_dilated(
        x.astype(jnp.float32), params["wconv"], window_strides=(1,),
        padding=[(PAD, PAD)], dimension_numbers=("NCH", "OIH", "NCH"),
        feature_group_count=groups)
    conv = conv + params["bconv"].reshape(1, F, 1)
    pos = 0.5 * conv * (1.0 + lax.erf(conv / math.sqrt(2.0)))
    y = x + pos
    mu = jnp.mean(y, axis=1, keepdims=True)
    var = jnp.mean((y - mu) ** 2, axis=1, keepdims=True)
    yn = (y - mu) / jnp.sqrt(var + 1e-5)
    yn = yn * params["gamma"].reshape(1, F, 1) + params["beta"].reshape(1, F, 1)
    out = jnp.einsum("of,bfs->bos", params["wproj"], yn) + params["bproj"].reshape(1, -1, 1)
    return out


if __name__ == "__main__":
    B, F, S = 8, 32, 64          # in_features=32 (divisible by groups=16)
    POS_ENC = 25

    key = jax.random.PRNGKey(0)
    kx, kp = jax.random.split(key)
    x = jax.random.normal(kx, (B, F, S), jnp.float32)
    params = init_params(kp, in_features=F, position_encoder=POS_ENC, groups=16)

    out = encoding_augment_forward(x, params, position_encoder=POS_ENC)
    out = jax.block_until_ready(out)
    assert out.shape == (B, 3 * F, S), out.shape

    ref = jax.block_until_ready(reference(x, params, position_encoder=POS_ENC))
    assert jnp.allclose(out, ref, atol=1e-3, rtol=1e-3), "mismatch vs JAX reference"

    print("KERNEL_OK")
</pallas_src>

<mosaic_0001>
module attributes {stable_mosaic.version = 11 : i64} {
  func.func @_encoding_augment_kernel(%arg0: i32, %arg1: memref<2x64x32xf32, #tpu.memory_space<vmem>>, %arg2: memref<2x25x1x32xf32, #tpu.memory_space<vmem>>, %arg3: memref<1x32x32xf32, #tpu.memory_space<vmem>>, %arg4: memref<1x32xf32, #tpu.memory_space<vmem>>, %arg5: memref<96x32xf32, #tpu.memory_space<vmem>>, %arg6: memref<96x1xf32, #tpu.memory_space<vmem>>, %arg7: memref<1x96x128xf32, #tpu.memory_space<vmem>>, %arg8: memref<2x88x32xf32, #tpu.memory_space<vmem>>) attributes {dimension_semantics = [#tpu.dimension_semantics<parallel>], iteration_bounds = array<i64: 4>, scalar_prefetch = 0 : i64, scratch_operands = 1 : i64, tpu.core_type = #tpu.core_type<tc>, window_params = [{transform_indices = @transform_0, window_bounds = array<i64: 2, 64, 32>}, {pipeline_mode = #tpu.pipeline_mode<synchronous>, transform_indices = @transform_1, window_bounds = array<i64: 2, 25, 1, 32>}, {pipeline_mode = #tpu.pipeline_mode<synchronous>, transform_indices = @transform_2, window_bounds = array<i64: 1, 32, 32>}, {pipeline_mode = #tpu.pipeline_mode<synchronous>, transform_indices = @transform_3, window_bounds = array<i64: 1, 32>}, {pipeline_mode = #tpu.pipeline_mode<synchronous>, transform_indices = @transform_4, window_bounds = array<i64: 96, 32>}, {pipeline_mode = #tpu.pipeline_mode<synchronous>, transform_indices = @transform_5, window_bounds = array<i64: 96, 1>}, {transform_indices = @transform_6, window_bounds = array<i64: 1, 96, 128>}]} {
    %c0 = arith.constant 0 : index
    %c0_0 = arith.constant 0 : index
    %c0_1 = arith.constant 0 : index
    %0 = vector.load %arg1[%c0, %c0_0, %c0_1] : memref<2x64x32xf32, #tpu.memory_space<vmem>>, vector<2x64x32xf32>
    %cst = arith.constant 0.000000e+00 : f32
    %1 = vector.broadcast %cst : f32 to vector<2x12x32xf32>
    %c0_2 = arith.constant 0 : index
    %c0_3 = arith.constant 0 : index
    %c0_4 = arith.constant 0 : index
    %2 = vector.load %arg8[%c0_2, %c0_3, %c0_4] : memref<2x88x32xf32, #tpu.memory_space<vmem>>, vector<2x12x32xf32>
    tpu.vector_store %arg8[%c0_2, %c0_3, %c0_4], %1 {strides = array<i32>} : memref<2x88x32xf32, #tpu.memory_space<vmem>>, vector<2x12x32xf32>,
    %c0_5 = arith.constant 0 : index
    %c12 = arith.constant 12 : index
    %c0_6 = arith.constant 0 : index
    %3 = vector.load %arg8[%c0_5, %c12, %c0_6] : memref<2x88x32xf32, #tpu.memory_space<vmem>>, vector<2x64x32xf32>
    tpu.vector_store %arg8[%c0_5, %c12, %c0_6], %0 {strides = array<i32>} : memref<2x88x32xf32, #tpu.memory_space<vmem>>, vector<2x64x32xf32>,
    %c0_7 = arith.constant 0 : index
    %c76 = arith.constant 76 : index
    %c0_8 = arith.constant 0 : index
    %4 = vector.load %arg8[%c0_7, %c76, %c0_8] : memref<2x88x32xf32, #tpu.memory_space<vmem>>, vector<2x12x32xf32>
    tpu.vector_store %arg8[%c0_7, %c76, %c0_8], %1 {strides = array<i32>} : memref<2x88x32xf32, #tpu.memory_space<vmem>>, vector<2x12x32xf32>,
    %cst_9 = arith.constant 0.000000e+00 : f32
    %5 = vector.broadcast %cst_9 : f32 to vector<128x32xf32>
    %cst_10 = arith.constant 0.000000e+00 : f32
    %6 = vector.broadcast %cst_10 : f32 to vector<2x64x32xf32>
    %c0_11 = arith.constant 0 : index
    %c0_12 = arith.constant 0 : index
    %c0_13 = arith.constant 0 : index
    %7 = vector.load %arg8[%c0_11, %c0_12, %c0_13] : memref<2x88x32xf32, #tpu.memory_space<vmem>>, vector<2x64x32xf32>
    %c0_14 = arith.constant 0 : index
    %c0_15 = arith.constant 0 : index
    %c0_16 = arith.constant 0 : index
    %c0_17 = arith.constant 0 : index
    %8 = vector.load %arg2[%c0_14, %c0_15, %c0_16, %c0_17] : memref<2x25x1x32xf32, #tpu.memory_space<vmem>>, vector<1x1x1x32xf32>
    %9 = vector.shape_cast %8 : vector<1x1x1x32xf32> to vector<1x32xf32>
    %10 = vector.shape_cast %9 : vector<1x32xf32> to vector<1x1x32xf32>
    %11 = vector.broadcast %10 : vector<1x1x32xf32> to vector<2x64x32xf32>
    %12 = arith.mulf %7, %11 : vector<2x64x32xf32>
    %13 = arith.addf %6, %12 : vector<2x64x32xf32>
    %c0_18 = arith.constant 0 : index
    %c1 = arith.constant 1 : index
    %c0_19 = arith.constant 0 : index
    %14 = vector.load %arg8[%c0_18, %c1, %c0_19] : memref<2x88x32xf32, #tpu.memory_space<vmem>>, vector<2x64x32xf32>
    %c0_20 = arith.constant 0 : index
    %c1_21 = arith.constant 1 : index
    %c0_22 = arith.constant 0 : index
    %c0_23 = arith.constant 0 : index
    %15 = vector.load %arg2[%c0_20, %c1_21, %c0_22, %c0_23] : memref<2x25x1x32xf32, #tpu.memory_space<vmem>>, vector<1x1x1x32xf32>
    %16 = vector.shape_cast %15 : vector<1x1x1x32xf32> to vector<1x32xf32>
    %17 = vector.shape_cast %16 : vector<1x32xf32> to vector<1x1x32xf32>
    %18 = vector.broadcast %17 : vector<1x1x32xf32> to vector<2x64x32xf32>
    %19 = arith.mulf %14, %18 : vector<2x64x32xf32>
    %20 = arith.addf %13, %19 : vector<2x64x32xf32>
    %c0_24 = arith.constant 0 : index
    %c2 = arith.constant 2 : index
    %c0_25 = arith.constant 0 : index
    %21 = vector.load %arg8[%c0_24, %c2, %c0_25] : memref<2x88x32xf32, #tpu.memory_space<vmem>>, vector<2x64x32xf32>
    %c0_26 = arith.constant 0 : index
    %c2_27 = arith.constant 2 : index
    %c0_28 = arith.constant 0 : index
    %c0_29 = arith.constant 0 : index
    %22 = vector.load %arg2[%c0_26, %c2_27, %c0_28, %c0_29] : memref<2x25x1x32xf32, #tpu.memory_space<vmem>>, vector<1x1x1x32xf32>
    %23 = vector.shape_cast %22 : vector<1x1x1x32xf32> to vector<1x32xf32>
    %24 = vector.shape_cast %23 : vector<1x32xf32> to vector<1x1x32xf32>
    %25 = vector.broadcast %24 : vector<1x1x32xf32> to vector<2x64x32xf32>
    %26 = arith.mulf %21, %25 : vector<2x64x32xf32>
    %27 = arith.addf %20, %26 : vector<2x64x32xf32>
    %c0_30 = arith.constant 0 : index
    %c3 = arith.constant 3 : index
    %c0_31 = arith.constant 0 : index
    %28 = vector.load %arg8[%c0_30, %c3, %c0_31] : memref<2x88x32xf32, #tpu.memory_space<vmem>>, vector<2x64x32xf32>
    %c0_32 = arith.constant 0 : index
    %c3_33 = arith.constant 3 : index
    %c0_34 = arith.constant 0 : index
    %c0_35 = arith.constant 0 : index
    %29 = vector.load %arg2[%c0_32, %c3_33, %c0_34, %c0_35] : memref<2x25x1x32xf32, #tpu.memory_space<vmem>>, vector<1x1x1x32xf32>
    %30 = vector.shape_cast %29 : vector<1x1x1x32xf32> to vector<1x32xf32>
    %31 = vector.shape_cast %30 : vector<1x32xf32> to vector<1x1x32xf32>
    %32 = vector.broadcast %31 : vector<1x1x32xf32> to vector<2x64x32xf32>
    %33 = arith.mulf %28, %32 : vector<2x64x32xf32>
    %34 = arith.addf %27, %33 : vector<2x64x32xf32>
    %c0_36 = arith.constant 0 : index
    %c4 = arith.constant 4 : index
    %c0_37 = arith.constant 0 : index
    %35 = vector.load %arg8[%c0_36, %c4, %c0_37] : memref<2x88x32xf32, #tpu.memory_space<vmem>>, vector<2x64x32xf32>
    %c0_38 = arith.constant 0 : index
    %c4_39 = arith.constant 4 : index
    %c0_40 = arith.constant 0 : index
    %c0_41 = arith.constant 0 : index
    %36 = vector.load %arg2[%c0_38, %c4_39, %c0_40, %c0_41] : memref<2x25x1x32xf32, #tpu.memory_space<vmem>>, vector<1x1x1x32xf32>
    %37 = vector.shape_cast %36 : vector<1x1x1x32xf32> to vector<1x32xf32>
    %38 = vector.shape_cast %37 : vector<1x32xf32> to vector<1x1x32xf32>
    %39 = vector.broadcast %38 : vector<1x1x32xf32> to vector<2x64x32xf32>
    %40 = arith.mulf %35, %39 : vector<2x64x32xf32>
    %41 = arith.addf %34, %40 : vector<2x64x32xf32>
    %c0_42 = arith.constant 0 : index
    %c5 = arith.constant 5 : index
    %c0_43 = arith.constant 0 : index
    %42 = vector.load %arg8[%c0_42, %c5, %c0_43] : memref<2x88x32xf32, #tpu.memory_space<vmem>>, vector<2x64x32xf32>
    %c0_44 = arith.constant 0 : index
    %c5_45 = arith.constant 5 : index
    %c0_46 = arith.constant 0 : index
    %c0_47 = arith.constant 0 : index
    %43 = vector.load %arg2[%c0_44, %c5_45, %c0_46, %c0_47] : memref<2x25x1x32xf32, #tpu.memory_space<vmem>>, vector<1x1x1x32xf32>
    %44 = vector.shape_cast %43 : vector<1x1x1x32xf32> to vector<1x32xf32>
    %45 = vector.shape_cast %44 : vector<1x32xf32> to vector<1x1x32xf32>
    %46 = vector.broadcast %45 : vector<1x1x32xf32> to vector<2x64x32xf32>
    %47 = arith.mulf %42, %46 : vector<2x64x32xf32>
    %48 = arith.addf %41, %47 : vector<2x64x32xf32>
    %c0_48 = arith.constant 0 : index
    %c6 = arith.constant 6 : index
    %c0_49 = arith.constant 0 : index
    %49 = vector.load %arg8[%c0_48, %c6, %c0_49] : memref<2x88x32xf32, #tpu.memory_space<vmem>>, vector<2x64x32xf32>
    %c0_50 = arith.constant 0 : index
    %c6_51 = arith.constant 6 : index
    %c0_52 = arith.constant 0 : index
    %c0_53 = arith.constant 0 : index
    %50 = vector.load %arg2[%c0_50, %c6_51, %c0_52, %c0_53] : memref<2x25x1x32xf32, #tpu.memory_space<vmem>>, vector<1x1x1x32xf32>
    %51 = vector.shape_cast %50 : vector<1x1x1x32xf32> to vector<1x32xf32>
    %52 = vector.shape_cast %51 : vector<1x32xf32> to vector<1x1x32xf32>
    %53 = vector.broadcast %52 : vector<1x1x32xf32> to vector<2x64x32xf32>
    %54 = arith.mulf %49, %53 : vector<2x64x32xf32>
    %55 = arith.addf %48, %54 : vector<2x64x32xf32>
    %c0_54 = arith.constant 0 : index
    %c7 = arith.constant 7 : index
    %c0_55 = arith.constant 0 : index
    %56 = vector.load %arg8[%c0_54, %c7, %c0_55] : memref<2x88x32xf32, #tpu.memory_space<vmem>>, vector<2x64x32xf32>
    %c0_56 = arith.constant 0 : index
    %c7_57 = arith.constant 7 : index
    %c0_58 = arith.constant 0 : index
    %c0_59 = arith.constant 0 : index
    %57 = vector.load %arg2[%c0_56, %c7_57, %c0_58, %c0_59] : memref<2x25x1x32xf32, #tpu.memory_space<vmem>>, vector<1x1x1x32xf32>
    %58 = vector.shape_cast %57 : vector<1x1x1x32xf32> to vector<1x32xf32>
    %59 = vector.shape_cast %58 : vector<1x32xf32> to vector<1x1x32xf32>
    %60 = vector.broadcast %59 : vector<1x1x32xf32> to vector<2x64x32xf32>
    %61 = arith.mulf %56, %60 : vector<2x64x32xf32>
    %62 = arith.addf %55, %61 : vector<2x64x32xf32>
    %c0_60 = arith.constant 0 : index
    %c8 = arith.constant 8 : index
    %c0_61 = arith.constant 0 : index
    %63 = vector.load %arg8[%c0_60, %c8, %c0_61] : memref<2x88x32xf32, #tpu.memory_space<vmem>>, vector<2x64x32xf32>
    %c0_62 = arith.constant 0 : index
    %c8_63 = arith.constant 8 : index
    %c0_64 = arith.constant 0 : index
    %c0_65 = arith.constant 0 : index
    %64 = vector.load %arg2[%c0_62, %c8_63, %c0_64, %c0_65] : memref<2x25x1x32xf32, #tpu.memory_space<vmem>>, vector<1x1x1x32xf32>
    %65 = vector.shape_cast %64 : vector<1x1x1x32xf32> to vector<1x32xf32>
    %66 = vector.shape_cast %65 : vector<1x32xf32> to vector<1x1x32xf32>
    %67 = vector.broadcast %66 : vector<1x1x32xf32> to vector<2x64x32xf32>
    %68 = arith.mulf %63, %67 : vector<2x64x32xf32>
    %69 = arith.addf %62, %68 : vector<2x64x32xf32>
    %c0_66 = arith.constant 0 : index
    %c9 = arith.constant 9 : index
    %c0_67 = arith.constant 0 : index
    %70 = vector.load %arg8[%c0_66, %c9, %c0_67] : memref<2x88x32xf32, #tpu.memory_space<vmem>>, vector<2x64x32xf32>
    %c0_68 = arith.constant 0 : index
    %c9_69 = arith.constant 9 : index
    %c0_70 = arith.constant 0 : index
    %c0_71 = arith.constant 0 : index
    %71 = vector.load %arg2[%c0_68, %c9_69, %c0_70, %c0_71] : memref<2x25x1x32xf32, #tpu.memory_space<vmem>>, vector<1x1x1x32xf32>
    %72 = vector.shape_cast %71 : vector<1x1x1x32xf32> to vector<1x32xf32>
    %73 = vector.shape_cast %72 : vector<1x32xf32> to vector<1x1x32xf32>
    %74 = vector.broadcast %73 : vector<1x1x32xf32> to vector<2x64x32xf32>
    %75 = arith.mulf %70, %74 : vector<2x64x32xf32>
    %76 = arith.addf %69, %75 : vector<2x64x32xf32>
    %c0_72 = arith.constant 0 : index
    %c10 = arith.constant 10 : index
    %c0_73 = arith.constant 0 : index
    %77 = vector.load %arg8[%c0_72, %c10, %c0_73] : memref<2x88x32xf32, #tpu.memory_space<vmem>>, vector<2x64x32xf32>
    %c0_74 = arith.constant 0 : index
    %c10_75 = arith.constant 10 : index
    %c0_76 = arith.constant 0 : index
    %c0_77 = arith.constant 0 : index
    %78 = vector.load %arg2[%c0_74, %c10_75, %c0_76, %c0_77] : memref<2x25x1x32xf32, #tpu.memory_space<vmem>>, vector<1x1x1x32xf32>
    %79 = vector.shape_cast %78 : vector<1x1x1x32xf32> to vector<1x32xf32>
    %80 = vector.shape_cast %79 : vector<1x32xf32> to vector<1x1x32xf32>
    %81 = vector.broadcast %80 : vector<1x1x32xf32> to vector<2x64x32xf32>
    %82 = arith.mulf %77, %81 : vector<2x64x32xf32>
    %83 = arith.addf %76, %82 : vector<2x64x32xf32>
    %c0_78 = arith.constant 0 : index
    %c11 = arith.constant 11 : index
    %c0_79 = arith.constant 0 : index
    %84 = vector.load %arg8[%c0_78, %c11, %c0_79] : memref<2x88x32xf32, #tpu.memory_space<vmem>>, vector<2x64x32xf32>
    %c0_80 = arith.constant 0 : index
    %c11_81 = arith.constant 11 : index
    %c0_82 = arith.constant 0 : index
    %c0_83 = arith.constant 0 : index
    %85 = vector.load %arg2[%c0_80, %c11_81, %c0_82, %c0_83] : memref<2x25x1x32xf32, #tpu.memory_space<vmem>>, vector<1x1x1x32xf32>
    %86 = vector.shape_cast %85 : vector<1x1x1x32xf32> to vector<1x32xf32>
    %87 = vector.shape_cast %86 : vector<1x32xf32> to vector<1x1x32xf32>
    %88 = vector.broadcast %87 : vector<1x1x32xf32> to vector<2x64x32xf32>
    %89 = arith.mulf %84, %88 : vector<2x64x32xf32>
    %90 = arith.addf %83, %89 : vector<2x64x32xf32>
    %c0_84 = arith.constant 0 : index
    %c12_85 = arith.constant 12 : index
    %c0_86 = arith.constant 0 : index
    %91 = vector.load %arg8[%c0_84, %c12_85, %c0_86] : memref<2x88x32xf32, #tpu.memory_space<vmem>>, vector<2x64x32xf32>
    %c0_87 = arith.constant 0 : index
    %c12_88 = arith.constant 12 : index
    %c0_89 = arith.constant 0 : index
    %c0_90 = arith.constant 0 : index
    %92 = vector.load %arg2[%c0_87, %c12_88, %c0_89, %c0_90] : memref<2x25x1x32xf32, #tpu.memory_space<vmem>>, vector<1x1x1x32xf32>
    %93 = vector.shape_cast %92 : vector<1x1x1x32xf32> to vector<1x32xf32>
    %94 = vector.shape_cast %93 : vector<1x32xf32> to vector<1x1x32xf32>
    %95 = vector.broadcast %94 : vector<1x1x32xf32> to vector<2x64x32xf32>
    %96 = arith.mulf %91, %95 : vector<2x64x32xf32>
    %97 = arith.addf %90, %96 : vector<2x64x32xf32>
    %c0_91 = arith.constant 0 : index
    %c13 = arith.constant 13 : index
    %c0_92 = arith.constant 0 : index
    %98 = vector.load %arg8[%c0_91, %c13, %c0_92] : memref<2x88x32xf32, #tpu.memory_space<vmem>>, vector<2x64x32xf32>
    %c0_93 = arith.constant 0 : index
    %c13_94 = arith.constant 13 : index
    %c0_95 = arith.constant 0 : index
    %c0_96 = arith.constant 0 : index
    %99 = vector.load %arg2[%c0_93, %c13_94, %c0_95, %c0_96] : memref<2x25x1x32xf32, #tpu.memory_space<vmem>>, vector<1x1x1x32xf32>
    %100 = vector.shape_cast %99 : vector<1x1x1x32xf32> to vector<1x32xf32>
    %101 = vector.shape_cast %100 : vector<1x32xf32> to vector<1x1x32xf32>
    %102 = vector.broadcast %101 : vector<1x1x32xf32> to vector<2x64x32xf32>
    %103 = arith.mulf %98, %102 : vector<2x64x32xf32>
    %104 = arith.addf %97, %103 : vector<2x64x32xf32>
    %c0_97 = arith.constant 0 : index
    %c14 = arith.constant 14 : index
    %c0_98 = arith.constant 0 : index
    %105 = vector.load %arg8[%c0_97, %c14, %c0_98] : memref<2x88x32xf32, #tpu.memory_space<vmem>>, vector<2x64x32xf32>
    %c0_99 = arith.constant 0 : index
    %c14_100 = arith.constant 14 : index
    %c0_101 = arith.constant 0 : index
    %c0_102 = arith.constant 0 : index
    %106 = vector.load %arg2[%c0_99, %c14_100, %c0_101, %c0_102] : memref<2x25x1x32xf32, #tpu.memory_space<vmem>>, vector<1x1x1x32xf32>
    %107 = vector.shape_cast %106 : vector<1x1x1x32xf32> to vector<1x32xf32>
    %108 = vector.shape_cast %107 : vector<1x32xf32> to vector<1x1x32xf32>
    %109 = vector.broadcast %108 : vector<1x1x32xf32> to vector<2x64x32xf32>
    %110 = arith.mulf %105, %109 : vector<2x64x32xf32>
    %111 = arith.addf %104, %110 : vector<2x64x32xf32>
    %c0_103 = arith.constant 0 : index
    %c15 = arith.constant 15 : index
    %c0_104 = arith.constant 0 : index
    %112 = vector.load %arg8[%c0_103, %c15, %c0_104] : memref<2x88x32xf32, #tpu.memory_space<vmem>>, vector<2x64x32xf32>
    %c0_105 = arith.constant 0 : index
    %c15_106 = arith.constant 15 : index
    %c0_107 = arith.constant 0 : index
    %c0_108 = arith.constant 0 : index
    %113 = vector.load %arg2[%c0_105, %c15_106, %c0_107, %c0_108] : memref<2x25x1x32xf32, #tpu.memory_space<vmem>>, vector<1x1x1x32xf32>
    %114 = vector.shape_cast %113 : vector<1x1x1x32xf32> to vector<1x32xf32>
    %115 = vector.shape_cast %114 : vector<1x32xf32> to vector<1x1x32xf32>
    %116 = vector.broadcast %115 : vector<1x1x32xf32> to vector<2x64x32xf32>
    %117 = arith.mulf %112, %116 : vector<2x64x32xf32>
    %118 = arith.addf %111, %117 : vector<2x64x32xf32>
    %c0_109 = arith.constant 0 : index
    %c16 = arith.constant 16 : index
    %c0_110 = arith.constant 0 : index
    %119 = vector.load %arg8[%c0_109, %c16, %c0_110] : memref<2x88x32xf32, #tpu.memory_space<vmem>>, vector<2x64x32xf32>
    %c0_111 = arith.constant 0 : index
    %c16_112 = arith.constant 16 : index
    %c0_113 = arith.constant 0 : index
    %c0_114 = arith.constant 0 : index
    %120 = vector.load %arg2[%c0_111, %c16_112, %c0_113, %c0_114] : memref<2x25x1x32xf32, #tpu.memory_space<vmem>>, vector<1x1x1x32xf32>
    %121 = vector.shape_cast %120 : vector<1x1x1x32xf32> to vector<1x32xf32>
    %122 = vector.shape_cast %121 : vector<1x32xf32> to vector<1x1x32xf32>
    %123 = vector.broadcast %122 : vector<1x1x32xf32> to vector<2x64x32xf32>
    %124 = arith.mulf %119, %123 : vector<2x64x32xf32>
    %125 = arith.addf %118, %124 : vector<2x64x32xf32>
    %c0_115 = arith.constant 0 : index
    %c17 = arith.constant 17 : index
    %c0_116 = arith.constant 0 : index
    %126 = vector.load %arg8[%c0_115, %c17, %c0_116] : memref<2x88x32xf32, #tpu.memory_space<vmem>>, vector<2x64x32xf32>
    %c0_117 = arith.constant 0 : index
    %c17_118 = arith.constant 17 : index
    %c0_119 = arith.constant 0 : index
    %c0_120 = arith.constant 0 : index
    %127 = vector.load %arg2[%c0_117, %c17_118, %c0_119, %c0_120] : memref<2x25x1x32xf32, #tpu.memory_space<vmem>>, vector<1x1x1x32xf32>
    %128 = vector.shape_cast %127 : vector<1x1x1x32xf32> to vector<1x32xf32>
    %129 = vector.shape_cast %128 : vector<1x32xf32> to vector<1x1x32xf32>
    %130 = vector.broadcast %129 : vector<1x1x32xf32> to vector<2x64x32xf32>
    %131 = arith.mulf %126, %130 : vector<2x64x32xf32>
    %132 = arith.addf %125, %131 : vector<2x64x32xf32>
    %c0_121 = arith.constant 0 : index
    %c18 = arith.constant 18 : index
    %c0_122 = arith.constant 0 : index
    %133 = vector.load %arg8[%c0_121, %c18, %c0_122] : memref<2x88x32xf32, #tpu.memory_space<vmem>>, vector<2x64x32xf32>
    %c0_123 = arith.constant 0 : index
    %c18_124 = arith.constant 18 : index
    %c0_125 = arith.constant 0 : index
    %c0_126 = arith.constant 0 : index
    %134 = vector.load %arg2[%c0_123, %c18_124, %c0_125, %c0_126] : memref<2x25x1x32xf32, #tpu.memory_space<vmem>>, vector<1x1x1x32xf32>
    %135 = vector.shape_cast %134 : vector<1x1x1x32xf32> to vector<1x32xf32>
    %136 = vector.shape_cast %135 : vector<1x32xf32> to vector<1x1x32xf32>
    %137 = vector.broadcast %136 : vector<1x1x32xf32> to vector<2x64x32xf32>
    %138 = arith.mulf %133, %137 : vector<2x64x32xf32>
    %139 = arith.addf %132, %138 : vector<2x64x32xf32>
    %c0_127 = arith.constant 0 : index
    %c19 = arith.constant 19 : index
    %c0_128 = arith.constant 0 : index
    %140 = vector.load %arg8[%c0_127, %c19, %c0_128] : memref<2x88x32xf32, #tpu.memory_space<vmem>>, vector<2x64x32xf32>
    %c0_129 = arith.constant 0 : index
    %c19_130 = arith.constant 19 : index
    %c0_131 = arith.constant 0 : index
    %c0_132 = arith.constant 0 : index
    %141 = vector.load %arg2[%c0_129, %c19_130, %c0_131, %c0_132] : memref<2x25x1x32xf32, #tpu.memory_space<vmem>>, vector<1x1x1x32xf32>
    %142 = vector.shape_cast %141 : vector<1x1x1x32xf32> to vector<1x32xf32>
    %143 = vector.shape_cast %142 : vector<1x32xf32> to vector<1x1x32xf32>
    %144 = vector.broadcast %143 : vector<1x1x32xf32> to vector<2x64x32xf32>
    %145 = arith.mulf %140, %144 : vector<2x64x32xf32>
    %146 = arith.addf %139, %145 : vector<2x64x32xf32>
    %c0_133 = arith.constant 0 : index
    %c20 = arith.constant 20 : index
    %c0_134 = arith.constant 0 : index
    %147 = vector.load %arg8[%c0_133, %c20, %c0_134] : memref<2x88x32xf32, #tpu.memory_space<vmem>>, vector<2x64x32xf32>
    %c0_135 = arith.constant 0 : index
    %c20_136 = arith.constant 20 : index
    %c0_137 = arith.constant 0 : index
    %c0_138 = arith.constant 0 : index
    %148 = vector.load %arg2[%c0_135, %c20_136, %c0_137, %c0_138] : memref<2x25x1x32xf32, #tpu.memory_space<vmem>>, vector<1x1x1x32xf32>
    %149 = vector.shape_cast %148 : vector<1x1x1x32xf32> to vector<1x32xf32>
    %150 = vector.shape_cast %149 : vector<1x32xf32> to vector<1x1x32xf32>
    %151 = vector.broadcast %150 : vector<1x1x32xf32> to vector<2x64x32xf32>
    %152 = arith.mulf %147, %151 : vector<2x64x32xf32>
    %153 = arith.addf %146, %152 : vector<2x64x32xf32>
    %c0_139 = arith.constant 0 : index
    %c21 = arith.constant 21 : index
    %c0_140 = arith.constant 0 : index
    %154 = vector.load %arg8[%c0_139, %c21, %c0_140] : memref<2x88x32xf32, #tpu.memory_space<vmem>>, vector<2x64x32xf32>
    %c0_141 = arith.constant 0 : index
    %c21_142 = arith.constant 21 : index
    %c0_143 = arith.constant 0 : index
    %c0_144 = arith.constant 0 : index
    %155 = vector.load %arg2[%c0_141, %c21_142, %c0_143, %c0_144] : memref<2x25x1x32xf32, #tpu.memory_space<vmem>>, vector<1x1x1x32xf32>
    %156 = vector.shape_cast %155 : vector<1x1x1x32xf32> to vector<1x32xf32>
    %157 = vector.shape_cast %156 : vector<1x32xf32> to vector<1x1x32xf32>
    %158 = vector.broadcast %157 : vector<1x1x32xf32> to vector<2x64x32xf32>
    %159 = arith.mulf %154, %158 : vector<2x64x32xf32>
    %160 = arith.addf %153, %159 : vector<2x64x32xf32>
    %c0_145 = arith.constant 0 : index
    %c22 = arith.constant 22 : index
    %c0_146 = arith.constant 0 : index
    %161 = vector.load %arg8[%c0_145, %c22, %c0_146] : memref<2x88x32xf32, #tpu.memory_space<vmem>>, vector<2x64x32xf32>
    %c0_147 = arith.constant 0 : index
    %c22_148 = arith.constant 22 : index
    %c0_149 = arith.constant 0 : index
    %c0_150 = arith.constant 0 : index
    %162 = vector.load %arg2[%c0_147, %c22_148, %c0_149, %c0_150] : memref<2x25x1x32xf32, #tpu.memory_space<vmem>>, vector<1x1x1x32xf32>
    %163 = vector.shape_cast %162 : vector<1x1x1x32xf32> to vector<1x32xf32>
    %164 = vector.shape_cast %163 : vector<1x32xf32> to vector<1x1x32xf32>
    %165 = vector.broadcast %164 : vector<1x1x32xf32> to vector<2x64x32xf32>
    %166 = arith.mulf %161, %165 : vector<2x64x32xf32>
    %167 = arith.addf %160, %166 : vector<2x64x32xf32>
    %c0_151 = arith.constant 0 : index
    %c23 = arith.constant 23 : index
    %c0_152 = arith.constant 0 : index
    %168 = vector.load %arg8[%c0_151, %c23, %c0_152] : memref<2x88x32xf32, #tpu.memory_space<vmem>>, vector<2x64x32xf32>
    %c0_153 = arith.constant 0 : index
    %c23_154 = arith.constant 23 : index
    %c0_155 = arith.constant 0 : index
    %c0_156 = arith.constant 0 : index
    %169 = vector.load %arg2[%c0_153, %c23_154, %c0_155, %c0_156] : memref<2x25x1x32xf32, #tpu.memory_space<vmem>>, vector<1x1x1x32xf32>
    %170 = vector.shape_cast %169 : vector<1x1x1x32xf32> to vector<1x32xf32>
    %171 = vector.shape_cast %170 : vector<1x32xf32> to vector<1x1x32xf32>
    %172 = vector.broadcast %171 : vector<1x1x32xf32> to vector<2x64x32xf32>
    %173 = arith.mulf %168, %172 : vector<2x64x32xf32>
    %174 = arith.addf %167, %173 : vector<2x64x32xf32>
    %c0_157 = arith.constant 0 : index
    %c24 = arith.constant 24 : index
    %c0_158 = arith.constant 0 : index
    %175 = vector.load %arg8[%c0_157, %c24, %c0_158] : memref<2x88x32xf32, #tpu.memory_space<vmem>>, vector<2x64x32xf32>
    %c0_159 = arith.constant 0 : index
    %c24_160 = arith.constant 24 : index
    %c0_161 = arith.constant 0 : index
    %c0_162 = arith.constant 0 : index
    %176 = vector.load %arg2[%c0_159, %c24_160, %c0_161, %c0_162] : memref<2x25x1x32xf32, #tpu.memory_space<vmem>>, vector<1x1x1x32xf32>
    %177 = vector.shape_cast %176 : vector<1x1x1x32xf32> to vector<1x32xf32>
    %178 = vector.shape_cast %177 : vector<1x32xf32> to vector<1x1x32xf32>
    %179 = vector.broadcast %178 : vector<1x1x32xf32> to vector<2x64x32xf32>
    %180 = arith.mulf %175, %179 : vector<2x64x32xf32>
    %181 = arith.addf %174, %180 : vector<2x64x32xf32>
    %182 = vector.shape_cast %181 : vector<2x64x32xf32> to vector<128x32xf32>
    %183 = arith.addf %5, %182 : vector<128x32xf32>
    %cst_163 = arith.constant 0.000000e+00 : f32
    %184 = vector.broadcast %cst_163 : f32 to vector<2x64x32xf32>
    %c0_164 = arith.constant 0 : index
    %c0_165 = arith.constant 0 : index
    %c0_166 = arith.constant 0 : index
    %185 = vector.load %arg8[%c0_164, %c0_165, %c0_166] : memref<2x88x32xf32, #tpu.memory_space<vmem>>, vector<2x64x32xf32>
    %c1_167 = arith.constant 1 : index
    %c0_168 = arith.constant 0 : index
    %c0_169 = arith.constant 0 : index
    %c0_170 = arith.constant 0 : index
    %186 = vector.load %arg2[%c1_167, %c0_168, %c0_169, %c0_170] : memref<2x25x1x32xf32, #tpu.memory_space<vmem>>, vector<1x1x1x32xf32>
    %187 = vector.shape_cast %186 : vector<1x1x1x32xf32> to vector<1x32xf32>
    %188 = vector.shape_cast %187 : vector<1x32xf32> to vector<1x1x32xf32>
    %189 = vector.broadcast %188 : vector<1x1x32xf32> to vector<2x64x32xf32>
    %190 = arith.mulf %185, %189 : vector<2x64x32xf32>
    %191 = arith.addf %184, %190 : vector<2x64x32xf32>
    %c0_171 = arith.constant 0 : index
    %c1_172 = arith.constant 1 : index
    %c0_173 = arith.constant 0 : index
    %192 = vector.load %arg8[%c0_171, %c1_172, %c0_173] : memref<2x88x32xf32, #tpu.memory_space<vmem>>, vector<2x64x32xf32>
    %c1_174 = arith.constant 1 : index
    %c1_175 = arith.constant 1 : index
    %c0_176 = arith.constant 0 : index
    %c0_177 = arith.constant 0 : index
    %193 = vector.load %arg2[%c1_174, %c1_175, %c0_176, %c0_177] : memref<2x25x1x32xf32, #tpu.memory_space<vmem>>, vector<1x1x1x32xf32>
    %194 = vector.shape_cast %193 : vector<1x1x1x32xf32> to vector<1x32xf32>
    %195 = vector.shape_cast %194 : vector<1x32xf32> to vector<1x1x32xf32>
    %196 = vector.broadcast %195 : vector<1x1x32xf32> to vector<2x64x32xf32>
    %197 = arith.mulf %192, %196 : vector<2x64x32xf32>
    %198 = arith.addf %191, %197 : vector<2x64x32xf32>
    %c0_178 = arith.constant 0 : index
    %c2_179 = arith.constant 2 : index
    %c0_180 = arith.constant 0 : index
    %199 = vector.load %arg8[%c0_178, %c2_179, %c0_180] : memref<2x88x32xf32, #tpu.memory_space<vmem>>, vector<2x64x32xf32>
    %c1_181 = arith.constant 1 : index
    %c2_182 = arith.constant 2 : index
    %c0_183 = arith.constant 0 : index
    %c0_184 = arith.constant 0 : index
    %200 = vector.load %arg2[%c1_181, %c2_182, %c0_183, %c0_184] : memref<2x25x1x32xf32, #tpu.memory_space<vmem>>, vector<1x1x1x32xf32>
    %201 = vector.shape_cast %200 : vector<1x1x1x32xf32> to vector<1x32xf32>
    %202 = vector.shape_cast %201 : vector<1x32xf32> to vector<1x1x32xf32>
    %203 = vector.broadcast %202 : vector<1x1x32xf32> to vector<2x64x32xf32>
    %204 = arith.mulf %199, %203 : vector<2x64x32xf32>
    %205 = arith.addf %198, %204 : vector<2x64x32xf32>
    %c0_185 = arith.constant 0 : index
    %c3_186 = arith.constant 3 : index
    %c0_187 = arith.constant 0 : index
    %206 = vector.load %arg8[%c0_185, %c3_186, %c0_187] : memref<2x88x32xf32, #tpu.memory_space<vmem>>, vector<2x64x32xf32>
    %c1_188 = arith.constant 1 : index
    %c3_189 = arith.constant 3 : index
    %c0_190 = arith.constant 0 : index
    %c0_191 = arith.constant 0 : index
    %207 = vector.load %arg2[%c1_188, %c3_189, %c0_190, %c0_191] : memref<2x25x1x32xf32, #tpu.memory_space<vmem>>, vector<1x1x1x32xf32>
    %208 = vector.shape_cast %207 : vector<1x1x1x32xf32> to vector<1x32xf32>
    %209 = vector.shape_cast %208 : vector<1x32xf32> to vector<1x1x32xf32>
    %210 = vector.broadcast %209 : vector<1x1x32xf32> to vector<2x64x32xf32>
    %211 = arith.mulf %206, %210 : vector<2x64x32xf32>
    %212 = arith.addf %205, %211 : vector<2x64x32xf32>
    %c0_192 = arith.constant 0 : index
    %c4_193 = arith.constant 4 : index
    %c0_194 = arith.constant 0 : index
    %213 = vector.load %arg8[%c0_192, %c4_193, %c0_194] : memref<2x88x32xf32, #tpu.memory_space<vmem>>, vector<2x64x32xf32>
    %c1_195 = arith.constant 1 : index
    %c4_196 = arith.constant 4 : index
    %c0_197 = arith.constant 0 : index
    %c0_198 = arith.constant 0 : index
    %214 = vector.load %arg2[%c1_195, %c4_196, %c0_197, %c0_198] : memref<2x25x1x32xf32, #tpu.memory_space<vmem>>, vector<1x1x1x32xf32>
    %215 = vector.shape_cast %214 : vector<1x1x1x32xf32> to vector<1x32xf32>
    %216 = vector.shape_cast %215 : vector<1x32xf32> to vector<1x1x32xf32>
    %217 = vector.broadcast %216 : vector<1x1x32xf32> to vector<2x64x32xf32>
    %218 = arith.mulf %213, %217 : vector<2x64x32xf32>
    %219 = arith.addf %212, %218 : vector<2x64x32xf32>
    %c0_199 = arith.constant 0 : index
    %c5_200 = arith.constant 5 : index
    %c0_201 = arith.constant 0 : index
    %220 = vector.load %arg8[%c0_199, %c5_200, %c0_201] : memref<2x88x32xf32, #tpu.memory_space<vmem>>, vector<2x64x32xf32>
    %c1_202 = arith.constant 1 : index
    %c5_203 = arith.constant 5 : index
    %c0_204 = arith.constant 0 : index
    %c0_205 = arith.constant 0 : index
    %221 = vector.load %arg2[%c1_202, %c5_203, %c0_204, %c0_205] : memref<2x25x1x32xf32, #tpu.memory_space<vmem>>, vector<1x1x1x32xf32>
    %222 = vector.shape_cast %221 : vector<1x1x1x32xf32> to vector<1x32xf32>
    %223 = vector.shape_cast %222 : vector<1x32xf32> to vector<1x1x32xf32>
    %224 = vector.broadcast %223 : vector<1x1x32xf32> to vector<2x64x32xf32>
    %225 = arith.mulf %220, %224 : vector<2x64x32xf32>
    %226 = arith.addf %219, %225 : vector<2x64x32xf32>
    %c0_206 = arith.constant 0 : index
    %c6_207 = arith.constant 6 : index
    %c0_208 = arith.constant 0 : index
    %227 = vector.load %arg8[%c0_206, %c6_207, %c0_208] : memref<2x88x32xf32, #tpu.memory_space<vmem>>, vector<2x64x32xf32>
    %c1_209 = arith.constant 1 : index
    %c6_210 = arith.constant 6 : index
    %c0_211 = arith.constant 0 : index
    %c0_212 = arith.constant 0 : index
    %228 = vector.load %arg2[%c1_209, %c6_210, %c0_211, %c0_212] : memref<2x25x1x32xf32, #tpu.memory_space<vmem>>, vector<1x1x1x32xf32>
    %229 = vector.shape_cast %228 : vector<1x1x1x32xf32> to vector<1x32xf32>
    %230 = vector.shape_cast %229 : vector<1x32xf32> to vector<1x1x32xf32>
    %231 = vector.broadcast %230 : vector<1x1x32xf32> to vector<2x64x32xf32>
    %232 = arith.mulf %227, %231 : vector<2x64x32xf32>
    %233 = arith.addf %226, %232 : vector<2x64x32xf32>
    %c0_213 = arith.constant 0 : index
    %c7_214 = arith.constant 7 : index
    %c0_215 = arith.constant 0 : index
    %234 = vector.load %arg8[%c0_213, %c7_214, %c0_215] : memref<2x88x32xf32, #tpu.memory_space<vmem>>, vector<2x64x32xf32>
    %c1_216 = arith.constant 1 : index
    %c7_217 = arith.constant 7 : index
    %c0_218 = arith.constant 0 : index
    %c0_219 = arith.constant 0 : index
    %235 = vector.load %arg2[%c1_216, %c7_217, %c0_218, %c0_219] : memref<2x25x1x32xf32, #tpu.memory_space<vmem>>, vector<1x1x1x32xf32>
    %236 = vector.shape_cast %235 : vector<1x1x1x32xf32> to vector<1x32xf32>
    %237 = vector.shape_cast %236 : vector<1x32xf32> to vector<1x1x32xf32>
    %238 = vector.broadcast %237 : vector<1x1x32xf32> to vector<2x64x32xf32>
    %239 = arith.mulf %234, %238 : vector<2x64x32xf32>
    %240 = arith.addf %233, %239 : vector<2x64x32xf32>
    %c0_220 = arith.constant 0 : index
    %c8_221 = arith.constant 8 : index
    %c0_222 = arith.constant 0 : index
    %241 = vector.load %arg8[%c0_220, %c8_221, %c0_222] : memref<2x88x32xf32, #tpu.memory_space<vmem>>, vector<2x64x32xf32>
    %c1_223 = arith.constant 1 : index
    %c8_224 = arith.constant 8 : index
    %c0_225 = arith.constant 0 : index
    %c0_226 = arith.constant 0 : index
    %242 = vector.load %arg2[%c1_223, %c8_224, %c0_225, %c0_226] : memref<2x25x1x32xf32, #tpu.memory_space<vmem>>, vector<1x1x1x32xf32>
    %243 = vector.shape_cast %242 : vector<1x1x1x32xf32> to vector<1x32xf32>
    %244 = vector.shape_cast %243 : vector<1x32xf32> to vector<1x1x32xf32>
    %245 = vector.broadcast %244 : vector<1x1x32xf32> to vector<2x64x32xf32>
    %246 = arith.mulf %241, %245 : vector<2x64x32xf32>
    %247 = arith.addf %240, %246 : vector<2x64x32xf32>
    %c0_227 = arith.constant 0 : index
    %c9_228 = arith.constant 9 : index
    %c0_229 = arith.constant 0 : index
    %248 = vector.load %arg8[%c0_227, %c9_228, %c0_229] : memref<2x88x32xf32, #tpu.memory_space<vmem>>, vector<2x64x32xf32>
    %c1_230 = arith.constant 1 : index
    %c9_231 = arith.constant 9 : index
    %c0_232 = arith.constant 0 : index
    %c0_233 = arith.constant 0 : index
    %249 = vector.load %arg2[%c1_230, %c9_231, %c0_232, %c0_233] : memref<2x25x1x32xf32, #tpu.memory_space<vmem>>, vector<1x1x1x32xf32>
    %250 = vector.shape_cast %249 : vector<1x1x1x32xf32> to vector<1x32xf32>
    %251 = vector.shape_cast %250 : vector<1x32xf32> to vector<1x1x32xf32>
    %252 = vector.broadcast %251 : vector<1x1x32xf32> to vector<2x64x32xf32>
    %253 = arith.mulf %248, %252 : vector<2x64x32xf32>
    %254 = arith.addf %247, %253 : vector<2x64x32xf32>
    %c0_234 = arith.constant 0 : index
    %c10_235 = arith.constant 10 : index
    %c0_236 = arith.constant 0 : index
    %255 = vector.load %arg8[%c0_234, %c10_235, %c0_236] : memref<2x88x32xf32, #tpu.memory_space<vmem>>, vector<2x64x32xf32>
    %c1_237 = arith.constant 1 : index
    %c10_238 = arith.constant 10 : index
    %c0_239 = arith.constant 0 : index
    %c0_240 = arith.constant 0 : index
    %256 = vector.load %arg2[%c1_237, %c10_238, %c0_239, %c0_240] : memref<2x25x1x32xf32, #tpu.memory_space<vmem>>, vector<1x1x1x32xf32>
    %257 = vector.shape_cast %256 : vector<1x1x1x32xf32> to vector<1x32xf32>
    %258 = vector.shape_cast %257 : vector<1x32xf32> to vector<1x1x32xf32>
    %259 = vector.broadcast %258 : vector<1x1x32xf32> to vector<2x64x32xf32>
    %260 = arith.mulf %255, %259 : vector<2x64x32xf32>
    %261 = arith.addf %254, %260 : vector<2x64x32xf32>
    %c0_241 = arith.constant 0 : index
    %c11_242 = arith.constant 11 : index
    %c0_243 = arith.constant 0 : index
    %262 = vector.load %arg8[%c0_241, %c11_242, %c0_243] : memref<2x88x32xf32, #tpu.memory_space<vmem>>, vector<2x64x32xf32>
    %c1_244 = arith.constant 1 : index
    %c11_245 = arith.constant 11 : index
    %c0_246 = arith.constant 0 : index
    %c0_247 = arith.constant 0 : index
    %263 = vector.load %arg2[%c1_244, %c11_245, %c0_246, %c0_247] : memref<2x25x1x32xf32, #tpu.memory_space<vmem>>, vector<1x1x1x32xf32>
    %264 = vector.shape_cast %263 : vector<1x1x1x32xf32> to vector<1x32xf32>
    %265 = vector.shape_cast %264 : vector<1x32xf32> to vector<1x1x32xf32>
    %266 = vector.broadcast %265 : vector<1x1x32xf32> to vector<2x64x32xf32>
    %267 = arith.mulf %262, %266 : vector<2x64x32xf32>
    %268 = arith.addf %261, %267 : vector<2x64x32xf32>
    %c0_248 = arith.constant 0 : index
    %c12_249 = arith.constant 12 : index
    %c0_250 = arith.constant 0 : index
    %269 = vector.load %arg8[%c0_248, %c12_249, %c0_250] : memref<2x88x32xf32, #tpu.memory_space<vmem>>, vector<2x64x32xf32>
    %c1_251 = arith.constant 1 : index
    %c12_252 = arith.constant 12 : index
    %c0_253 = arith.constant 0 : index
    %c0_254 = arith.constant 0 : index
    %270 = vector.load %arg2[%c1_251, %c12_252, %c0_253, %c0_254] : memref<2x25x1x32xf32, #tpu.memory_space<vmem>>, vector<1x1x1x32xf32>
    %271 = vector.shape_cast %270 : vector<1x1x1x32xf32> to vector<1x32xf32>
    %272 = vector.shape_cast %271 : vector<1x32xf32> to vector<1x1x32xf32>
    %273 = vector.broadcast %272 : vector<1x1x32xf32> to vector<2x64x32xf32>
    %274 = arith.mulf %269, %273 : vector<2x64x32xf32>
    %275 = arith.addf %268, %274 : vector<2x64x32xf32>
    %c0_255 = arith.constant 0 : index
    %c13_256 = arith.constant 13 : index
    %c0_257 = arith.constant 0 : index
    %276 = vector.load %arg8[%c0_255, %c13_256, %c0_257] : memref<2x88x32xf32, #tpu.memory_space<vmem>>, vector<2x64x32xf32>
    %c1_258 = arith.constant 1 : index
    %c13_259 = arith.constant 13 : index
    %c0_260 = arith.constant 0 : index
    %c0_261 = arith.constant 0 : index
    %277 = vector.load %arg2[%c1_258, %c13_259, %c0_260, %c0_261] : memref<2x25x1x32xf32, #tpu.memory_space<vmem>>, vector<1x1x1x32xf32>
    %278 = vector.shape_cast %277 : vector<1x1x1x32xf32> to vector<1x32xf32>
    %279 = vector.shape_cast %278 : vector<1x32xf32> to vector<1x1x32xf32>
    %280 = vector.broadcast %279 : vector<1x1x32xf32> to vector<2x64x32xf32>
    %281 = arith.mulf %276, %280 : vector<2x64x32xf32>
    %282 = arith.addf %275, %281 : vector<2x64x32xf32>
    %c0_262 = arith.constant 0 : index
    %c14_263 = arith.constant 14 : index
    %c0_264 = arith.constant 0 : index
    %283 = vector.load %arg8[%c0_262, %c14_263, %c0_264] : memref<2x88x32xf32, #tpu.memory_space<vmem>>, vector<2x64x32xf32>
    %c1_265 = arith.constant 1 : index
    %c14_266 = arith.constant 14 : index
    %c0_267 = arith.constant 0 : index
    %c0_268 = arith.constant 0 : index
    %284 = vector.load %arg2[%c1_265, %c14_266, %c0_267, %c0_268] : memref<2x25x1x32xf32, #tpu.memory_space<vmem>>, vector<1x1x1x32xf32>
    %285 = vector.shape_cast %284 : vector<1x1x1x32xf32> to vector<1x32xf32>
    %286 = vector.shape_cast %285 : vector<1x32xf32> to vector<1x1x32xf32>
    %287 = vector.broadcast %286 : vector<1x1x32xf32> to vector<2x64x32xf32>
    %288 = arith.mulf %283, %287 : vector<2x64x32xf32>
    %289 = arith.addf %282, %288 : vector<2x64x32xf32>
    %c0_269 = arith.constant 0 : index
    %c15_270 = arith.constant 15 : index
    %c0_271 = arith.constant 0 : index
    %290 = vector.load %arg8[%c0_269, %c15_270, %c0_271] : memref<2x88x32xf32, #tpu.memory_space<vmem>>, vector<2x64x32xf32>
    %c1_272 = arith.constant 1 : index
    %c15_273 = arith.constant 15 : index
    %c0_274 = arith.constant 0 : index
    %c0_275 = arith.constant 0 : index
    %291 = vector.load %arg2[%c1_272, %c15_273, %c0_274, %c0_275] : memref<2x25x1x32xf32, #tpu.memory_space<vmem>>, vector<1x1x1x32xf32>
    %292 = vector.shape_cast %291 : vector<1x1x1x32xf32> to vector<1x32xf32>
    %293 = vector.shape_cast %292 : vector<1x32xf32> to vector<1x1x32xf32>
    %294 = vector.broadcast %293 : vector<1x1x32xf32> to vector<2x64x32xf32>
    %295 = arith.mulf %290, %294 : vector<2x64x32xf32>
    %296 = arith.addf %289, %295 : vector<2x64x32xf32>
    %c0_276 = arith.constant 0 : index
    %c16_277 = arith.constant 16 : index
    %c0_278 = arith.constant 0 : index
    %297 = vector.load %arg8[%c0_276, %c16_277, %c0_278] : memref<2x88x32xf32, #tpu.memory_space<vmem>>, vector<2x64x32xf32>
    %c1_279 = arith.constant 1 : index
    %c16_280 = arith.constant 16 : index
    %c0_281 = arith.constant 0 : index
    %c0_282 = arith.constant 0 : index
    %298 = vector.load %arg2[%c1_279, %c16_280, %c0_281, %c0_282] : memref<2x25x1x32xf32, #tpu.memory_space<vmem>>, vector<1x1x1x32xf32>
    %299 = vector.shape_cast %298 : vector<1x1x1x32xf32> to vector<1x32xf32>
    %300 = vector.shape_cast %299 : vector<1x32xf32> to vector<1x1x32xf32>
    %301 = vector.broadcast %300 : vector<1x1x32xf32> to vector<2x64x32xf32>
    %302 = arith.mulf %297, %301 : vector<2x64x32xf32>
    %303 = arith.addf %296, %302 : vector<2x64x32xf32>
    %c0_283 = arith.constant 0 : index
    %c17_284 = arith.constant 17 : index
    %c0_285 = arith.constant 0 : index
    %304 = vector.load %arg8[%c0_283, %c17_284, %c0_285] : memref<2x88x32xf32, #tpu.memory_space<vmem>>, vector<2x64x32xf32>
    %c1_286 = arith.constant 1 : index
    %c17_287 = arith.constant 17 : index
    %c0_288 = arith.constant 0 : index
    %c0_289 = arith.constant 0 : index
    %305 = vector.load %arg2[%c1_286, %c17_287, %c0_288, %c0_289] : memref<2x25x1x32xf32, #tpu.memory_space<vmem>>, vector<1x1x1x32xf32>
    %306 = vector.shape_cast %305 : vector<1x1x1x32xf32> to vector<1x32xf32>
    %307 = vector.shape_cast %306 : vector<1x32xf32> to vector<1x1x32xf32>
    %308 = vector.broadcast %307 : vector<1x1x32xf32> to vector<2x64x32xf32>
    %309 = arith.mulf %304, %308 : vector<2x64x32xf32>
    %310 = arith.addf %303, %309 : vector<2x64x32xf32>
    %c0_290 = arith.constant 0 : index
    %c18_291 = arith.constant 18 : index
    %c0_292 = arith.constant 0 : index
    %311 = vector.load %arg8[%c0_290, %c18_291, %c0_292] : memref<2x88x32xf32, #tpu.memory_space<vmem>>, vector<2x64x32xf32>
    %c1_293 = arith.constant 1 : index
    %c18_294 = arith.constant 18 : index
    %c0_295 = arith.constant 0 : index
    %c0_296 = arith.constant 0 : index
    %312 = vector.load %arg2[%c1_293, %c18_294, %c0_295, %c0_296] : memref<2x25x1x32xf32, #tpu.memory_space<vmem>>, vector<1x1x1x32xf32>
    %313 = vector.shape_cast %312 : vector<1x1x1x32xf32> to vector<1x32xf32>
    %314 = vector.shape_cast %313 : vector<1x32xf32> to vector<1x1x32xf32>
    %315 = vector.broadcast %314 : vector<1x1x32xf32> to vector<2x64x32xf32>
    %316 = arith.mulf %311, %315 : vector<2x64x32xf32>
    %317 = arith.addf %310, %316 : vector<2x64x32xf32>
    %c0_297 = arith.constant 0 : index
    %c19_298 = arith.constant 19 : index
    %c0_299 = arith.constant 0 : index
    %318 = vector.load %arg8[%c0_297, %c19_298, %c0_299] : memref<2x88x32xf32, #tpu.memory_space<vmem>>, vector<2x64x32xf32>
    %c1_300 = arith.constant 1 : index
    %c19_301 = arith.constant 19 : index
    %c0_302 = arith.constant 0 : index
    %c0_303 = arith.constant 0 : index
    %319 = vector.load %arg2[%c1_300, %c19_301, %c0_302, %c0_303] : memref<2x25x1x32xf32, #tpu.memory_space<vmem>>, vector<1x1x1x32xf32>
    %320 = vector.shape_cast %319 : vector<1x1x1x32xf32> to vector<1x32xf32>
    %321 = vector.shape_cast %320 : vector<1x32xf32> to vector<1x1x32xf32>
    %322 = vector.broadcast %321 : vector<1x1x32xf32> to vector<2x64x32xf32>
    %323 = arith.mulf %318, %322 : vector<2x64x32xf32>
    %324 = arith.addf %317, %323 : vector<2x64x32xf32>
    %c0_304 = arith.constant 0 : index
    %c20_305 = arith.constant 20 : index
    %c0_306 = arith.constant 0 : index
    %325 = vector.load %arg8[%c0_304, %c20_305, %c0_306] : memref<2x88x32xf32, #tpu.memory_space<vmem>>, vector<2x64x32xf32>
    %c1_307 = arith.constant 1 : index
    %c20_308 = arith.constant 20 : index
    %c0_309 = arith.constant 0 : index
    %c0_310 = arith.constant 0 : index
    %326 = vector.load %arg2[%c1_307, %c20_308, %c0_309, %c0_310] : memref<2x25x1x32xf32, #tpu.memory_space<vmem>>, vector<1x1x1x32xf32>
    %327 = vector.shape_cast %326 : vector<1x1x1x32xf32> to vector<1x32xf32>
    %328 = vector.shape_cast %327 : vector<1x32xf32> to vector<1x1x32xf32>
    %329 = vector.broadcast %328 : vector<1x1x32xf32> to vector<2x64x32xf32>
    %330 = arith.mulf %325, %329 : vector<2x64x32xf32>
    %331 = arith.addf %324, %330 : vector<2x64x32xf32>
    %c0_311 = arith.constant 0 : index
    %c21_312 = arith.constant 21 : index
    %c0_313 = arith.constant 0 : index
    %332 = vector.load %arg8[%c0_311, %c21_312, %c0_313] : memref<2x88x32xf32, #tpu.memory_space<vmem>>, vector<2x64x32xf32>
    %c1_314 = arith.constant 1 : index
    %c21_315 = arith.constant 21 : index
    %c0_316 = arith.constant 0 : index
    %c0_317 = arith.constant 0 : index
    %333 = vector.load %arg2[%c1_314, %c21_315, %c0_316, %c0_317] : memref<2x25x1x32xf32, #tpu.memory_space<vmem>>, vector<1x1x1x32xf32>
    %334 = vector.shape_cast %333 : vector<1x1x1x32xf32> to vector<1x32xf32>
    %335 = vector.shape_cast %334 : vector<1x32xf32> to vector<1x1x32xf32>
    %336 = vector.broadcast %335 : vector<1x1x32xf32> to vector<2x64x32xf32>
    %337 = arith.mulf %332, %336 : vector<2x64x32xf32>
    %338 = arith.addf %331, %337 : vector<2x64x32xf32>
    %c0_318 = arith.constant 0 : index
    %c22_319 = arith.constant 22 : index
    %c0_320 = arith.constant 0 : index
    %339 = vector.load %arg8[%c0_318, %c22_319, %c0_320] : memref<2x88x32xf32, #tpu.memory_space<vmem>>, vector<2x64x32xf32>
    %c1_321 = arith.constant 1 : index
    %c22_322 = arith.constant 22 : index
    %c0_323 = arith.constant 0 : index
    %c0_324 = arith.constant 0 : index
    %340 = vector.load %arg2[%c1_321, %c22_322, %c0_323, %c0_324] : memref<2x25x1x32xf32, #tpu.memory_space<vmem>>, vector<1x1x1x32xf32>
    %341 = vector.shape_cast %340 : vector<1x1x1x32xf32> to vector<1x32xf32>
    %342 = vector.shape_cast %341 : vector<1x32xf32> to vector<1x1x32xf32>
    %343 = vector.broadcast %342 : vector<1x1x32xf32> to vector<2x64x32xf32>
    %344 = arith.mulf %339, %343 : vector<2x64x32xf32>
    %345 = arith.addf %338, %344 : vector<2x64x32xf32>
    %c0_325 = arith.constant 0 : index
    %c23_326 = arith.constant 23 : index
    %c0_327 = arith.constant 0 : index
    %346 = vector.load %arg8[%c0_325, %c23_326, %c0_327] : memref<2x88x32xf32, #tpu.memory_space<vmem>>, vector<2x64x32xf32>
    %c1_328 = arith.constant 1 : index
    %c23_329 = arith.constant 23 : index
    %c0_330 = arith.constant 0 : index
    %c0_331 = arith.constant 0 : index
    %347 = vector.load %arg2[%c1_328, %c23_329, %c0_330, %c0_331] : memref<2x25x1x32xf32, #tpu.memory_space<vmem>>, vector<1x1x1x32xf32>
    %348 = vector.shape_cast %347 : vector<1x1x1x32xf32> to vector<1x32xf32>
    %349 = vector.shape_cast %348 : vector<1x32xf32> to vector<1x1x32xf32>
    %350 = vector.broadcast %349 : vector<1x1x32xf32> to vector<2x64x32xf32>
    %351 = arith.mulf %346, %350 : vector<2x64x32xf32>
    %352 = arith.addf %345, %351 : vector<2x64x32xf32>
    %c0_332 = arith.constant 0 : index
    %c24_333 = arith.constant 24 : index
    %c0_334 = arith.constant 0 : index
    %353 = vector.load %arg8[%c0_332, %c24_333, %c0_334] : memref<2x88x32xf32, #tpu.memory_space<vmem>>, vector<2x64x32xf32>
    %c1_335 = arith.constant 1 : index
    %c24_336 = arith.constant 24 : index
    %c0_337 = arith.constant 0 : index
    %c0_338 = arith.constant 0 : index
    %354 = vector.load %arg2[%c1_335, %c24_336, %c0_337, %c0_338] : memref<2x25x1x32xf32, #tpu.memory_space<vmem>>, vector<1x1x1x32xf32>
    %355 = vector.shape_cast %354 : vector<1x1x1x32xf32> to vector<1x32xf32>
    %356 = vector.shape_cast %355 : vector<1x32xf32> to vector<1x1x32xf32>
    %357 = vector.broadcast %356 : vector<1x1x32xf32> to vector<2x64x32xf32>
    %358 = arith.mulf %353, %357 : vector<2x64x32xf32>
    %359 = arith.addf %352, %358 : vector<2x64x32xf32>
    %360 = vector.shape_cast %359 : vector<2x64x32xf32> to vector<128x32xf32>
    %c0_339 = arith.constant 0 : index
    %c0_340 = arith.constant 0 : index
    %c0_341 = arith.constant 0 : index
    %361 = vector.load %arg3[%c0_339, %c0_340, %c0_341] : memref<1x32x32xf32, #tpu.memory_space<vmem>>, vector<1x32x32xf32>
    %362 = vector.shape_cast %361 : vector<1x32x32xf32> to vector<32x32xf32>
    %cst_342 = arith.constant dense<0.000000e+00> : vector<128x32xf32>
    %363 = tpu.matmul %360, %362, %cst_342 {dimension_numbers = #tpu.dot_dimension_numbers<[1], [0], [0], [1], [0, 0, 1, 1], [], []>} : vector<128x32xf32>, vector<32x32xf32>, vector<128x32xf32> -> vector<128x32xf32>
    %364 = arith.addf %183, %363 : vector<128x32xf32>
    %c0_343 = arith.constant 0 : index
    %c0_344 = arith.constant 0 : index
    %365 = vector.load %arg4[%c0_343, %c0_344] : memref<1x32xf32, #tpu.memory_space<vmem>>, vector<1x32xf32>
    %366 = vector.broadcast %365 : vector<1x32xf32> to vector<128x32xf32>
    %367 = arith.addf %364, %366 : vector<128x32xf32>
    %cst_345 = arith.constant 5.000000e-01 : f32
    %368 = vector.broadcast %cst_345 : f32 to vector<128x32xf32>
    %369 = arith.mulf %368, %367 : vector<128x32xf32>
    %cst_346 = arith.constant 0.707106769 : f32
    %370 = vector.broadcast %cst_346 : f32 to vector<128x32xf32>
    %371 = arith.mulf %367, %370 : vector<128x32xf32>
    %372 = math.erf %371 : vector<128x32xf32>
    %cst_347 = arith.constant 1.000000e+00 : f32
    %373 = vector.broadcast %cst_347 : f32 to vector<128x32xf32>
    %374 = arith.addf %373, %372 : vector<128x32xf32>
    %375 = arith.mulf %369, %374 : vector<128x32xf32>
    %376 = vector.shape_cast %0 : vector<2x64x32xf32> to vector<128x32xf32>
    %377 = arith.addf %376, %375 : vector<128x32xf32>
    %cst_348 = arith.constant dense<0.000000e+00> : vector<128xf32>
    %378 = vector.multi_reduction <add>, %377, %cst_348 [1] : vector<128x32xf32> to vector<128xf32>
    %379 = vector.shape_cast %378 : vector<128xf32> to vector<128x1xf32>
    %cst_349 = arith.constant 3.200000e+01 : f32
    %380 = vector.broadcast %cst_349 : f32 to vector<128x1xf32>
    %381 = arith.divf %379, %380 : vector<128x1xf32>
    %382 = arith.mulf %377, %377 : vector<128x32xf32>
    %cst_350 = arith.constant dense<0.000000e+00> : vector<128xf32>
    %383 = vector.multi_reduction <add>, %382, %cst_350 [1] : vector<128x32xf32> to vector<128xf32>
    %384 = vector.shape_cast %383 : vector<128xf32> to vector<128x1xf32>
    %cst_351 = arith.constant 3.200000e+01 : f32
    %385 = vector.broadcast %cst_351 : f32 to vector<128x1xf32>
    %386 = arith.divf %384, %385 : vector<128x1xf32>
    %387 = arith.mulf %381, %381 : vector<128x1xf32>
    %388 = arith.subf %386, %387 : vector<128x1xf32>
    %389 = vector.broadcast %381 : vector<128x1xf32> to vector<128x32xf32>
    %390 = arith.subf %377, %389 : vector<128x32xf32>
    %cst_352 = arith.constant 9.99999974E-6 : f32
    %391 = vector.broadcast %cst_352 : f32 to vector<128x1xf32>
    %392 = arith.addf %388, %391 : vector<128x1xf32>
    %393 = math.rsqrt %392 : vector<128x1xf32>
    %394 = vector.broadcast %393 : vector<128x1xf32> to vector<128x32xf32>
    %395 = arith.mulf %390, %394 : vector<128x32xf32>
    %c0_353 = arith.constant 0 : index
    %c0_354 = arith.constant 0 : index
    %396 = vector.load %arg5[%c0_353, %c0_354] : memref<96x32xf32, #tpu.memory_space<vmem>>, vector<96x32xf32>
    %cst_355 = arith.constant dense<0.000000e+00> : vector<96x128xf32>
    %397 = tpu.matmul %396, %395, %cst_355 {dimension_numbers = #tpu.dot_dimension_numbers<[1], [1], [0], [0], [0, 0, 1, 0], [], []>} : vector<96x32xf32>, vector<128x32xf32>, vector<96x128xf32> -> vector<96x128xf32>
    %c0_356 = arith.constant 0 : index
    %c0_357 = arith.constant 0 : index
    %398 = vector.load %arg6[%c0_356, %c0_357] : memref<96x1xf32, #tpu.memory_space<vmem>>, vector<96x1xf32>
    %399 = vector.broadcast %398 : vector<96x1xf32> to vector<96x128xf32>
    %400 = arith.addf %397, %399 : vector<96x128xf32>
    %c0_358 = arith.constant 0 : index
    %c0_359 = arith.constant 0 : index
    %c0_360 = arith.constant 0 : index
    %401 = vector.load %arg7[%c0_358, %c0_359, %c0_360] : memref<1x96x128xf32, #tpu.memory_space<vmem>>, vector<1x96x128xf32>
    %402 = vector.shape_cast %401 : vector<1x96x128xf32> to vector<96x128xf32>
    %403 = vector.shape_cast %400 : vector<96x128xf32> to vector<1x96x128xf32>
    tpu.vector_store %arg7[%c0_358, %c0_359, %c0_360], %403 {strides = array<i32>} : memref<1x96x128xf32, #tpu.memory_space<vmem>>, vector<1x96x128xf32>,
    return
  }
  func.func @transform_0(%arg0: i32) -> (i32, i32, i32) {
    %c0_i32 = arith.constant 0 : i32
    %c0_i32_0 = arith.constant 0 : i32
    %c0_i32_1 = arith.constant 0 : i32
    return %arg0, %c0_i32, %c0_i32_0 : i32, i32, i32
  }
  func.func @transform_1(%arg0: i32) -> (i32, i32, i32, i32) {
    %c0_i32 = arith.constant 0 : i32
    %c0_i32_0 = arith.constant 0 : i32
    %c0_i32_1 = arith.constant 0 : i32
    %c0_i32_2 = arith.constant 0 : i32
    %c0_i32_3 = arith.constant 0 : i32
    return %c0_i32, %c0_i32_0, %c0_i32_1, %c0_i32_2 : i32, i32, i32, i32
  }
  func.func @transform_2(%arg0: i32) -> (i32, i32, i32) {
    %c0_i32 = arith.constant 0 : i32
    %c0_i32_0 = arith.constant 0 : i32
    %c0_i32_1 = arith.constant 0 : i32
    %c0_i32_2 = arith.constant 0 : i32
    return %c0_i32, %c0_i32_0, %c0_i32_1 : i32, i32, i32
  }
  func.func @transform_3(%arg0: i32) -> (i32, i32) {
    %c0_i32 = arith.constant 0 : i32
    %c0_i32_0 = arith.constant 0 : i32
    %c0_i32_1 = arith.constant 0 : i32
    return %c0_i32, %c0_i32_0 : i32, i32
  }
  func.func @transform_4(%arg0: i32) -> (i32, i32) {
    %c0_i32 = arith.constant 0 : i32
    %c0_i32_0 = arith.constant 0 : i32
    %c0_i32_1 = arith.constant 0 : i32
    return %c0_i32, %c0_i32_0 : i32, i32
  }
  func.func @transform_5(%arg0: i32) -> (i32, i32) {
    %c0_i32 = arith.constant 0 : i32
    %c0_i32_0 = arith.constant 0 : i32
    %c0_i32_1 = arith.constant 0 : i32
    return %c0_i32, %c0_i32_0 : i32, i32
  }
  func.func @transform_6(%arg0: i32) -> (i32, i32, i32) {
    %c0_i32 = arith.constant 0 : i32
    %c0_i32_0 = arith.constant 0 : i32
    %c0_i32_1 = arith.constant 0 : i32
    return %arg0, %c0_i32, %c0_i32_0 : i32, i32, i32
  }
}

</mosaic_0001>

<bundles_post_ra>
// kernel: tpu_custom_call.1
= control target key start
LH: loop header
LB: loop body
LE: loop exit
PB: predicated region body
PF: predicated region fallthrough
CT: control target
= control target key end

     0   :  { %11 = vsyncpa [#allocation4], 0  ;;  %s7442_s0 = inlined_call_operand.vmem [shape: f32[8,64,32], index: 0, kind: input, shape index: {}]   ;;  %s7443_s1 = inlined_call_operand.vmem [shape: f32[2,25,1,32], index: 1, kind: input, shape index: {}]   ;;  %s7444_s2 = inlined_call_operand.vmem [shape: f32[1,32,32], index: 2, kind: input, shape index: {}]   ;;  %s7445_s3 = inlined_call_operand.vmem [shape: f32[1,32], index: 3, kind: input, shape index: {}]   ;;  %s7446_s4 = inlined_call_operand.vmem [shape: f32[96,32], index: 4, kind: input, shape index: {}]   ;;  %s7447_s5 = inlined_call_operand.vmem [shape: f32[96,1], index: 5, kind: input, shape index: {}]   ;;  %s7448_s6 = inlined_call_operand.hbm [shape: f32[4,96,128], index: 6, kind: output, shape index: {}]  }
   0x1   :  { %13 = vsyncpa [#allocation4 + $0x1], 0  ;;  %s4239_s21 = smov 0   ;;  %s4241_s22 = smov 0  }
   0x2   :  { %s4243_s23 = smov 0   ;;  %s4245_s24 = smov 0  }
   0x3 LB: > { %s4260_s25 = sadd.s32 4294967295, %s4197_s24   ;;  %s3428_s26 = sadd.s32 4294967294, %s4197_s24   ;;  %s4197_s24 = sphi %s4245_s24, %s8062_s24   ;;  %s4193_s23 = sphi %s4243_s23, %s8061_s23   ;;  %s4189_s22 = sphi %s4241_s22, %s8060_s22   ;;  %s4185_s21 = sphi %s4239_s21, %s8059_s21  }
   0x4   : > { %s4264_s27 = sadd.s32 1, %s4197_s24   ;;  %s157_s28 = sadd.s32 1, %s4193_s23 }
   0x5   : > { %s154_s29 = ssub.s32 %s4197_s24, %s4264_s27  ;;  %p167_p0 = scmp.ne.s32.totalorder %s4193_s23, %s4189_s22 }
   0x6   : > { %p155_p1 = scmp.eq.s32.totalorder %s154_s29, 0  ;;  %p168_p2 = scmp.eq.s32.totalorder %s4260_s25, 3 }
   0x7   : > { %p173_p3 = scmp.ne.s32.totalorder %s4189_s22, %s4185_s21  ;;  %p174_p4 = scmp.eq.s32.totalorder %s3428_s26, 3 }
   0x8   : > { %s4275_s30 = scalar_select %p155_p1, %s4193_s23, %s157_s28  }
   0x9   : > { %p4277_p5 = por %p168_p2, %p167_p0  ;;  %p4281_p6 = por %p174_p4, %p173_p3 }
   0xa   : > { %p3431_p7 = scmp.ge.s32.totalorder %s4197_s24, 1  ;;  %p217_p8 = scmp.lt.s32.totalorder %s4197_s24, 5 }
   0xc   : > { %p218_p9 = pnand %p3431_p7, %p217_p8 }
   0xe   : > { %221 = sbr.rel (%p218_p9) target bundleno = 946 (0x3b2), region = 44 }
  0x15   : > { %v2474_v0 = vld [vmem:[%s7444_s2] sm:$0xff]  ;;  %v2475_v1 = vld [vmem:[%s7444_s2 + $0x8] sm:$0xff]  ;;  %v2476_v2 = vld [vmem:[%s7444_s2 + $0x10] sm:$0xff]  ;;  %s3432_s15 = sshll.u32 %s4260_s25, 1  ;;  %vm271_vm0 = vcmask 261120   ;;  %v4199_v5 = vmov 0.0  }
  0x16   : > { %v3713_v3 = vpack.c.bf16 %v2475_v1, %v2474_v0  ;;  %v2477_v4 = vld [vmem:[%s7444_s2 + $0x18] sm:$0xff]  ;;  %p249_p10 = scmp.lt.s32.totalorder %s3432_s15, 7  ;;  %272 = vst.msk [vmem:[#allocation2] sm:$0xff] %vm271_vm0, %v4199_v5  ;;  %vm273_vm1 = vcmask 257024   ;;  %275 = vst.msk [vmem:[#allocation2 + $0x58] sm:$0xff] %vm271_vm0, %v4199_v5  ;;  %s245_s12 = sand.u32 1, %s4189_s22  }
  0x17   : > { %293 = vst.msk [vmem:[#allocation2 + $0x4c] sm:$0xff] %vm271_vm0, %v4199_v5  ;;  %295 = vst.msk [vmem:[#allocation2 + $0xa4] sm:$0xff] %vm271_vm0, %v4199_v5  ;;  %v3717_v6 = vpack.c.bf16 %v2477_v4, %v2476_v2  ;;  %v4327_v10 = vld [vmem:[%s7443_s1 + $0x19] ss:$0 sm:$0xff]  ;;  %v4332_v13 = vld [vmem:[%s7443_s1 + $0x1a] ss:$0 sm:$0xff] }
  0x18   : > { %274 = vst.msk [vmem:[#allocation2 + $0x8] sm:$0xf] %vm273_vm1, %v4199_v5  ;;  %276 = vst.msk [vmem:[#allocation2 + $0x60] sm:$0xf] %vm273_vm1, %v4199_v5  ;;  %3714 = vmatprep.subr.bf16.mxu0 %v3713_v3  ;;  %s8064_s15 = smov (!%p249_p10, %s3432_s15), 7  ;;  %s3785_s13 = smul.u32 96, %s245_s12 }
  0x19   : > { %294 = vst.msk [vmem:[#allocation2 + $0x54] sm:$0xf] %vm273_vm1, %v4199_v5  ;;  %296 = vst.msk [vmem:[#allocation2 + $0xac] sm:$0xf] %vm273_vm1, %v4199_v5  ;;  %3716 = vmatpush3.bf16.msra.mxu0 %v3713_v3  ;;  %s3582_s18 = sshll.u32 %s8064_s15, 6  ;;  %s4201_s20 = smov [#allocation3]  }
  0x1a   : > { %3718 = vmatprep.subr.bf16.mxu0 %v3717_v6  ;;  %s4307_s26 = scalar_lea.vmem %s7442_s0, %s3582_s18  ;;  %v4339_v17 = vld [vmem:[%s7443_s1 + $0x1b] ss:$0 sm:$0xff]  ;;  %v4347_v22 = vld [vmem:[%s7443_s1 + $0x1c] ss:$0 sm:$0xff]  ;;  %v4356_v26 = vld [vmem:[%s7443_s1 + $0x1d] ss:$0 sm:$0xff] }
  0x1b   : > { %v4310_v7 = vld [vmem:[%s4307_s26] sm:$0xff]  ;;  %v4313_v8 = vld [vmem:[%s4307_s26 + $0x8] sm:$0xff]  ;;  %v4316_v9 = vld [vmem:[%s4307_s26 + $0x10] sm:$0xff]  ;;  %s7376_s14 = scalar_lea.vmem [#allocation3], %s3785_s13  ;;  %s4139_s28 = sshll.u32 %s4201_s20, 4  ;;  %s4140_s28 = int_to_ptr.vmem [resolvable:$false] %s4139_s28 }
  0x1c   : > { %7671 = vst [vmem:[#allocation6_spill] sm:$0xff] %v4310_v7  ;;  %7672 = vst [vmem:[#allocation7_spill] sm:$0xff] %v4313_v8  ;;  %v4370_v33 = vld [vmem:[%s7443_s1 + $0x1e] ss:$0 sm:$0xff]  ;;  %v4387_v42 = vld [vmem:[%s4307_s26 + $0x20] sm:$0xff]  ;;  %s3366_s15 = sshll.u32 %s7376_s14, 4  ;;  %s7390_s15 = int_to_ptr.vmem [resolvable:$true] %s3366_s15 }
  0x1d   : > { %7673 = vst [vmem:[#allocation8_spill] sm:$0xff] %v4316_v9  ;;  %3720 = vmatpush3.bf16.msra.mxu0 %v3717_v6  ;;  %277 = vst.msk [vmem:[#allocation2 + $0xc] sm:$0xff] %vm271_vm0, %v4310_v7  ;;  %v297_v11 = vld [vmem:[#allocation2] sm:$0xff]  ;;  %v4373_v34 = vld [vmem:[%s4307_s26 + $0x18] sm:$0xff]  ;;  %s4135_s19 = scalar_lea.vmem %s7390_s15, 1536  ;;  %s4141_s29 = scalar_lea.vmem %s4140_s28, 3072 }
  0x1e   : > { %278 = vst.msk [vmem:[#allocation2 + $0x14] sm:$0xff] %vm271_vm0, %v4313_v8  ;;  %279 = vst.msk [vmem:[#allocation2 + $0x1c] sm:$0xff] %vm271_vm0, %v4316_v9  ;;  %v1482_v14 = vmul.f32 %v4327_v10, %v297_v11  ;;  %v4390_v43 = vld [vmem:[%s4307_s26 + $0x28] sm:$0xff]  ;;  %v4393_v44 = vld [vmem:[%s4307_s26 + $0x30] sm:$0xff]  ;;  %p4136_p11 = scmp.ne.s32.totalorder %s7390_s15, %s4135_s19  ;;  %p4142_p0 = scmp.lt.s32.totalorder %s7390_s15, %s4140_s28 }
  0x1f   : > { %v352_v12 = vld [vmem:[#allocation2 + $0x1] sm:$0xff]  ;;  %7676 = vst [vmem:[#allocation11_spill] sm:$0xff] %v4373_v34  ;;  %280 = vst.msk [vmem:[#allocation2 + $0x24] sm:$0xff] %vm271_vm0, %v4373_v34  ;;  %v4404_v47 = vld [vmem:[%s4307_s26 + $0x38] sm:$0xff]  ;;  %p4143_p1 = scmp.lt.s32.totalorder %s4141_s29, %s4135_s19 }
  0x20   : > { %v1522_v15 = vmul.f32 %v4332_v13, %v352_v12  ;;  %v408_v16 = vld [vmem:[#allocation2 + $0x2] sm:$0xff]  ;;  %7678 = vst [vmem:[#allocation13_spill] sm:$0xff] %v4387_v42  ;;  %7679 = vst [vmem:[#allocation14_spill] sm:$0xff] %v4390_v43  ;;  %v4415_v53 = vld [vmem:[%s7443_s1 + $0x1f] ss:$0 sm:$0xff]  ;;  %p4137_p12 = pnand %p4136_p11, %p4277_p5 }
  0x21   : > { %v1562_v19 = vmul.f32 %v4339_v17, %v408_v16  ;;  %v464_v21 = vld [vmem:[#allocation2 + $0x3] sm:$0xff]  ;;  %7680 = vst [vmem:[#allocation15_spill] sm:$0xff] %v4393_v44  ;;  %281 = vst.msk [vmem:[#allocation2 + $0x2c] sm:$0xff] %vm271_vm0, %v4387_v42  ;;  %v4429_v61 = vld [vmem:[%s7443_s1 + $0x20] ss:$0 sm:$0xff]  ;;  %p4144_p2 = por %p4143_p1, %p4142_p0 }
  0x22   : > { %v1538_v18 = vadd.f32 %v1522_v15, %v1482_v14  ;;  %v520_v25 = vld [vmem:[#allocation2 + $0x4] sm:$0xff]  ;;  %v1602_v30 = vmul.f32 %v4347_v22, %v464_v21  ;;  %282 = vst.msk [vmem:[#allocation2 + $0x34] sm:$0xff] %vm271_vm0, %v4390_v43  ;;  %283 = vst.msk [vmem:[#allocation2 + $0x3c] sm:$0xff] %vm271_vm0, %v4393_v44  ;;  %v4445_v11 = vld [vmem:[%s7443_s1 + $0x21] ss:$0 sm:$0xff]  ;;  %p4138_p13 = pneg %p4137_p12 }
  0x23   : > { %v1642_v39 = vmul.f32 %v4356_v26, %v520_v25  ;;  %7682 = vst [vmem:[#allocation17_spill] sm:$0xff] %v4404_v47  ;;  %284 = vst.msk [vmem:[#allocation2 + $0x44] sm:$0xff] %vm271_vm0, %v4404_v47  ;;  %v4433_v0 = vld [vmem:[%s4307_s26 + $0x40] sm:$0xff]  ;;  %v4436_v1 = vld [vmem:[%s4307_s26 + $0x48] sm:$0xff] }
  0x24   : > { %v4342_v20 = vld [vmem:[#allocation2 + $0x8] sm:$0xff]  ;;  %v1578_v29 = vadd.f32 %v1562_v19, %v1538_v18  ;;  %7685 = vst [vmem:[#allocation20_spill] sm:$0xff] %v4433_v0  ;;  %7686 = vst [vmem:[#allocation21_spill] sm:$0xff] %v4436_v1  ;;  %v4457_v18 = vld [vmem:[%s7443_s1 + $0x22] ss:$0 sm:$0xff]  ;;  %p4145_p3 = pnand %p4144_p2, %p4138_p13 }
  0x25   : > { %v4349_v23 = vld [vmem:[#allocation2 + $0x9] sm:$0xff]  ;;  %v1483_v28 = vmul.f32 %v4327_v10, %v4342_v20  ;;  %v4375_v35 = vld [vmem:[#allocation2 + $0x11] sm:$0xff]  ;;  %285 = vst.msk [vmem:[#allocation2 + $0x64] sm:$0xff] %vm271_vm0, %v4433_v0  ;;  %286 = vst.msk [vmem:[#allocation2 + $0x6c] sm:$0xff] %vm271_vm0, %v4436_v1  ;;  %v1802_v25 = vmul.f32 %v4445_v11, %v4342_v20 }
  0x26   : > { %v4351_v24 = vld [vmem:[#allocation2 + $0xa] sm:$0xff]  ;;  %v1523_v32 = vmul.f32 %v4332_v13, %v4349_v23  ;;  %v1618_v46 = vadd.f32 %v1602_v30, %v1578_v29  ;;  %v1524_v50 = vmul.f32 %v4332_v13, %v4375_v35  ;;  %v4419_v54 = vld [vmem:[#allocation2 + $0x12] sm:$0xff]  ;;  %v4574_v0 = vld [vmem:[#allocation2 + $0x1b] sm:$0xff] }
  0x27   : > { %7674 = vst [vmem:[#allocation9_spill] sm:$0xff] %v4351_v24  ;;  %v4358_v27 = vld [vmem:[#allocation2 + $0xb] sm:$0xff]  ;;  %v1563_v38 = vmul.f32 %v4339_v17, %v4351_v24  ;;  %7683 = vst [vmem:[#allocation18_spill] sm:$0xff] %v4419_v54  ;;  %v1564_v4 = vmul.f32 %v4339_v17, %v4419_v54  ;;  %v4451_v12 = vld [vmem:[#allocation2 + $0x13] sm:$0xff] }
  0x28   : > { %7675 = vst [vmem:[#allocation10_spill] sm:$0xff] %v4358_v27  ;;  %v4363_v31 = vld [vmem:[#allocation2 + $0x10] sm:$0xff]  ;;  %v576_v37 = vld [vmem:[#allocation2 + $0x5] sm:$0xff]  ;;  %v1539_v40 = vadd.f32 %v1523_v32, %v1483_v28  ;;  %v1603_v41 = vmul.f32 %v4347_v22, %v4358_v27  ;;  %v1658_v56 = vadd.f32 %v1642_v39, %v1618_v46  ;;  %7687 = vst [vmem:[#allocation22_spill] sm:$0xff] %v4451_v12 }
  0x29   : > { %v4377_v36 = vld [vmem:[#allocation2 + $0xc] sm:$0xff]  ;;  %v1484_v49 = vmul.f32 %v4327_v10, %v4363_v31  ;;  %v1682_v57 = vmul.f32 %v4370_v33, %v576_v37  ;;  %v4465_v28 = vld [vmem:[%s7443_s1 + $0x23] ss:$0 sm:$0xff]  ;;  %v1604_v30 = vmul.f32 %v4347_v22, %v4451_v12  ;;  %v4472_v37 = vld [vmem:[%s7443_s1 + $0x24] ss:$0 sm:$0xff]  ;;  %7694 = vst [vmem:[#allocation29_spill] sm:$0xff] %v4574_v0 }
  0x2a   : > { %7677 = vst [vmem:[#allocation12_spill] sm:$0xff] %v4377_v36  ;;  %v4395_v45 = vld [vmem:[#allocation2 + $0xd] sm:$0xff]  ;;  %v1579_v51 = vadd.f32 %v1563_v38, %v1539_v40  ;;  %v1643_v52 = vmul.f32 %v4356_v26, %v4377_v36  ;;  %v1842_v40 = vmul.f32 %v4457_v18, %v4349_v23  ;;  %v4483_v46 = vld [vmem:[%s7443_s1 + $0x25] ss:$0 sm:$0xff]  ;;  %v4601_v34 = vld [vmem:[%s4307_s26 + $0x58] sm:$0xff] }
  0x2b   : > { %7681 = vst [vmem:[#allocation16_spill] sm:$0xff] %v4395_v45  ;;  %v632_v48 = vld [vmem:[#allocation2 + $0x6] sm:$0xff]  ;;  %v4421_v55 = vld [vmem:[#allocation2 + $0xe] sm:$0xff]  ;;  %v1683_v60 = vmul.f32 %v4370_v33, %v4395_v45  ;;  %v1698_v62 = vadd.f32 %v1682_v57, %v1658_v56  ;;  %v1540_v3 = vadd.f32 %v1524_v50, %v1484_v49  ;;  %v1803_v49 = vmul.f32 %v4445_v11, %v4363_v31  ;;  %vm7207_vm2 = vmpackc.low %vm271_vm0, %vm271_vm0 }
  0x2c   : > { %7684 = vst [vmem:[#allocation19_spill] sm:$0xff] %v4421_v55  ;;  %v688_v58 = vld [vmem:[#allocation2 + $0x7] sm:$0xff]  ;;  %v1619_v59 = vadd.f32 %v1603_v41, %v1579_v51  ;;  %v1722_v63 = vmul.f32 %v4415_v53, %v632_v48  ;;  %v689_v2 = vld [vmem:[#allocation2 + $0xf] sm:$0xff]  ;;  %v1723_v6 = vmul.f32 %v4415_v53, %v4421_v55  ;;  %v1882_v41 = vmul.f32 %v4465_v28, %v4351_v24  ;;  %v4494_v57 = vld [vmem:[%s7443_s1 + $0x26] ss:$0 sm:$0xff] }
  0x2d   : > { %v1762_v15 = vmul.f32 %v4429_v61, %v688_v58  ;;  %v1763_v19 = vmul.f32 %v4429_v61, %v689_v2  ;;  %v1580_v29 = vadd.f32 %v1564_v4, %v1540_v3  ;;  %v4474_v38 = vld [vmem:[#allocation2 + $0x14] sm:$0xff]  ;;  %v1922_v51 = vmul.f32 %v4472_v37, %v4358_v27  ;;  %7696 = vst [vmem:[#allocation31_spill] sm:$0xff] %v4601_v34 }
  0x2e   : > { %v1659_v5 = vadd.f32 %v1643_v52, %v1619_v59  ;;  %v1738_v14 = vadd.f32 %v1722_v63, %v1698_v62  ;;  %7688 = vst [vmem:[#allocation23_spill] sm:$0xff] %v4474_v38  ;;  %v1644_v56 = vmul.f32 %v4356_v26, %v4474_v38  ;;  %v4496_v58 = vld [vmem:[#allocation2 + $0x15] sm:$0xff]  ;;  %v4503_v62 = vld [vmem:[%s7443_s1 + $0x27] ss:$0 sm:$0xff]  ;;  %288 = vst.msk [vmem:[#allocation2 + $0x7c] sm:$0xff] %vm271_vm0, %v4601_v34 }
  0x2f   : > { %v1620_v52 = vadd.f32 %v1604_v30, %v1580_v29  ;;  %7689 = vst [vmem:[#allocation24_spill] sm:$0xff] %v4496_v58  ;;  %v4505_v63 = vld [vmem:[#allocation2 + $0x18] sm:$0xff]  ;;  %v2042_v29 = vmul.f32 %v4503_v62, %v4421_v55  ;;  %v4633_v34 = vld [vmem:[%s4307_s26 + $0x68] sm:$0xff] }
  0x30   : > { %v1699_v16 = vadd.f32 %v1683_v60, %v1659_v5  ;;  %v1778_v21 = vadd.f32 %v1762_v15, %v1738_v14  ;;  %v1962_v60 = vmul.f32 %v4483_v46, %v4377_v36  ;;  %v4507_v3 = vld [vmem:[#allocation2 + $0x19] sm:$0xff]  ;;  %v1843_v5 = vmul.f32 %v4457_v18, %v4375_v35  ;;  %7699 = vst [vmem:[#allocation34_spill] sm:$0xff] %v4633_v34 }
  0x31   : > { %v2002_v14 = vmul.f32 %v4494_v57, %v4395_v45  ;;  %v1660_v15 = vadd.f32 %v1644_v56, %v1620_v52  ;;  %v1485_v30 = vmul.f32 %v4327_v10, %v4505_v63  ;;  %v4544_v56 = vld [vmem:[%s7443_s1 + $0x2a] ss:$0 sm:$0xff]  ;;  %v1804_v42 = vmul.f32 %v4445_v11, %v4505_v63  ;;  %290 = vst.msk [vmem:[#allocation2 + $0x8c] sm:$0xff] %vm271_vm0, %v4633_v34  ;;  %v4656_v34 = vld [vmem:[#allocation2 + $0x1e] sm:$0xff] }
  0x32   : > { %v1739_v32 = vadd.f32 %v1723_v6, %v1699_v16  ;;  %v1818_v39 = vadd.f32 %v1802_v25, %v1778_v21  ;;  %v1684_v16 = vmul.f32 %v4370_v33, %v4496_v58  ;;  %v4520_v21 = vld [vmem:[#allocation2 + $0x16] sm:$0xff]  ;;  %7702 = vst [vmem:[#allocation37_spill] sm:$0xff] %v4656_v34 }
  0x33   : > { %7690 = vst [vmem:[#allocation25_spill] sm:$0xff] %v4520_v21  ;;  %v1724_v52 = vmul.f32 %v4415_v53, %v4520_v21  ;;  %v2043_v44 = vmul.f32 %v4503_v62, %v4520_v21 }
  0x34   : > { %v1779_v48 = vadd.f32 %v1763_v19, %v1739_v32  ;;  %v1858_v50 = vadd.f32 %v1842_v40, %v1818_v39  ;;  %v4518_v19 = vld [vmem:[%s7443_s1 + $0x28] ss:$0 sm:$0xff]  ;;  %v1525_v32 = vmul.f32 %v4332_v13, %v4507_v3  ;;  %v4531_v39 = vld [vmem:[%s7443_s1 + $0x29] ss:$0 sm:$0xff] }
  0x36   : > { %v1898_v59 = vadd.f32 %v1882_v41, %v1858_v50  ;;  %v1819_v4 = vadd.f32 %v1803_v49, %v1779_v48  ;;  %v1883_v41 = vmul.f32 %v4465_v28, %v4419_v54  ;;  %v2082_v49 = vmul.f32 %v4518_v19, %v689_v2  ;;  %v4537_v50 = vld [vmem:[%s4307_s26 + $0x50] sm:$0xff] }
  0x37   : > { %7691 = vst [vmem:[#allocation26_spill] sm:$0xff] %v4537_v50  ;;  %287 = vst.msk [vmem:[#allocation2 + $0x74] sm:$0xff] %vm271_vm0, %v4537_v50  ;;  %v1923_v2 = vmul.f32 %v4472_v37, %v4451_v12 }
  0x38   : > { %v1938_v6 = vadd.f32 %v1922_v51, %v1898_v59  ;;  %v1859_v40 = vadd.f32 %v1843_v5, %v1819_v4  ;;  %v1700_v51 = vadd.f32 %v1684_v16, %v1660_v15  ;;  %v4546_v59 = vld [vmem:[#allocation2 + $0x1a] sm:$0xff]  ;;  %v2122_v5 = vmul.f32 %v4531_v39, %v4363_v31  ;;  %v4561_v15 = vld [vmem:[%s7443_s1 + $0x2b] ss:$0 sm:$0xff] }
  0x39   : > { %7692 = vst [vmem:[#allocation27_spill] sm:$0xff] %v4546_v59  ;;  %v2202_v1 = vmul.f32 %v4561_v15, %v4419_v54 }
  0x3a   : > { %v1978_v25 = vadd.f32 %v1962_v60, %v1938_v6  ;;  %v4550_v60 = vld [vmem:[#allocation2 + $0x17] sm:$0xff]  ;;  %v1541_v6 = vadd.f32 %v1525_v32, %v1485_v30  ;;  %v1565_v30 = vmul.f32 %v4339_v17, %v4546_v59  ;;  %v1899_v32 = vadd.f32 %v1883_v41, %v1859_v40  ;;  %v4587_v41 = vld [vmem:[%s7443_s1 + $0x2d] ss:$0 sm:$0xff] }
  0x3b   : > { %7693 = vst [vmem:[#allocation28_spill] sm:$0xff] %v4550_v60  ;;  %v1764_v50 = vmul.f32 %v4429_v61, %v4550_v60  ;;  %v2282_v9 = vmul.f32 %v4587_v41, %v4474_v38 }
  0x3c   : > { %v2018_v48 = vadd.f32 %v2002_v14, %v1978_v25  ;;  %v1963_v14 = vmul.f32 %v4483_v46, %v4474_v38  ;;  %v2162_v25 = vmul.f32 %v4544_v56, %v4375_v35  ;;  %v1939_v47 = vadd.f32 %v1923_v2, %v1899_v32 }
  0x3d   : > { %v1581_v2 = vadd.f32 %v1565_v30, %v1541_v6  ;;  %v4624_v30 = vld [vmem:[%s7443_s1 + $0x30] ss:$0 sm:$0xff] }
  0x3e   : > { %v2058_v4 = vadd.f32 %v2042_v29, %v2018_v48  ;;  %v4568_v29 = vld [vmem:[%s7443_s1 + $0x2c] ss:$0 sm:$0xff]  ;;  %v1740_v48 = vadd.f32 %v1724_v52, %v1700_v51  ;;  %v4592_v52 = vld [vmem:[%s7443_s1 + $0x2e] ss:$0 sm:$0xff]  ;;  %v1979_v32 = vadd.f32 %v1963_v14, %v1939_v47  ;;  %v4619_v14 = vld [vmem:[%s4307_s26 + $0x60] sm:$0xff] }
  0x3f   : > { %v2242_v40 = vmul.f32 %v4568_v29, %v4451_v12  ;;  %v2322_v47 = vmul.f32 %v4592_v52, %v4496_v58  ;;  %7697 = vst [vmem:[#allocation32_spill] sm:$0xff] %v4619_v14  ;;  %289 = vst.msk [vmem:[#allocation2 + $0x84] sm:$0xff] %vm271_vm0, %v4619_v14  ;;  %v4645_v14 = vld [vmem:[#allocation2 + $0x21] sm:$0xff] }
  0x40   : > { %v2098_v16 = vadd.f32 %v2082_v49, %v2058_v4  ;;  %v2003_v49 = vmul.f32 %v4494_v57, %v4496_v58  ;;  %v1780_v43 = vadd.f32 %v1764_v50, %v1740_v48  ;;  %v4614_v50 = vld [vmem:[%s7443_s1 + $0x2f] ss:$0 sm:$0xff]  ;;  %v4626_v48 = vld [vmem:[#allocation2 + $0x1d] sm:$0xff]  ;;  %7701 = vst [vmem:[#allocation36_spill] sm:$0xff] %v4645_v14  ;;  %v1526_v58 = vmul.f32 %v4332_v13, %v4645_v14 }
  0x41   : > { %7698 = vst [vmem:[#allocation33_spill] sm:$0xff] %v4626_v48 }
  0x42   : > { %v2138_v4 = vadd.f32 %v2122_v5, %v2098_v16  ;;  %v4594_v5 = vld [vmem:[#allocation2 + $0x1c] sm:$0xff]  ;;  %v1605_v16 = vmul.f32 %v4347_v22, %v4574_v0  ;;  %v2019_v7 = vadd.f32 %v2003_v49, %v1979_v32  ;;  %v2123_v32 = vmul.f32 %v4531_v39, %v4505_v63 }
  0x43   : > { %7695 = vst [vmem:[#allocation30_spill] sm:$0xff] %v4594_v5  ;;  %v1645_v6 = vmul.f32 %v4356_v26, %v4594_v5  ;;  %v1820_v8 = vadd.f32 %v1804_v42, %v1780_v43  ;;  %v2402_v42 = vmul.f32 %v4624_v30, %v4550_v60  ;;  %v4652_v43 = vld [vmem:[%s7443_s1 + $0x31] ss:$0 sm:$0xff]  ;;  %v1964_v27 = vmul.f32 %v4483_v46, %v4594_v5 }
  0x44   : > { %v2178_v51 = vadd.f32 %v2162_v25, %v2138_v4  ;;  %v2083_v25 = vmul.f32 %v4518_v19, %v4550_v60  ;;  %v1621_v49 = vadd.f32 %v1605_v16, %v1581_v2  ;;  %v2362_v2 = vmul.f32 %v4614_v50, %v4520_v21 }
  0x45   : > { %v2163_v16 = vmul.f32 %v4544_v56, %v4507_v3  ;;  %v2203_v21 = vmul.f32 %v4561_v15, %v4546_v59  ;;  %v2442_v38 = vmul.f32 %v4652_v43, %v4505_v63 }
  0x46   : > { %v2218_v4 = vadd.f32 %v2202_v1, %v2178_v51  ;;  %v2059_v51 = vadd.f32 %v2043_v44, %v2019_v7  ;;  %v4641_v7 = vld [vmem:[#allocation2 + $0x20] sm:$0xff] }
  0x47   : > { %7700 = vst [vmem:[#allocation35_spill] sm:$0xff] %v4641_v7  ;;  %v1486_v60 = vmul.f32 %v4327_v10, %v4641_v7 }
  0x48   : > { %v2258_v1 = vadd.f32 %v2242_v40, %v2218_v4  ;;  %v1844_v40 = vmul.f32 %v4457_v18, %v4507_v3  ;;  %v2099_v44 = vadd.f32 %v2083_v25, %v2059_v51  ;;  %v1661_v25 = vadd.f32 %v1645_v6, %v1621_v49  ;;  %v4668_v6 = vld [vmem:[#allocation2 + $0x22] sm:$0xff] }
  0x49   : > { %7703 = vst [vmem:[#allocation38_spill] sm:$0xff] %v4668_v6  ;;  %v1725_v49 = vmul.f32 %v4415_v53, %v4656_v34 }
  0x4a   : > { %v2298_v4 = vadd.f32 %v2282_v9, %v2258_v1  ;;  %v1685_v9 = vmul.f32 %v4370_v33, %v4626_v48  ;;  %v2139_v51 = vadd.f32 %v2123_v32, %v2099_v44  ;;  %v1860_v55 = vadd.f32 %v1844_v40, %v1820_v8 }
  0x4b   : > { %v1884_v8 = vmul.f32 %v4465_v28, %v4546_v59  ;;  %v1924_v32 = vmul.f32 %v4472_v37, %v4574_v0  ;;  %v2283_v44 = vmul.f32 %v4587_v41, %v4594_v5  ;;  %v4757_v5 = vld [vmem:[#allocation2 + $0x2b] sm:$0xff] }
  0x4c   : > { %v2338_v1 = vadd.f32 %v2322_v47, %v2298_v4  ;;  %v2179_v36 = vadd.f32 %v2163_v16, %v2139_v51  ;;  %v2243_v47 = vmul.f32 %v4568_v29, %v4574_v0  ;;  %v1701_v4 = vadd.f32 %v1685_v9, %v1661_v25  ;;  %v4678_v16 = vld [vmem:[#allocation2 + $0x1f] sm:$0xff]  ;;  %7714 = vst [vmem:[#allocation49_spill] sm:$0xff] %v4757_v5 }
  0x4d   : > { %7704 = vst [vmem:[#allocation39_spill] sm:$0xff] %v4678_v16  ;;  %v1566_v51 = vmul.f32 %v4339_v17, %v4668_v6  ;;  %v1900_v12 = vadd.f32 %v1884_v8, %v1860_v55  ;;  %v1765_v55 = vmul.f32 %v4429_v61, %v4678_v16  ;;  %v4892_v0 = vld [vmem:[%s7443_s1] ss:$0 sm:$0xff] }
  0x4e   : > { %v2378_v45 = vadd.f32 %v2362_v2, %v2338_v1  ;;  %v2219_v2 = vadd.f32 %v2203_v21, %v2179_v36  ;;  %v1542_v1 = vadd.f32 %v1526_v58, %v1486_v60  ;;  %v2004_v21 = vmul.f32 %v4494_v57, %v4626_v48 }
  0x4f   : > { %v1940_v36 = vadd.f32 %v1924_v32, %v1900_v12  ;;  %v1741_v58 = vadd.f32 %v1725_v49, %v1701_v4  ;;  %v2044_v12 = vmul.f32 %v4503_v62, %v4656_v34  ;;  %v4701_v49 = vld [vmem:[#allocation2 + $0x24] sm:$0xff]  ;;  %v1805_v4 = vmul.f32 %v4445_v11, %v4641_v7 }
  0x50   : > { %v2418_v40 = vadd.f32 %v2402_v42, %v2378_v45  ;;  %v2259_v54 = vadd.f32 %v2243_v47, %v2219_v2  ;;  %v2323_v45 = vmul.f32 %v4592_v52, %v4626_v48  ;;  %v4686_v42 = vld [vmem:[#allocation2 + $0x23] sm:$0xff]  ;;  %v1582_v9 = vadd.f32 %v1566_v51, %v1542_v1  ;;  %7706 = vst [vmem:[#allocation41_spill] sm:$0xff] %v4701_v49 }
  0x51   : > { %7705 = vst [vmem:[#allocation40_spill] sm:$0xff] %v4686_v42  ;;  %v1606_v25 = vmul.f32 %v4347_v22, %v4686_v42  ;;  %v1980_v47 = vadd.f32 %v1964_v27, %v1940_v36  ;;  %v2443_v27 = vmul.f32 %v4652_v43, %v4641_v7  ;;  %v1646_v1 = vmul.f32 %v4356_v26, %v4701_v49 }
  0x52   : > { %v2458_v59 = vadd.f32 %v2442_v38, %v2418_v40  ;;  %v2299_v60 = vadd.f32 %v2283_v44, %v2259_v54  ;;  %v2363_v38 = vmul.f32 %v4614_v50, %v4656_v34  ;;  %v2084_v54 = vmul.f32 %v4518_v19, %v4678_v16 }
  0x53   : > { %v2020_v32 = vadd.f32 %v2004_v21, %v1980_v47  ;;  %v1781_v40 = vadd.f32 %v1765_v55, %v1741_v58  ;;  %v1622_v44 = vadd.f32 %v1606_v25, %v1582_v9  ;;  %v4713_v21 = vld [vmem:[#allocation2 + $0x25] sm:$0xff] }
  0x54   : > { %3639 = vmatprep.mubr.msk.f32.mxu0 %vm271_vm0, %v2458_v59  ;;  %v2339_v8 = vadd.f32 %v2323_v45, %v2299_v60  ;;  %v2403_v59 = vmul.f32 %v4624_v30, %v4678_v16  ;;  %v2124_v45 = vmul.f32 %v4531_v39, %v4641_v7  ;;  %7707 = vst [vmem:[#allocation42_spill] sm:$0xff] %v4713_v21  ;;  %v4716_v60 = vld [vmem:[%s4307_s26 + $0x70] sm:$0xff]  ;;  %v4718_v58 = vld [vmem:[#allocation2 + $0x28] sm:$0xff] }
  0x55   : > { %v2060_v51 = vadd.f32 %v2044_v12, %v2020_v32  ;;  %7708 = vst [vmem:[#allocation43_spill] sm:$0xff] %v4716_v60  ;;  %7709 = vst [vmem:[#allocation44_spill] sm:$0xff] %v4718_v58  ;;  %v4722_v47 = vld [vmem:[#allocation2 + $0x29] sm:$0xff]  ;;  %v1821_v9 = vadd.f32 %v1805_v4, %v1781_v40  ;;  %v2244_v4 = vmul.f32 %v4568_v29, %v4686_v42 }
  0x56   : > { %v2379_v2 = vadd.f32 %v2363_v38, %v2339_v8  ;;  %v2164_v38 = vmul.f32 %v4544_v56, %v4645_v14  ;;  %7710 = vst [vmem:[#allocation45_spill] sm:$0xff] %v4722_v47  ;;  %291 = vst.msk [vmem:[#allocation2 + $0x94] sm:$0xff] %vm271_vm0, %v4716_v60  ;;  %v4726_v12 = vld [vmem:[#allocation2 + $0x26] sm:$0xff]  ;;  %v1662_v8 = vadd.f32 %v1646_v1, %v1622_v44 }
  0x57   : > { %v2100_v55 = vadd.f32 %v2084_v54, %v2060_v51  ;;  %7711 = vst [vmem:[#allocation46_spill] sm:$0xff] %v4726_v12  ;;  %v2204_v54 = vmul.f32 %v4561_v15, %v4668_v6  ;;  %v1527_v51 = vmul.f32 %v4332_v13, %v4722_v47  ;;  %v1845_v44 = vmul.f32 %v4457_v18, %v4645_v14 }
  0x58   : > { %v2419_v36 = vadd.f32 %v2403_v59, %v2379_v2  ;;  %v1686_v59 = vmul.f32 %v4370_v33, %v4713_v21  ;;  %v1487_v2 = vmul.f32 %v4327_v10, %v4718_v58  ;;  %v1885_v1 = vmul.f32 %v4465_v28, %v4668_v6 }
  0x59   : > { %v2140_v32 = vadd.f32 %v2124_v45, %v2100_v55  ;;  %v1726_v45 = vmul.f32 %v4415_v53, %v4726_v12  ;;  %v4749_v55 = vld [vmem:[#allocation2 + $0x27] sm:$0xff]  ;;  %v1925_v60 = vmul.f32 %v4472_v37, %v4686_v42  ;;  %v2324_v6 = vmul.f32 %v4592_v52, %v4713_v21 }
  0x5a   : > { %v2459_v25 = vadd.f32 %v2443_v27, %v2419_v36  ;;  %v4739_v27 = vld [vmem:[#allocation2 + $0x2a] sm:$0xff]  ;;  %v2284_v36 = vmul.f32 %v4587_v41, %v4701_v49  ;;  %7713 = vst [vmem:[#allocation48_spill] sm:$0xff] %v4749_v55  ;;  %v1543_v16 = vadd.f32 %v1527_v51, %v1487_v2  ;;  %v1965_v7 = vmul.f32 %v4483_v46, %v4701_v49 }
  0x5b   : > { %v2180_v40 = vadd.f32 %v2164_v38, %v2140_v32  ;;  %7712 = vst [vmem:[#allocation47_spill] sm:$0xff] %v4739_v27  ;;  %v1702_v38 = vadd.f32 %v1686_v59, %v1662_v8  ;;  %v1861_v32 = vadd.f32 %v1845_v44, %v1821_v9  ;;  %v1567_v34 = vmul.f32 %v4339_v17, %v4739_v27 }
  0x5c   : > { %3640 = vmatmul.mubr.msk.f32.vlgmr.msra.gmra.mrb[0].mxu0 %vm271_vm0, %v2459_v25  ;;  %v1766_v9 = vmul.f32 %v4429_v61, %v4749_v55  ;;  %v2364_v8 = vmul.f32 %v4614_v50, %v4726_v12  ;;  %v2005_v51 = vmul.f32 %v4494_v57, %v4713_v21  ;;  %v4791_v21 = vld [vmem:[#allocation2 + $0x2d] sm:$0xff] }
  0x5d   : > { %v2220_v25 = vadd.f32 %v2204_v54, %v2180_v40  ;;  %v1901_v14 = vadd.f32 %v1885_v1, %v1861_v32  ;;  %v1742_v59 = vadd.f32 %v1726_v45, %v1702_v38  ;;  %v1583_v40 = vadd.f32 %v1567_v34, %v1543_v16  ;;  %v4773_v32 = vld [vmem:[#allocation2 + $0x2c] sm:$0xff]  ;;  %7716 = vst [vmem:[#allocation51_spill] sm:$0xff] %v4791_v21 }
  0x5e   : > { %v2404_v1 = vmul.f32 %v4624_v30, %v4749_v55  ;;  %7715 = vst [vmem:[#allocation50_spill] sm:$0xff] %v4773_v32  ;;  %v2444_v34 = vmul.f32 %v4652_v43, %v4718_v58  ;;  %v2085_v45 = vmul.f32 %v4518_v19, %v4749_v55  ;;  %v4785_v38 = vld [vmem:[#allocation2 + $0x32] sm:$0xff] }
  0x5f   : > { %v2260_v48 = vadd.f32 %v2244_v4, %v2220_v25  ;;  %v1941_v2 = vadd.f32 %v1925_v60, %v1901_v14  ;;  %v1607_v4 = vmul.f32 %v4347_v22, %v4757_v5  ;;  %v4771_v25 = vld [vmem:[#allocation2 + $0x30] sm:$0xff]  ;;  %v1806_v14 = vmul.f32 %v4445_v11, %v4718_v58 }
  0x60   : > { %v1782_v16 = vadd.f32 %v1766_v9, %v1742_v59 }
  0x61   : > { %v2300_v54 = vadd.f32 %v2284_v36, %v2260_v48  ;;  %v1981_v49 = vadd.f32 %v1965_v7, %v1941_v2  ;;  %v2045_v48 = vmul.f32 %v4503_v62, %v4726_v12  ;;  %v4783_v36 = vld [vmem:[#allocation2 + $0x31] sm:$0xff]  ;;  %v1488_v7 = vmul.f32 %v4327_v10, %v4771_v25 }
  0x62   : > { %v1647_v2 = vmul.f32 %v4356_v26, %v4773_v32  ;;  %v1528_v59 = vmul.f32 %v4332_v13, %v4783_v36 }
  0x63   : > { %v2340_v44 = vadd.f32 %v2324_v6, %v2300_v54  ;;  %v2021_v60 = vadd.f32 %v2005_v51, %v1981_v49  ;;  %v1623_v54 = vadd.f32 %v1607_v4, %v1583_v40  ;;  %v2125_v49 = vmul.f32 %v4531_v39, %v4718_v58  ;;  %v4811_v58 = vld [vmem:[#allocation2 + $0x2e] sm:$0xff] }
  0x64   : > { %v1568_v51 = vmul.f32 %v4339_v17, %v4785_v38  ;;  %v1822_v40 = vadd.f32 %v1806_v14, %v1782_v16  ;;  %v1544_v55 = vadd.f32 %v1528_v59, %v1488_v7  ;;  %7718 = vst [vmem:[#allocation53_spill] sm:$0xff] %v4811_v58  ;;  %v2205_v14 = vmul.f32 %v4561_v15, %v4739_v27 }
  0x65   : > { %v2380_v6 = vadd.f32 %v2364_v8, %v2340_v44  ;;  %v2061_v9 = vadd.f32 %v2045_v48, %v2021_v60  ;;  %v4796_v8 = vld [vmem:[%s4307_s26 + $0x78] sm:$0xff]  ;;  %v1687_v60 = vmul.f32 %v4370_v33, %v4791_v21  ;;  %v2245_v7 = vmul.f32 %v4568_v29, %v4757_v5  ;;  %s3786_s26 = smul.u32 1536, %s4260_s25  ;;  %s7401_s25 = scalar_lea.sflag [#allocation4], %s245_s12 }
  0x66   : > { %7717 = vst [vmem:[#allocation52_spill] sm:$0xff] %v4796_v8  ;;  %292 = vst.msk [vmem:[#allocation2 + $0x9c] sm:$0xff] %vm271_vm0, %v4796_v8  ;;  %v4806_v48 = vld [vmem:[#allocation2 + $0x33] sm:$0xff] }
  0x67   : > { %v2420_v12 = vadd.f32 %v2404_v1, %v2380_v6  ;;  %v2101_v44 = vadd.f32 %v2085_v45, %v2061_v9  ;;  %v2165_v1 = vmul.f32 %v4544_v56, %v4722_v47  ;;  %v1663_v6 = vadd.f32 %v1647_v2, %v1623_v54  ;;  %v4823_v2 = vld [vmem:[#allocation2 + $0x34] sm:$0xff]  ;;  %s7395_s18 = scalar_lea.hbm %s7448_s6, %s3786_s26 }
  0x68   : > { %v1608_v16 = vmul.f32 %v4347_v22, %v4806_v48  ;;  %v1886_v45 = vmul.f32 %v4465_v28, %v4739_v27  ;;  %v4869_v27 = vld [vmem:[#allocation2 + $0x3b] sm:$0xff] }
  0x69   : > { %v2460_v4 = vadd.f32 %v2444_v34, %v2420_v12  ;;  %v2141_v42 = vadd.f32 %v2125_v49, %v2101_v44  ;;  %v1846_v12 = vmul.f32 %v4457_v18, %v4722_v47  ;;  %v1584_v34 = vadd.f32 %v1568_v51, %v1544_v55  ;;  %v4829_v51 = vld [vmem:[#allocation2 + $0x2f] sm:$0xff] }
  0x6a   : > { %v1926_v49 = vmul.f32 %v4472_v37, %v4757_v5  ;;  %v1703_v59 = vadd.f32 %v1687_v60, %v1663_v6  ;;  %v1727_v55 = vmul.f32 %v4415_v53, %v4811_v58  ;;  %7719 = vst [vmem:[#allocation54_spill] sm:$0xff] %v4829_v51  ;;  %v2285_v44 = vmul.f32 %v4587_v41, %v4773_v32  ;;  %v4839_v60 = vld [vmem:[#allocation2 + $0x35] sm:$0xff] }
  0x6b   : > { %3642 = vmatprep.mubr.msk.f32.mxu0 %vm271_vm0, %v2460_v4  ;;  %v2181_v54 = vadd.f32 %v2165_v1, %v2141_v42  ;;  %v1862_v9 = vadd.f32 %v1846_v12, %v1822_v40  ;;  %v1966_v1 = vmul.f32 %v4483_v46, %v4773_v32  ;;  %v1624_v8 = vadd.f32 %v1608_v16, %v1584_v34  ;;  %v4857_v32 = vld [vmem:[#allocation2 + $0x36] sm:$0xff] }
  0x6c   : > { %v1648_v40 = vmul.f32 %v4356_v26, %v4823_v2  ;;  %v2325_v6 = vmul.f32 %v4592_v52, %v4791_v21  ;;  %v2365_v16 = vmul.f32 %v4614_v50, %v4811_v58 }
  0x6d   : > { %v2221_v4 = vadd.f32 %v2205_v14, %v2181_v54  ;;  %v1902_v42 = vadd.f32 %v1886_v45, %v1862_v9  ;;  %v2006_v14 = vmul.f32 %v4494_v57, %v4791_v21  ;;  %v1743_v54 = vadd.f32 %v1727_v55, %v1703_v59  ;;  %v4845_v9 = vld [vmem:[#allocation2 + $0x38] sm:$0xff] }
  0x6e   : > { %v1767_v45 = vmul.f32 %v4429_v61, %v4829_v51  ;;  %7720 = vst [vmem:[#allocation55_spill] sm:$0xff] %v4845_v9  ;;  %v1688_v59 = vmul.f32 %v4370_v33, %v4839_v60  ;;  %v4855_v55 = vld [vmem:[#allocation2 + $0x39] sm:$0xff] }
  0x6f   : > { %v2261_v12 = vadd.f32 %v2245_v7, %v2221_v4  ;;  %v1942_v5 = vadd.f32 %v1926_v49, %v1902_v42  ;;  %v2046_v4 = vmul.f32 %v4503_v62, %v4811_v58  ;;  %v2405_v49 = vmul.f32 %v4624_v30, %v4829_v51 }
  0x70   : > { %v1664_v42 = vadd.f32 %v1648_v40, %v1624_v8  ;;  %v1783_v58 = vadd.f32 %v1767_v45, %v1743_v54  ;;  %v1807_v8 = vmul.f32 %v4445_v11, %v4771_v25  ;;  %v2445_v40 = vmul.f32 %v4652_v43, %v4771_v25 }
  0x71   : > { %v2301_v34 = vadd.f32 %v2285_v44, %v2261_v12  ;;  %v1982_v7 = vadd.f32 %v1966_v1, %v1942_v5  ;;  %v1489_v44 = vmul.f32 %v4327_v10, %v4845_v9  ;;  %v2086_v5 = vmul.f32 %v4518_v19, %v4829_v51  ;;  %v4863_v1 = vld [vmem:[#allocation2 + $0x3a] sm:$0xff] }
  0x72   : > { %v2126_v10 = vmul.f32 %v4531_v39, %v4771_v25  ;;  %v1728_v54 = vmul.f32 %v4415_v53, %v4857_v32  ;;  %v2166_v45 = vmul.f32 %v4544_v56, %v4783_v36  ;;  %v4879_v51 = vld [vmem:[#allocation2 + $0x3c] sm:$0xff]  ;;  %v1569_v47 = vmul.f32 %v4339_v17, %v4863_v1 }
  0x73   : > { %v2341_v21 = vadd.f32 %v2325_v6, %v2301_v34  ;;  %v2022_v12 = vadd.f32 %v2006_v14, %v1982_v7  ;;  %v1529_v14 = vmul.f32 %v4332_v13, %v4855_v55  ;;  %v1704_v7 = vadd.f32 %v1688_v59, %v1664_v42  ;;  %v4887_v59 = vld [vmem:[#allocation2 + $0x3d] sm:$0xff] }
  0x74   : > { %v1609_v25 = vmul.f32 %v4347_v22, %v4869_v27  ;;  %v1823_v13 = vadd.f32 %v1807_v8, %v1783_v58  ;;  %v2206_v42 = vmul.f32 %v4561_v15, %v4785_v38  ;;  %v4897_v58 = vld [vmem:[#allocation2 + $0x3e] sm:$0xff]  ;;  %v1847_v8 = vmul.f32 %v4457_v18, %v4783_v36 }
  0x75   : > { %v2381_v6 = vadd.f32 %v2365_v16, %v2341_v21  ;;  %v2062_v34 = vadd.f32 %v2046_v4, %v2022_v12  ;;  %v694_v16 = vld [vmem:[#allocation2 + $0x37] sm:$0xff]  ;;  %v1545_v12 = vadd.f32 %v1529_v14, %v1489_v44  ;;  %v1649_v44 = vmul.f32 %v4356_v26, %v4879_v51 }
  0x76   : > { %v1768_v22 = vmul.f32 %v4429_v61, %v694_v16  ;;  %v1689_v26 = vmul.f32 %v4370_v33, %v4887_v59  ;;  %v4914_v14 = vmul.f32 %v4892_v0, %v4363_v31  ;;  %v1729_v31 = vmul.f32 %v4415_v53, %v4897_v58 }
  0x77   : > { %v2421_v21 = vadd.f32 %v2405_v49, %v2381_v6  ;;  %v2102_v4 = vadd.f32 %v2086_v5, %v2062_v34  ;;  %v1585_v49 = vadd.f32 %v1569_v47, %v1545_v12  ;;  %v1744_v5 = vadd.f32 %v1728_v54, %v1704_v7  ;;  %v4916_v7 = vld [vmem:[#allocation2 + $0x3f] sm:$0xff] }
  0x78   : > { %v1887_v6 = vmul.f32 %v4465_v28, %v4785_v38  ;;  %v2246_v47 = vmul.f32 %v4568_v29, %v4806_v48  ;;  %v1863_v38 = vadd.f32 %v1847_v8, %v1823_v13  ;;  %v4923_v54 = vld [vmem:[%s7443_s1 + $0x1] ss:$0 sm:$0xff]  ;;  %v4941_v53 = vmul.f32 %v4892_v0, %v4505_v63 }
  0x79   : > { %v2461_v24 = vadd.f32 %v2445_v40, %v2421_v21  ;;  %v2142_v17 = vadd.f32 %v2126_v10, %v2102_v4  ;;  %v1625_v40 = vadd.f32 %v1609_v25, %v1585_v49  ;;  %v4910_v10 = vmul.f32 %v4892_v0, %v4342_v20  ;;  %v4931_v12 = vld [vmem:[#allocation2 + $0x40] sm:$0xff] }
  0x7a   : > { %v2286_v20 = vmul.f32 %v4587_v41, %v4823_v2  ;;  %v1784_v21 = vadd.f32 %v1768_v22, %v1744_v5  ;;  %v1808_v4 = vmul.f32 %v4445_v11, %v4845_v9  ;;  %v1967_v25 = vmul.f32 %v4483_v46, %v4823_v2 }
  0x7b   : > { %3643 = vmatmul.mubr.msk.f32.gmra.mrb[2].mxu0 %vm271_vm0, %v2461_v24  ;;  %v2182_v34 = vadd.f32 %v2166_v45, %v2142_v17  ;;  %v1927_v24 = vmul.f32 %v4472_v37, %v4806_v48  ;;  %v1665_v45 = vadd.f32 %v1649_v44, %v1625_v40  ;;  %v1903_v48 = vadd.f32 %v1887_v6, %v1863_v38  ;;  %v4955_v40 = vld [vmem:[#allocation2 + $0x41] sm:$0xff] }
  0x7c   : > { %v1769_v49 = vmul.f32 %v4429_v61, %v4916_v7  ;;  %v377_v44 = vmul.f32 %v4923_v54, %v4349_v23  ;;  %v2007_v22 = vmul.f32 %v4494_v57, %v4839_v60  ;;  %v2366_v8 = vmul.f32 %v4614_v50, %v4857_v32 }
  0x7d   : > { %v2222_v33 = vadd.f32 %v2206_v42, %v2182_v34  ;;  %v2326_v42 = vmul.f32 %v4592_v52, %v4839_v60  ;;  %v1705_v17 = vadd.f32 %v1689_v26, %v1665_v45  ;;  %v1943_v5 = vadd.f32 %v1927_v24, %v1903_v48  ;;  %v4965_v45 = vld [vmem:[#allocation2 + $0x43] sm:$0xff] }
  0x7e   : > { %v1809_v34 = vmul.f32 %v4445_v11, %v4931_v12  ;;  %v378_v61 = vmul.f32 %v4923_v54, %v4375_v35  ;;  %v1824_v63 = vadd.f32 %v1808_v4, %v1784_v21  ;;  %v2047_v23 = vmul.f32 %v4503_v62, %v4857_v32 }
  0x7f   : > { %v2262_v13 = vadd.f32 %v2246_v47, %v2222_v33  ;;  %v1745_v6 = vadd.f32 %v1729_v31, %v1705_v17  ;;  %v1983_v47 = vadd.f32 %v1967_v25, %v1943_v5  ;;  %v2406_v60 = vmul.f32 %v4624_v30, %v694_v16  ;;  %v4960_v33 = vld [vmem:[#allocation2 + $0x42] sm:$0xff] }
  0x80   : > { %v2446_v38 = vmul.f32 %v4652_v43, %v4845_v9  ;;  %v2127_v35 = vmul.f32 %v4531_v39, %v4845_v9  ;;  %v1848_v32 = vmul.f32 %v4457_v18, %v4855_v55  ;;  %v1849_v4 = vmul.f32 %v4457_v18, %v4955_v40  ;;  %v5414_v9 = vld [vmem:[%s7443_s1 + $0x2d] ss:$0 sm:$0xff] }
  0x81   : > { %v2302_v2 = vadd.f32 %v2286_v20, %v2262_v13  ;;  %v1785_v24 = vadd.f32 %v1769_v49, %v1745_v6  ;;  %v2023_v11 = vadd.f32 %v2007_v22, %v1983_v47  ;;  %v2087_v20 = vmul.f32 %v4518_v19, %v694_v16  ;;  %v4976_v16 = vld [vmem:[%s7443_s1 + $0x2] ss:$0 sm:$0xff]  ;;  %v4978_v13 = vld [vmem:[#allocation2 + $0x44] sm:$0xff] }
  0x82   : > { %v1888_v48 = vmul.f32 %v4465_v28, %v4863_v1  ;;  %7721 = vst [vmem:[#allocation56_spill] sm:$0xff] %v4976_v16  ;;  %v1889_v17 = vmul.f32 %v4465_v28, %v4960_v33  ;;  %v1928_v49 = vmul.f32 %v4472_v37, %v4869_v27  ;;  %v379_v18 = vmul.f32 %v4923_v54, %v4507_v3  ;;  %v7723_v47 = vld [vmem:[#allocation9_spill] sm:$0xff] }
  0x83   : > { %v2342_v26 = vadd.f32 %v2326_v42, %v2302_v2  ;;  %v1825_v21 = vadd.f32 %v1809_v34, %v1785_v24  ;;  %v2063_v25 = vadd.f32 %v2047_v23, %v2023_v11  ;;  %v1864_v42 = vadd.f32 %v1848_v32, %v1824_v63  ;;  %v4995_v34 = vld [vmem:[#allocation2 + $0x45] sm:$0xff] }
  0x84   : > { %v1929_v2 = vmul.f32 %v4472_v37, %v4965_v45  ;;  %v2167_v28 = vmul.f32 %v4544_v56, %v4855_v55  ;;  %v1968_v3 = vmul.f32 %v4483_v46, %v4879_v51  ;;  %v433_v23 = vmul.f32 %v4976_v16, %v7723_v47 }
  0x85   : > { %v2382_v31 = vadd.f32 %v2366_v8, %v2342_v26  ;;  %v1865_v22 = vadd.f32 %v1849_v4, %v1825_v21  ;;  %v4991_v8 = vld [vmem:[%s7443_s1 + $0x3] ss:$0 sm:$0xff]  ;;  %v2103_v6 = vadd.f32 %v2087_v20, %v2063_v25  ;;  %v1904_v63 = vadd.f32 %v1888_v48, %v1864_v42  ;;  %v5005_v20 = vld [vmem:[#allocation2 + $0x46] sm:$0xff]  ;;  %v7725_v4 = vld [vmem:[#allocation10_spill] sm:$0xff] }
  0x86   : > { %7722 = vst [vmem:[#allocation57_spill] sm:$0xff] %v4991_v8  ;;  %v2207_v11 = vmul.f32 %v4561_v15, %v4863_v1  ;;  %v2008_v32 = vmul.f32 %v4494_v57, %v4887_v59  ;;  %v2247_v1 = vmul.f32 %v4568_v29, %v4869_v27  ;;  %v5018_v25 = vld [vmem:[#allocation2 + $0x47] sm:$0xff] }
  0x87   : > { %v2422_v5 = vadd.f32 %v2406_v60, %v2382_v31  ;;  %v1905_v37 = vadd.f32 %v1889_v17, %v1865_v22  ;;  %v1969_v60 = vmul.f32 %v4483_v46, %v4978_v13  ;;  %v2143_v24 = vadd.f32 %v2127_v35, %v2103_v6  ;;  %v7724_v31 = vld [vmem:[#allocation18_spill] sm:$0xff] }
  0x88   : > { %v1944_v55 = vadd.f32 %v1928_v49, %v1904_v63  ;;  %v434_v21 = vmul.f32 %v4976_v16, %v7724_v31  ;;  %v2009_v46 = vmul.f32 %v4494_v57, %v4995_v34  ;;  %v2048_v17 = vmul.f32 %v4503_v62, %v4897_v58  ;;  %v5029_v57 = vld [vmem:[%s7443_s1 + $0x4] ss:$0 sm:$0xff] }
  0x89   : > { %v2462_v26 = vadd.f32 %v2446_v38, %v2422_v5  ;;  %v489_v38 = vmul.f32 %v4991_v8, %v7725_v4  ;;  %v1945_v48 = vadd.f32 %v1929_v2, %v1905_v37  ;;  %v2183_v35 = vadd.f32 %v2167_v28, %v2143_v24  ;;  %v5033_v28 = vld [vmem:[#allocation2 + $0x48] sm:$0xff] }
  0x8a   : > { %v1984_v42 = vadd.f32 %v1968_v3, %v1944_v55  ;;  %v393_v49 = vadd.f32 %v377_v44, %v4910_v10  ;;  %v394_v5 = vadd.f32 %v378_v61, %v4914_v14  ;;  %v2049_v2 = vmul.f32 %v4503_v62, %v5005_v20  ;;  %v7726_v44 = vld [vmem:[#allocation22_spill] sm:$0xff] }
  0x8b   : > { %3645 = vmatprep.mubr.msk.f32.mxu0 %vm271_vm0, %v2462_v26  ;;  %v1985_v22 = vadd.f32 %v1969_v60, %v1945_v48  ;;  %v2223_v27 = vadd.f32 %v2207_v11, %v2183_v35  ;;  %v2287_v6 = vmul.f32 %v4587_v41, %v4879_v51  ;;  %v2088_v10 = vmul.f32 %v4518_v19, %v4916_v7  ;;  %v1122_v60 = vld [vmem:[#allocation2 + $0x49] sm:$0xff]  ;;  %v7727_v11 = vld [vmem:[#allocation12_spill] sm:$0xff] }
  0x8c   : > { %v2024_v63 = vadd.f32 %v2008_v32, %v1984_v42  ;;  %v5038_v14 = vadd.f32 %v379_v18, %v4941_v53  ;;  %v490_v62 = vmul.f32 %v4991_v8, %v7726_v44  ;;  %v2089_v3 = vmul.f32 %v4518_v19, %v5018_v25  ;;  %v5055_v19 = vld [vmem:[%s7443_s1 + $0x5] ss:$0 sm:$0xff]  ;;  %v1164_v4 = vld [vmem:[#allocation2 + $0x4a] sm:$0xff]  ;;  %v5067_v42 = vld [vmem:[%s7443_s1 + $0x6] ss:$0 sm:$0xff] }
  0x8d   : > { %v2025_v61 = vadd.f32 %v2009_v46, %v1985_v22  ;;  %v2263_v47 = vadd.f32 %v2247_v1, %v2223_v27  ;;  %v2327_v51 = vmul.f32 %v4592_v52, %v4887_v59  ;;  %v2128_v37 = vmul.f32 %v4531_v39, %v4931_v12  ;;  %v7728_v46 = vld [vmem:[#allocation23_spill] sm:$0xff]  ;;  %v7729_v22 = vld [vmem:[#allocation16_spill] sm:$0xff]  ;;  %v1248_v44 = vld [vmem:[#allocation2 + $0x4c] sm:$0xff] }
  0x8e   : > { %v2064_v26 = vadd.f32 %v2048_v17, %v2024_v63  ;;  %v449_v24 = vadd.f32 %v433_v23, %v393_v49  ;;  %v545_v53 = vmul.f32 %v5029_v57, %v7727_v11  ;;  %v2129_v55 = vmul.f32 %v4531_v39, %v5033_v28  ;;  %v5098_v11 = vld [vmem:[#allocation2 + $0x60] sm:$0xff] }
  0x8f   : > { %v2065_v18 = vadd.f32 %v2049_v2, %v2025_v61  ;;  %v2303_v32 = vadd.f32 %v2287_v6, %v2263_v47  ;;  %v2367_v59 = vmul.f32 %v4614_v50, %v4897_v58  ;;  %v2168_v23 = vmul.f32 %v4544_v56, %v4955_v40  ;;  %v7730_v61 = vld [vmem:[#allocation24_spill] sm:$0xff] }
  0x90   : > { %v2104_v31 = vadd.f32 %v2088_v10, %v2064_v26  ;;  %v450_v48 = vadd.f32 %v434_v21, %v394_v5  ;;  %v546_v35 = vmul.f32 %v5029_v57, %v7728_v46  ;;  %v2169_v39 = vmul.f32 %v4544_v56, %v1122_v60  ;;  %v1206_v21 = vld [vmem:[#allocation2 + $0x4b] sm:$0xff] }
  0x91   : > { %v2105_v1 = vadd.f32 %v2089_v3, %v2065_v18  ;;  %v2343_v17 = vadd.f32 %v2327_v51, %v2303_v32  ;;  %v2407_v58 = vmul.f32 %v4624_v30, %v4916_v7  ;;  %v2208_v40 = vmul.f32 %v4561_v15, %v4960_v33  ;;  %v1290_v60 = vld [vmem:[#allocation2 + $0x4d] sm:$0xff]  ;;  %v7734_v32 = vld [vmem:[#allocation28_spill] sm:$0xff] }
  0x92   : > { %v2144_v49 = vadd.f32 %v2128_v37, %v2104_v31  ;;  %v505_v5 = vadd.f32 %v489_v38, %v449_v24  ;;  %v5075_v2 = vmul.f32 %v5055_v19, %v7729_v22  ;;  %v2209_v27 = vmul.f32 %v4561_v15, %v1164_v4  ;;  %v7731_v38 = vld [vmem:[#allocation19_spill] sm:$0xff]  ;;  %v5093_v15 = vld [vmem:[%s7443_s1 + $0x7] ss:$0 sm:$0xff]  ;;  %v7733_v18 = vld [vmem:[#allocation25_spill] sm:$0xff] }
  0x93   : > { %v2145_v56 = vadd.f32 %v2129_v55, %v2105_v1  ;;  %v2383_v6 = vadd.f32 %v2367_v59, %v2343_v17  ;;  %v2447_v63 = vmul.f32 %v4652_v43, %v4931_v12  ;;  %v2248_v7 = vmul.f32 %v4568_v29, %v4965_v45  ;;  %7732 = vst [vmem:[#allocation9_spill] sm:$0xff] %v5093_v15  ;;  %v305_v24 = vld [vmem:[#allocation2 + $0x58] sm:$0xff]  ;;  %v1332_v46 = vld [vmem:[#allocation2 + $0x4e] sm:$0xff]  ;;  %v5113_v1 = vld [vmem:[#allocation2 + $0x61] sm:$0xff] }
  0x94   : > { %v2184_v10 = vadd.f32 %v2168_v23, %v2144_v49  ;;  %v5084_v33 = vmul.f32 %v5055_v19, %v7730_v61  ;;  %v5088_v3 = vmul.f32 %v5067_v42, %v7731_v38  ;;  %v2249_v12 = vmul.f32 %v4568_v29, %v1206_v21  ;;  %v5116_v49 = vld [vmem:[#allocation2 + $0x62] sm:$0xff]  ;;  %v5132_v22 = vld [vmem:[%s7443_s1 + $0x1a] ss:$0 sm:$0xff]  ;;  %v1416_v61 = vld [vmem:[#allocation2 + $0x50] sm:$0xff] }
  0x95   : > { %v2185_v47 = vadd.f32 %v2169_v39, %v2145_v56  ;;  %v506_v51 = vadd.f32 %v490_v62, %v450_v48  ;;  %v2423_v26 = vadd.f32 %v2407_v58, %v2383_v6  ;;  %v2288_v37 = vmul.f32 %v4587_v41, %v4978_v13  ;;  %v360_v62 = vld [vmem:[#allocation2 + $0x59] sm:$0xff]  ;;  %7736 = vst [vmem:[#allocation10_spill] sm:$0xff] %v5132_v22  ;;  %v5146_v38 = vld [vmem:[#allocation2 + $0x63] sm:$0xff] }
  0x96   : > { %v2224_v45 = vadd.f32 %v2208_v40, %v2184_v10  ;;  %v5102_v55 = vmul.f32 %v5067_v42, %v7733_v18  ;;  %v5106_v59 = vmul.f32 %v5093_v15, %v7734_v32  ;;  %v2289_v29 = vmul.f32 %v4587_v41, %v1248_v44  ;;  %v416_v39 = vld [vmem:[#allocation2 + $0x5a] sm:$0xff]  ;;  %v5121_v41 = vld [vmem:[%s7443_s1 + $0x19] ss:$0 sm:$0xff] }
  0x97   : > { %v2225_v31 = vadd.f32 %v2209_v27, %v2185_v47  ;;  %v5109_v23 = vadd.f32 %v545_v53, %v505_v5  ;;  %v2463_v4 = vadd.f32 %v2447_v63, %v2423_v26  ;;  %v2328_v48 = vmul.f32 %v4592_v52, %v4995_v34  ;;  %7735 = vst [vmem:[#allocation18_spill] sm:$0xff] %v5121_v41  ;;  %v472_v63 = vld [vmem:[#allocation2 + $0x5b] sm:$0xff] }
  0x98   : > { %v2264_v13 = vadd.f32 %v2248_v7, %v2224_v45  ;;  %v2329_v58 = vmul.f32 %v4592_v52, %v1290_v60  ;;  %v1490_v53 = vmul.f32 %v5121_v41, %v305_v24  ;;  %v1491_v40 = vmul.f32 %v5121_v41, %v5098_v11  ;;  %v1374_v52 = vld [vmem:[#allocation2 + $0x4f] sm:$0xff]  ;;  %v5141_v10 = vld [vmem:[%s7443_s1 + $0x1b] ss:$0 sm:$0xff]  ;;  %v528_v18 = vld [vmem:[#allocation2 + $0x5c] sm:$0xff] }
  0x99   : > { %v2265_v17 = vadd.f32 %v2249_v12, %v2225_v31  ;;  %v562_v34 = vadd.f32 %v546_v35, %v506_v51  ;;  %3646 = vmatmul.mubr.msk.f32.gmra.mrb[4].mxu0 %vm271_vm0, %v2463_v4  ;;  %v2368_v5 = vmul.f32 %v4614_v50, %v5005_v20  ;;  %v1530_v56 = vmul.f32 %v5132_v22, %v360_v62  ;;  %v7737_v12 = vld [vmem:[#allocation27_spill] sm:$0xff] }
  0x9a   : > { %v2304_v21 = vadd.f32 %v2288_v37, %v2264_v13  ;;  %v2369_v6 = vmul.f32 %v4614_v50, %v1332_v46  ;;  %v1531_v35 = vmul.f32 %v5132_v22, %v5113_v1  ;;  %v1570_v20 = vmul.f32 %v5141_v10, %v416_v39  ;;  %v5160_v31 = vld [vmem:[%s7443_s1 + $0x1c] ss:$0 sm:$0xff]  ;;  %v5166_v13 = vld [vmem:[#allocation2 + $0x69] sm:$0xff] }
  0x9b   : > { %v2305_v27 = vadd.f32 %v2289_v29, %v2265_v17  ;;  %v2408_v44 = vmul.f32 %v4624_v30, %v5018_v25  ;;  %v1546_v47 = vadd.f32 %v1530_v56, %v1490_v53  ;;  %v1571_v50 = vmul.f32 %v5141_v10, %v5116_v49  ;;  %v5155_v25 = vld [vmem:[#allocation2 + $0x64] sm:$0xff]  ;;  %7739 = vst [vmem:[#allocation12_spill] sm:$0xff] %v5166_v13 }
  0x9c   : > { %v2344_v7 = vadd.f32 %v2328_v48, %v2304_v21  ;;  %v435_v51 = vmul.f32 %v4976_v16, %v7737_v12  ;;  %v2409_v45 = vmul.f32 %v4624_v30, %v1374_v52  ;;  %v1547_v37 = vadd.f32 %v1531_v35, %v1491_v40  ;;  %v5164_v30 = vld [vmem:[#allocation2 + $0x68] sm:$0xff]  ;;  %v584_v53 = vld [vmem:[#allocation2 + $0x5d] sm:$0xff] }
  0x9d   : > { %v2345_v26 = vadd.f32 %v2329_v58, %v2305_v27  ;;  %v2448_v24 = vmul.f32 %v4652_v43, %v5033_v28  ;;  %v1586_v32 = vadd.f32 %v1570_v20, %v1546_v47  ;;  %v1610_v29 = vmul.f32 %v5160_v31, %v472_v63  ;;  %7738 = vst [vmem:[#allocation22_spill] sm:$0xff] %v5164_v30  ;;  %v7740_v39 = vld [vmem:[#allocation29_spill] sm:$0xff]  ;;  %v696_v63 = vld [vmem:[#allocation2 + $0x5f] sm:$0xff] }
  0x9e   : > { %v2384_v60 = vadd.f32 %v2368_v5, %v2344_v7  ;;  %v2449_v4 = vmul.f32 %v4652_v43, %v1416_v61  ;;  %v1587_v48 = vadd.f32 %v1571_v50, %v1547_v37  ;;  %v1611_v28 = vmul.f32 %v5160_v31, %v5146_v38  ;;  %v640_v5 = vld [vmem:[#allocation2 + $0x5e] sm:$0xff]  ;;  %v5176_v43 = vld [vmem:[%s7443_s1 + $0x1d] ss:$0 sm:$0xff]  ;;  %v5190_v61 = vld [vmem:[#allocation2 + $0x6a] sm:$0xff] }
  0x9f   : > { %v2385_v62 = vadd.f32 %v2369_v6, %v2345_v26  ;;  %v618_v46 = vadd.f32 %v5084_v33, %v562_v34  ;;  %v491_v17 = vmul.f32 %v4991_v8, %v7740_v39  ;;  %v1626_v40 = vadd.f32 %v1610_v29, %v1586_v32  ;;  %v5182_v6 = vld [vmem:[#allocation2 + $0x65] sm:$0xff]  ;;  %7741 = vst [vmem:[#allocation23_spill] sm:$0xff] %v5190_v61 }
  0xa0   : > { %v2424_v58 = vadd.f32 %v2408_v44, %v2384_v60  ;;  %v1627_v52 = vadd.f32 %v1611_v28, %v1587_v48  ;;  %v1650_v56 = vmul.f32 %v5176_v43, %v528_v18  ;;  %v1651_v27 = vmul.f32 %v5176_v43, %v5155_v25  ;;  %v5216_v18 = vld [vmem:[%s7443_s1 + $0x20] ss:$0 sm:$0xff]  ;;  %v5222_v29 = vld [vmem:[%s7443_s1 + $0x8] ss:$0 sm:$0xff] }
  0xa1   : > { %v2425_v21 = vadd.f32 %v2409_v45, %v2385_v62  ;;  %v451_v33 = vadd.f32 %v435_v51, %v5038_v14  ;;  %v1492_v35 = vmul.f32 %v5121_v41, %v5164_v30  ;;  %v1532_v20 = vmul.f32 %v5132_v22, %v5166_v13  ;;  %v5195_v14 = vld [vmem:[%s7443_s1 + $0x1e] ss:$0 sm:$0xff]  ;;  %v7744_v45 = vld [vmem:[#allocation36_spill] sm:$0xff]  ;;  %7746 = vst [vmem:[#allocation19_spill] sm:$0xff] %v5222_v29 }
  0xa2   : > { %v2464_v34 = vadd.f32 %v2448_v24, %v2424_v58  ;;  %v617_v7 = vadd.f32 %v5075_v2, %v5109_v23  ;;  %v1666_v47 = vadd.f32 %v1650_v56, %v1626_v40  ;;  %7742 = vst [vmem:[#allocation16_spill] sm:$0xff] %v5195_v14  ;;  %v1690_v50 = vmul.f32 %v5195_v14, %v584_v53  ;;  %v7743_v51 = vld [vmem:[#allocation35_spill] sm:$0xff]  ;;  %v5226_v28 = vld [vmem:[#allocation2 + $0x66] sm:$0xff]  ;;  %v3904_v58 = vld [vmem:[#allocation2 + $0xf] sm:$0xff] }
  0xa3   : > { %v2465_v44 = vadd.f32 %v2449_v4, %v2425_v21  ;;  %v674_v12 = vadd.f32 %v5102_v55, %v618_v46  ;;  %v324_v26 = vmul.f32 %v4892_v0, %v7743_v51  ;;  %v380_v37 = vmul.f32 %v4923_v54, %v7744_v45  ;;  %v5207_v2 = vld [vmem:[%s7443_s1 + $0x1f] ss:$0 sm:$0xff]  ;;  %v7747_v4 = vld [vmem:[#allocation30_spill] sm:$0xff] }
  0xa4   : > { %3648 = vmatprep.mubr.msk.f32.mxu0 %vm271_vm0, %v2464_v34  ;;  %7745 = vst [vmem:[#allocation24_spill] sm:$0xff] %v5207_v2  ;;  %v1730_v23 = vmul.f32 %v5207_v2, %v640_v5  ;;  %v1667_v60 = vadd.f32 %v1651_v27, %v1627_v52  ;;  %v1691_v55 = vmul.f32 %v5195_v14, %v5182_v6  ;;  %v3905_v40 = vld [vmem:[#allocation2 + $0x18] sm:$0xff]  ;;  %v5232_v5 = vld [vmem:[#allocation2 + $0x6b] sm:$0xff] }
  0xa5   : > { %3649 = vmatmul.mubr.msk.f32.gmra.mrb[6].mxu0 %vm271_vm0, %v2465_v44  ;;  %v1706_v24 = vadd.f32 %v1690_v50, %v1666_v47  ;;  %v1770_v32 = vmul.f32 %v5216_v18, %v696_v63  ;;  %v507_v62 = vadd.f32 %v491_v17, %v451_v33  ;;  %v547_v48 = vmul.f32 %v5029_v57, %v7747_v4  ;;  %v5237_v17 = vld [vmem:[%s7443_s1 + $0x21] ss:$0 sm:$0xff]  ;;  %v7749_v63 = vld [vmem:[#allocation38_spill] sm:$0xff]  ;;  %v5250_v50 = vld [vmem:[%s7443_s1 + $0x22] ss:$0 sm:$0xff] }
  0xa6   : > { %v1548_v46 = vadd.f32 %v1532_v20, %v1492_v35  ;;  %v1572_v39 = vmul.f32 %v5141_v10, %v5190_v61  ;;  %v713_v53 = vmul.f32 %v3904_v58, %v5093_v15  ;;  %v756_v21 = vmul.f32 %v3905_v40, %v5222_v29  ;;  %7748 = vst [vmem:[#allocation25_spill] sm:$0xff] %v5232_v5  ;;  %v7753_v58 = vld [vmem:[#allocation40_spill] sm:$0xff] }
  0xa7   : > { %v1746_v52 = vadd.f32 %v1730_v23, %v1706_v24  ;;  %v1810_v56 = vmul.f32 %v5237_v17, %v5098_v11  ;;  %v673_v27 = vadd.f32 %v5088_v3, %v617_v7  ;;  %v730_v33 = vadd.f32 %v5106_v59, %v674_v12  ;;  %7750 = vst [vmem:[#allocation28_spill] sm:$0xff] %v5250_v50  ;;  %v5257_v3 = vld [vmem:[%s7443_s1 + $0x9] ss:$0 sm:$0xff]  ;;  %v3908_v23 = vld [vmem:[#allocation2 + $0x10] sm:$0xff] }
  0xa8   : > { %v396_v34 = vadd.f32 %v380_v37, %v324_v26  ;;  %v436_v35 = vmul.f32 %v4976_v16, %v7749_v63  ;;  %v1707_v20 = vadd.f32 %v1691_v55, %v1667_v60  ;;  %v1731_v44 = vmul.f32 %v5207_v2, %v5226_v28  ;;  %7751 = vst [vmem:[#allocation27_spill] sm:$0xff] %v5257_v3  ;;  %v7752_v7 = vld [vmem:[#allocation33_spill] sm:$0xff]  ;;  %v3909_v55 = vld [vmem:[#allocation2 + $0x19] sm:$0xff] }
  0xa9   : > { %v1786_v47 = vadd.f32 %v1770_v32, %v1746_v52  ;;  %v1850_v11 = vmul.f32 %v5250_v50, %v5113_v1  ;;  %v563_v59 = vadd.f32 %v547_v48, %v507_v62  ;;  %v603_v12 = vmul.f32 %v5055_v19, %v7752_v7  ;;  %v697_v26 = vld [vmem:[#allocation2 + $0x67] sm:$0xff]  ;;  %v5270_v62 = vld [vmem:[%s7443_s1 + $0x23] ss:$0 sm:$0xff] }
  0xaa   : > { %v1588_v45 = vadd.f32 %v1572_v39, %v1548_v46  ;;  %v1612_v37 = vmul.f32 %v5160_v31, %v5232_v5  ;;  %v755_v60 = vmul.f32 %v3908_v23, %v5222_v29  ;;  %v798_v1 = vmul.f32 %v3909_v55, %v5257_v3  ;;  %v5265_v24 = vld [vmem:[#allocation2 + $0x6c] sm:$0xff]  ;;  %v5371_v3 = vld [vmem:[%s7443_s1 + $0x2a] ss:$0 sm:$0xff] }
  0xab   : > { %v1826_v32 = vadd.f32 %v1810_v56, %v1786_v47  ;;  %v1890_v4 = vmul.f32 %v5270_v62, %v5116_v49  ;;  %v729_v48 = vadd.f32 %v713_v53, %v673_v27  ;;  %v772_v46 = vadd.f32 %v756_v21, %v730_v33  ;;  %v5280_v56 = vld [vmem:[%s7443_s1 + $0x24] ss:$0 sm:$0xff]  ;;  %v7754_v49 = vld [vmem:[#allocation37_spill] sm:$0xff]  ;;  %v5305_v55 = vld [vmem:[#allocation2 + $0x70] sm:$0xff]  ;;  %7763 = vst [vmem:[#allocation30_spill] sm:$0xff] %v5371_v3 }
  0xac   : > { %v452_v39 = vadd.f32 %v436_v35, %v396_v34  ;;  %v492_v40 = vmul.f32 %v4991_v8, %v7753_v58  ;;  %v1747_v52 = vadd.f32 %v1731_v44, %v1707_v20  ;;  %v1771_v63 = vmul.f32 %v5216_v18, %v697_v26  ;;  %v5288_v33 = vld [vmem:[#allocation2 + $0x6d] sm:$0xff]  ;;  %v5293_v35 = vld [vmem:[%s7443_s1 + $0x25] ss:$0 sm:$0xff]  ;;  %v5310_v58 = vld [vmem:[%s7443_s1 + $0x26] ss:$0 sm:$0xff] }
  0xad   : > { %v1866_v7 = vadd.f32 %v1850_v11, %v1826_v32  ;;  %v1930_v47 = vmul.f32 %v5280_v56, %v5146_v38  ;;  %v619_v23 = vadd.f32 %v603_v12, %v563_v59  ;;  %v659_v53 = vmul.f32 %v5067_v42, %v7754_v49  ;;  %v7757_v59 = vld [vmem:[#allocation41_spill] sm:$0xff] }
  0xae   : > { %v1628_v21 = vadd.f32 %v1612_v37, %v1588_v45  ;;  %v1652_v27 = vmul.f32 %v5176_v43, %v5265_v24  ;;  %v1970_v20 = vmul.f32 %v5293_v35, %v5155_v25  ;;  %v5297_v38 = vadd.f32 %v755_v60, %v729_v48  ;;  %v7758_v45 = vld [vmem:[#allocation39_spill] sm:$0xff] }
  0xaf   : > { %v1906_v34 = vadd.f32 %v1890_v4, %v1866_v7  ;;  %v5299_v44 = vadd.f32 %v798_v1, %v772_v46  ;;  %v508_v11 = vadd.f32 %v492_v40, %v452_v39  ;;  %v548_v12 = vmul.f32 %v5029_v57, %v7757_v59  ;;  %v5314_v60 = vld [vmem:[#allocation2 + $0x71] sm:$0xff] }
  0xb0   : > { %7755 = vst [vmem:[#allocation29_spill] sm:$0xff] %v5297_v38  ;;  %v715_v37 = vmul.f32 %v5093_v15, %v7758_v45  ;;  %v1787_v32 = vadd.f32 %v1771_v63, %v1747_v52  ;;  %v2010_v25 = vmul.f32 %v5310_v58, %v5182_v6  ;;  %v675_v1 = vadd.f32 %v659_v53, %v619_v23  ;;  %v7759_v40 = vld [vmem:[#allocation42_spill] sm:$0xff]  ;;  %v5327_v6 = vld [vmem:[%s7443_s1 + $0x27] ss:$0 sm:$0xff] }
  0xb1   : > { %7756 = vst [vmem:[#allocation35_spill] sm:$0xff] %v5299_v44  ;;  %v1946_v4 = vadd.f32 %v1930_v47, %v1906_v34  ;;  %v757_v48 = vmul.f32 %v5222_v29, %v7743_v51  ;;  %v1668_v46 = vadd.f32 %v1652_v27, %v1628_v21  ;;  %v1692_v39 = vmul.f32 %v5195_v14, %v5288_v33  ;;  %v5322_v63 = vld [vmem:[#allocation2 + $0x6e] sm:$0xff]  ;;  %v5342_v34 = vld [vmem:[%s7443_s1 + $0x28] ss:$0 sm:$0xff]  ;;  %v7760_v45 = vld [vmem:[#allocation44_spill] sm:$0xff] }
  0xb2   : > { %v604_v52 = vmul.f32 %v5055_v19, %v7759_v40  ;;  %v2050_v47 = vmul.f32 %v5327_v6, %v5226_v28  ;;  %v1811_v51 = vmul.f32 %v5237_v17, %v5164_v30  ;;  %v564_v23 = vadd.f32 %v548_v12, %v508_v11 }
  0xb3   : > { %v1986_v7 = vadd.f32 %v1970_v20, %v1946_v4  ;;  %v1493_v49 = vmul.f32 %v5121_v41, %v5305_v55  ;;  %v1533_v53 = vmul.f32 %v5132_v22, %v5314_v60  ;;  %v1851_v21 = vmul.f32 %v5250_v50, %v5166_v13  ;;  %v5345_v20 = vld [vmem:[#allocation2 + $0x72] sm:$0xff] }
  0xb4   : > { %v2090_v28 = vmul.f32 %v5342_v34, %v697_v26  ;;  %v1827_v11 = vadd.f32 %v1811_v51, %v1787_v32  ;;  %v1891_v59 = vmul.f32 %v5270_v62, %v5190_v61  ;;  %v731_v12 = vadd.f32 %v715_v37, %v675_v1  ;;  %v5358_v26 = vld [vmem:[%s7443_s1 + $0x29] ss:$0 sm:$0xff] }
  0xb5   : > { %v2026_v27 = vadd.f32 %v2010_v25, %v1986_v7  ;;  %v325_v4 = vmul.f32 %v4892_v0, %v7760_v45  ;;  %v1708_v40 = vadd.f32 %v1692_v39, %v1668_v46  ;;  %v1732_v25 = vmul.f32 %v5207_v2, %v5322_v63  ;;  %v5353_v7 = vld [vmem:[#allocation2 + $0x6f] sm:$0xff]  ;;  %7761 = vst [vmem:[#allocation36_spill] sm:$0xff] %v5358_v26 }
  0xb6   : > { %v2130_v32 = vmul.f32 %v5358_v26, %v5164_v30  ;;  %v1867_v51 = vadd.f32 %v1851_v21, %v1827_v11  ;;  %v1931_v37 = vmul.f32 %v5280_v56, %v5232_v5  ;;  %v620_v1 = vadd.f32 %v604_v52, %v564_v23  ;;  %v7762_v46 = vld [vmem:[#allocation46_spill] sm:$0xff] }
  0xb7   : > { %v2066_v44 = vadd.f32 %v2050_v47, %v2026_v27  ;;  %v660_v39 = vmul.f32 %v5067_v42, %v7762_v46  ;;  %v1549_v38 = vadd.f32 %v1533_v53, %v1493_v49  ;;  %v1573_v47 = vmul.f32 %v5141_v10, %v5345_v20  ;;  %v5375_v11 = vld [vmem:[#allocation2 + $0x73] sm:$0xff]  ;;  %v7765_v49 = vld [vmem:[#allocation45_spill] sm:$0xff] }
  0xb8   : > { %v2170_v21 = vmul.f32 %v5371_v3, %v5166_v13  ;;  %v1907_v30 = vadd.f32 %v1891_v59, %v1867_v51  ;;  %v1971_v52 = vmul.f32 %v5293_v35, %v5265_v24  ;;  %v5379_v23 = vadd.f32 %v757_v48, %v731_v12  ;;  %v5388_v13 = vld [vmem:[%s7443_s1 + $0x2b] ss:$0 sm:$0xff] }
  0xb9   : > { %v2106_v27 = vadd.f32 %v2090_v28, %v2066_v44  ;;  %v381_v53 = vmul.f32 %v4923_v54, %v7765_v49  ;;  %v1748_v44 = vadd.f32 %v1732_v25, %v1708_v40  ;;  %v1772_v28 = vmul.f32 %v5216_v18, %v5353_v7  ;;  %7766 = vst [vmem:[#allocation33_spill] sm:$0xff] %v5388_v13  ;;  %v5401_v49 = vld [vmem:[%s7443_s1 + $0x2c] ss:$0 sm:$0xff] }
  0xba   : > { %7764 = vst [vmem:[#allocation38_spill] sm:$0xff] %v5379_v23  ;;  %v2210_v59 = vmul.f32 %v5388_v13, %v5190_v61  ;;  %v1947_v51 = vadd.f32 %v1931_v37, %v1907_v30  ;;  %v2011_v48 = vmul.f32 %v5310_v58, %v5288_v33  ;;  %v676_v12 = vadd.f32 %v660_v39, %v620_v1  ;;  %v7767_v23 = vld [vmem:[#allocation48_spill] sm:$0xff]  ;;  %v531_v37 = vld [vmem:[#allocation2 + $0x74] sm:$0xff] }
  0xbb   : > { %v2146_v46 = vadd.f32 %v2130_v32, %v2106_v27  ;;  %v716_v40 = vmul.f32 %v5093_v15, %v7767_v23  ;;  %v1589_v25 = vadd.f32 %v1573_v47, %v1549_v38  ;;  %v1613_v32 = vmul.f32 %v5160_v31, %v5375_v11  ;;  %7768 = vst [vmem:[#allocation40_spill] sm:$0xff] %v5401_v49  ;;  %v7769_v23 = vld [vmem:[#allocation47_spill] sm:$0xff] }
  0xbc   : > { %v2250_v30 = vmul.f32 %v5401_v49, %v5232_v5  ;;  %v1987_v61 = vadd.f32 %v1971_v52, %v1947_v51  ;;  %v2051_v1 = vmul.f32 %v5327_v6, %v5322_v63  ;;  %v397_v39 = vadd.f32 %v381_v53, %v325_v4 }
  0xbd   : > { %v2186_v27 = vadd.f32 %v2170_v21, %v2146_v46  ;;  %v437_v38 = vmul.f32 %v4976_v16, %v7769_v23  ;;  %v1788_v47 = vadd.f32 %v1772_v28, %v1748_v44  ;;  %v1812_v21 = vmul.f32 %v5237_v17, %v5305_v55 }
  0xbe   : > { %v2290_v52 = vmul.f32 %v5414_v9, %v5265_v24  ;;  %v2027_v51 = vadd.f32 %v2011_v48, %v1987_v61  ;;  %v2091_v4 = vmul.f32 %v5342_v34, %v5353_v7  ;;  %v732_v53 = vadd.f32 %v716_v40, %v676_v12  ;;  %v5430_v61 = vld [vmem:[#allocation2 + $0x78] sm:$0xff] }
  0xbf   : > { %v2226_v46 = vadd.f32 %v2210_v59, %v2186_v27  ;;  %v758_v44 = vmul.f32 %v5222_v29, %v7760_v45  ;;  %v1629_v28 = vadd.f32 %v1613_v32, %v1589_v25  ;;  %v1653_v23 = vmul.f32 %v5176_v43, %v531_v37  ;;  %v5426_v27 = vld [vmem:[%s7443_s1 + $0x2e] ss:$0 sm:$0xff]  ;;  %v587_v48 = vld [vmem:[#allocation2 + $0x75] sm:$0xff] }
  0xc0   : > { %v2330_v24 = vmul.f32 %v5426_v27, %v5288_v33  ;;  %v2067_v5 = vadd.f32 %v2051_v1, %v2027_v51  ;;  %v2131_v12 = vmul.f32 %v5358_v26, %v5305_v55  ;;  %v5434_v45 = vld [vmem:[#allocation2 + $0x79] sm:$0xff]  ;;  %v453_v40 = vadd.f32 %v437_v38, %v397_v39  ;;  %v7771_v25 = vld [vmem:[#allocation49_spill] sm:$0xff]  ;;  %v5448_v1 = vld [vmem:[%s7443_s1 + $0x30] ss:$0 sm:$0xff] }
  0xc1   : > { %v2266_v59 = vadd.f32 %v2250_v30, %v2226_v46  ;;  %7770 = vst [vmem:[#allocation37_spill] sm:$0xff] %v5434_v45  ;;  %v493_v32 = vmul.f32 %v4991_v8, %v7771_v25  ;;  %v1828_v30 = vadd.f32 %v1812_v21, %v1788_v47  ;;  %v5441_v46 = vld [vmem:[%s7443_s1 + $0x2f] ss:$0 sm:$0xff]  ;;  %v2410_v39 = vmul.f32 %v5448_v1, %v5353_v7  ;;  %v643_v38 = vld [vmem:[#allocation2 + $0x76] sm:$0xff] }
  0xc2   : > { %v2370_v33 = vmul.f32 %v5441_v46, %v5322_v63  ;;  %v2107_v51 = vadd.f32 %v2091_v4, %v2067_v5  ;;  %v2171_v47 = vmul.f32 %v5371_v3, %v5314_v60  ;;  %v1494_v21 = vmul.f32 %v5121_v41, %v5430_v61  ;;  %v5461_v7 = vld [vmem:[#allocation2 + $0x7a] sm:$0xff]  ;;  %v5468_v4 = vld [vmem:[%s7443_s1 + $0x31] ss:$0 sm:$0xff] }
  0xc3   : > { %v2306_v29 = vadd.f32 %v2290_v52, %v2266_v59  ;;  %v1669_v25 = vadd.f32 %v1653_v23, %v1629_v28  ;;  %v1693_v63 = vmul.f32 %v5195_v14, %v587_v48  ;;  %v1534_v52 = vmul.f32 %v5132_v22, %v5434_v45  ;;  %7772 = vst [vmem:[#allocation41_spill] sm:$0xff] %v5468_v4  ;;  %v699_v41 = vld [vmem:[#allocation2 + $0x77] sm:$0xff] }
  0xc4   : > { %v2147_v8 = vadd.f32 %v2131_v12, %v2107_v51  ;;  %v2211_v16 = vmul.f32 %v5388_v13, %v5345_v20  ;;  %v1852_v5 = vmul.f32 %v5250_v50, %v5314_v60  ;;  %v2450_v28 = vmul.f32 %v5468_v4, %v5305_v55 }
  0xc5   : > { %v2346_v59 = vadd.f32 %v2330_v24, %v2306_v29  ;;  %v1733_v23 = vmul.f32 %v5207_v2, %v643_v38  ;;  %v2251_v29 = vmul.f32 %v5401_v49, %v5375_v11  ;;  %v1892_v24 = vmul.f32 %v5270_v62, %v5345_v20  ;;  %v5482_v49 = vld [vmem:[#allocation2 + $0x7b] sm:$0xff] }
  0xc6   : > { %v2187_v51 = vadd.f32 %v2171_v47, %v2147_v8  ;;  %v1868_v13 = vadd.f32 %v1852_v5, %v1828_v30  ;;  %v1932_v60 = vmul.f32 %v5280_v56, %v5375_v11  ;;  %v1709_v50 = vadd.f32 %v1693_v63, %v1669_v25 }
  0xc7   : > { %v2386_v12 = vadd.f32 %v2370_v33, %v2346_v59  ;;  %v2291_v22 = vmul.f32 %v5414_v9, %v531_v37  ;;  %v1550_v14 = vadd.f32 %v1534_v52, %v1494_v21  ;;  %v1574_v55 = vmul.f32 %v5141_v10, %v5461_v7  ;;  %v7774_v33 = vld [vmem:[#allocation50_spill] sm:$0xff] }
  0xc8   : > { %v2227_v3 = vadd.f32 %v2211_v16, %v2187_v51  ;;  %v1908_v45 = vadd.f32 %v1892_v24, %v1868_v13  ;;  %v1972_v20 = vmul.f32 %v5293_v35, %v531_v37  ;;  %v5485_v8 = vadd.f32 %v758_v44, %v732_v53  ;;  %v5496_v44 = vld [vmem:[#allocation2 + $0x7c] sm:$0xff] }
  0xc9   : > { %v2426_v2 = vadd.f32 %v2410_v39, %v2386_v12  ;;  %v509_v30 = vadd.f32 %v493_v32, %v453_v40  ;;  %v549_v11 = vmul.f32 %v5029_v57, %v7774_v33  ;;  %v2331_v47 = vmul.f32 %v5426_v27, %v587_v48 }
  0xca   : > { %7773 = vst [vmem:[#allocation39_spill] sm:$0xff] %v5485_v8  ;;  %v2267_v25 = vadd.f32 %v2251_v29, %v2227_v3  ;;  %v1948_v63 = vadd.f32 %v1932_v60, %v1908_v45  ;;  %v2012_v39 = vmul.f32 %v5310_v58, %v587_v48  ;;  %v1749_v52 = vadd.f32 %v1733_v23, %v1709_v50  ;;  %v3925_v3 = vld [vmem:[#allocation2 + $0x30] sm:$0xff]  ;;  %v7775_v45 = vld [vmem:[#allocation51_spill] sm:$0xff]  ;;  %v5512_v60 = vld [vmem:[#allocation2 + $0x80] sm:$0xff] }
  0xcb   : > { %v2466_v21 = vadd.f32 %v2450_v28, %v2426_v2  ;;  %v1773_v16 = vmul.f32 %v5216_v18, %v699_v41  ;;  %v2371_v13 = vmul.f32 %v5441_v46, %v643_v38  ;;  %v1614_v37 = vmul.f32 %v5160_v31, %v5482_v49 }
  0xcc   : > { %v2307_v53 = vadd.f32 %v2291_v22, %v2267_v25  ;;  %v1590_v40 = vadd.f32 %v1574_v55, %v1550_v14  ;;  %v1988_v32 = vadd.f32 %v1972_v20, %v1948_v63  ;;  %v2052_v2 = vmul.f32 %v5327_v6, %v643_v38  ;;  %v5522_v63 = vld [vmem:[#allocation2 + $0x32] sm:$0xff] }
  0xcd   : > { %3651 = vmatprep.mubr.msk.f32.mxu0 %vm271_vm0, %v2466_v21  ;;  %v326_v48 = vmul.f32 %v3925_v3, %v4892_v0  ;;  %v565_v50 = vadd.f32 %v549_v11, %v509_v30  ;;  %v605_v59 = vmul.f32 %v5055_v19, %v7775_v45  ;;  %v382_v5 = vmul.f32 %v4923_v54, %v4783_v36  ;;  %v588_v36 = vld [vmem:[#allocation2 + $0x7d] sm:$0xff]  ;;  %v7776_v11 = vld [vmem:[#allocation53_spill] sm:$0xff]  ;;  %v7777_v21 = vld [vmem:[#allocation54_spill] sm:$0xff] }
  0xce   : > { %v2347_v28 = vadd.f32 %v2331_v47, %v2307_v53  ;;  %v2411_v23 = vmul.f32 %v5448_v1, %v699_v41  ;;  %v2028_v22 = vadd.f32 %v2012_v39, %v1988_v32  ;;  %v2092_v29 = vmul.f32 %v5342_v34, %v699_v41  ;;  %v5516_v41 = vld [vmem:[#allocation2 + $0x81] sm:$0xff]  ;;  %7778 = vst [vmem:[#allocation42_spill] sm:$0xff] %v5522_v63 }
  0xcf   : > { %v1789_v14 = vadd.f32 %v1773_v16, %v1749_v52  ;;  %v1813_v38 = vmul.f32 %v5237_v17, %v5430_v61  ;;  %v2451_v24 = vmul.f32 %v5468_v4, %v5430_v61  ;;  %v1654_v12 = vmul.f32 %v5176_v43, %v5496_v44  ;;  %v7779_v39 = vld [vmem:[#allocation56_spill] sm:$0xff]  ;;  %v7780_v53 = vld [vmem:[#allocation37_spill] sm:$0xff] }
  0xd0   : > { %v2387_v51 = vadd.f32 %v2371_v13, %v2347_v28  ;;  %v1630_v55 = vadd.f32 %v1614_v37, %v1590_v40  ;;  %v2068_v20 = vadd.f32 %v2052_v2, %v2028_v22  ;;  %v2132_v30 = vmul.f32 %v5358_v26, %v5430_v61  ;;  %v7781_v40 = vld [vmem:[#allocation30_spill] sm:$0xff]  ;;  %v7783_v45 = vld [vmem:[#allocation16_spill] sm:$0xff] }
  0xd1   : > { %v621_v33 = vadd.f32 %v605_v59, %v565_v50  ;;  %v661_v47 = vmul.f32 %v5067_v42, %v7776_v11  ;;  %v717_v25 = vmul.f32 %v5093_v15, %v7777_v21  ;;  %v438_v52 = vmul.f32 %v5522_v63, %v7779_v39  ;;  %v7782_v2 = vld [vmem:[#allocation18_spill] sm:$0xff]  ;;  %v7785_v63 = vld [vmem:[#allocation33_spill] sm:$0xff]  ;;  %v644_v15 = vld [vmem:[#allocation2 + $0x7e] sm:$0xff] }
  0xd2   : > { %v398_v16 = vadd.f32 %v382_v5, %v326_v48  ;;  %v2427_v13 = vadd.f32 %v2411_v23, %v2387_v51  ;;  %v2108_v37 = vadd.f32 %v2092_v29, %v2068_v20  ;;  %v2172_v61 = vmul.f32 %v7781_v40, %v7780_v53  ;;  %v7784_v28 = vld [vmem:[#allocation10_spill] sm:$0xff]  ;;  %v5535_v5 = vld [vmem:[#allocation2 + $0x82] sm:$0xff]  ;;  %v7786_v29 = vld [vmem:[#allocation19_spill] sm:$0xff] }
  0xd3   : > { %v1829_v32 = vadd.f32 %v1813_v38, %v1789_v14  ;;  %v1495_v50 = vmul.f32 %v7782_v2, %v5512_v60  ;;  %v1694_v59 = vmul.f32 %v7783_v45, %v588_v36  ;;  %v1535_v22 = vmul.f32 %v7784_v28, %v5516_v41  ;;  %v5540_v14 = vld [vmem:[#allocation2 + $0x33] sm:$0xff]  ;;  %v7789_v38 = vld [vmem:[#allocation57_spill] sm:$0xff]  ;;  %v7790_v40 = vld [vmem:[#allocation28_spill] sm:$0xff] }
  0xd4   : > { %v2467_v11 = vadd.f32 %v2451_v24, %v2427_v13  ;;  %v1670_v21 = vadd.f32 %v1654_v12, %v1630_v55  ;;  %v2148_v8 = vadd.f32 %v2132_v30, %v2108_v37  ;;  %v2212_v48 = vmul.f32 %v7785_v63, %v5461_v7  ;;  %7788 = vst [vmem:[#allocation46_spill] sm:$0xff] %v5540_v14  ;;  %v7791_v30 = vld [vmem:[#allocation40_spill] sm:$0xff] }
  0xd5   : > { %v677_v23 = vadd.f32 %v661_v47, %v621_v33  ;;  %v5538_v51 = vmul.f32 %v3925_v3, %v7786_v29  ;;  %v494_v20 = vmul.f32 %v5540_v14, %v7789_v38  ;;  %v1853_v24 = vmul.f32 %v7790_v40, %v7780_v53  ;;  %v7792_v53 = vld [vmem:[#allocation24_spill] sm:$0xff] }
  0xd6   : > { %v454_v12 = vadd.f32 %v438_v52, %v398_v16  ;;  %3652 = vmatmul.mubr.msk.f32.gmra.mrb[8].mxu0 %vm271_vm0, %v2467_v11  ;;  %v2188_v55 = vadd.f32 %v2172_v61, %v2148_v8  ;;  %v2252_v13 = vmul.f32 %v7791_v30, %v5482_v49  ;;  %v1893_v3 = vmul.f32 %v5270_v62, %v5461_v7  ;;  %v5558_v61 = vld [vmem:[#allocation2 + $0x83] sm:$0xff]  ;;  %v7794_v7 = vld [vmem:[#allocation55_spill] sm:$0xff] }
  0xd7   : > { %7787 = vst [vmem:[#allocation44_spill] sm:$0xff] %v5538_v51  ;;  %v1551_v33 = vadd.f32 %v1535_v22, %v1495_v50  ;;  %v1575_v47 = vmul.f32 %v5141_v10, %v5535_v5  ;;  %v1869_v37 = vadd.f32 %v1853_v24, %v1829_v32  ;;  %v1933_v14 = vmul.f32 %v5280_v56, %v5482_v49  ;;  %v700_v22 = vld [vmem:[#allocation2 + $0x7f] sm:$0xff] }
  0xd8   : > { %v1710_v51 = vadd.f32 %v1694_v59, %v1670_v21  ;;  %v1734_v52 = vmul.f32 %v7792_v53, %v644_v15  ;;  %v2228_v16 = vadd.f32 %v2212_v48, %v2188_v55  ;;  %v2292_v8 = vmul.f32 %v5414_v9, %v5496_v44  ;;  %v5566_v59 = vld [vmem:[#allocation2 + $0x34] sm:$0xff] }
  0xd9   : > { %v5560_v11 = vadd.f32 %v717_v25, %v677_v23  ;;  %v327_v50 = vmul.f32 %v4892_v0, %v7794_v7  ;;  %v1909_v29 = vadd.f32 %v1893_v3, %v1869_v37  ;;  %v1973_v32 = vmul.f32 %v5293_v35, %v5496_v44  ;;  %7795 = vst [vmem:[#allocation48_spill] sm:$0xff] %v5566_v59  ;;  %v5578_v7 = vld [vmem:[#allocation2 + $0x35] sm:$0xff] }
  0xda   : > { %v510_v49 = vadd.f32 %v494_v20, %v454_v12  ;;  %v550_v21 = vmul.f32 %v5566_v59, %v5029_v57  ;;  %v2268_v48 = vadd.f32 %v2252_v13, %v2228_v16  ;;  %v2332_v24 = vmul.f32 %v5426_v27, %v588_v36  ;;  %v5576_v12 = vld [vmem:[#allocation2 + $0x84] sm:$0xff]  ;;  %7796 = vst [vmem:[#allocation47_spill] sm:$0xff] %v5578_v7 }
  0xdb   : > { %7793 = vst [vmem:[#allocation45_spill] sm:$0xff] %v5560_v11  ;;  %v1591_v55 = vadd.f32 %v1575_v47, %v1551_v33  ;;  %v1615_v25 = vmul.f32 %v5160_v31, %v5558_v61  ;;  %v1949_v23 = vadd.f32 %v1933_v14, %v1909_v29  ;;  %v2013_v0 = vmul.f32 %v5310_v58, %v588_v36  ;;  %v5582_v33 = vld [vmem:[#allocation2 + $0x39] sm:$0xff]  ;;  %v5586_v14 = vld [vmem:[#allocation2 + $0x88] sm:$0xff] }
  0xdc   : > { %v1750_v3 = vadd.f32 %v1734_v52, %v1710_v51  ;;  %v1774_v37 = vmul.f32 %v5216_v18, %v700_v22  ;;  %v2308_v44 = vadd.f32 %v2292_v8, %v2268_v48  ;;  %v2372_v20 = vmul.f32 %v5441_v46, %v644_v15  ;;  %7797 = vst [vmem:[#allocation49_spill] sm:$0xff] %v5582_v33  ;;  %v5592_v48 = vld [vmem:[#allocation2 + $0x85] sm:$0xff] }
  0xdd   : > { %v606_v13 = vmul.f32 %v5578_v7, %v5055_v19  ;;  %v383_v29 = vmul.f32 %v5582_v33, %v4923_v54  ;;  %v1989_v36 = vadd.f32 %v1973_v32, %v1949_v23  ;;  %v2053_v51 = vmul.f32 %v5327_v6, %v644_v15  ;;  %v5597_v33 = vld [vmem:[#allocation2 + $0x89] sm:$0xff] }
  0xde   : > { %v566_v47 = vadd.f32 %v550_v21, %v510_v49  ;;  %v1814_v52 = vmul.f32 %v5237_v17, %v5512_v60  ;;  %v2348_v16 = vadd.f32 %v2332_v24, %v2308_v44  ;;  %v2412_v8 = vmul.f32 %v5448_v1, %v700_v22  ;;  %7798 = vst [vmem:[#allocation50_spill] sm:$0xff] %v5597_v33  ;;  %v5603_v24 = vld [vmem:[#allocation2 + $0x8a] sm:$0xff] }
  0xdf   : > { %v1631_v7 = vadd.f32 %v1615_v25, %v1591_v55  ;;  %v1655_v59 = vmul.f32 %v5176_v43, %v5576_v12  ;;  %v2029_v11 = vadd.f32 %v2013_v0, %v1989_v36  ;;  %v2093_v54 = vmul.f32 %v5342_v34, %v700_v22  ;;  %v5605_v55 = vld [vmem:[#allocation2 + $0x3a] sm:$0xff] }
  0xe0   : > { %v1790_v32 = vadd.f32 %v1774_v37, %v1750_v3  ;;  %v2388_v15 = vadd.f32 %v2372_v20, %v2348_v16  ;;  %v2452_v49 = vmul.f32 %v5468_v4, %v5512_v60  ;;  %v1496_v21 = vmul.f32 %v7782_v2, %v5586_v14  ;;  %7799 = vst [vmem:[#allocation51_spill] sm:$0xff] %v5605_v55  ;;  %v5611_v3 = vld [vmem:[#allocation2 + $0x36] sm:$0xff] }
  0xe1   : > { %v399_v23 = vadd.f32 %v383_v29, %v327_v50  ;;  %v439_v25 = vmul.f32 %v5605_v55, %v7779_v39  ;;  %v2069_v0 = vadd.f32 %v2053_v51, %v2029_v11  ;;  %v2133_v22 = vmul.f32 %v5358_v26, %v5512_v60  ;;  %7800 = vst [vmem:[#allocation53_spill] sm:$0xff] %v5611_v3  ;;  %v645_v29 = vld [vmem:[#allocation2 + $0x86] sm:$0xff]  ;;  %v7801_v39 = vld [vmem:[#allocation30_spill] sm:$0xff]  ;;  %v5625_v4 = vld [vmem:[#allocation2 + $0x3b] sm:$0xff] }
  0xe2   : > { %v662_v37 = vmul.f32 %v5611_v3, %v5067_v42  ;;  %v2428_v44 = vadd.f32 %v2412_v8, %v2388_v15  ;;  %v1695_v20 = vmul.f32 %v7783_v45, %v5592_v48  ;;  %v1536_v50 = vmul.f32 %v7784_v28, %v5597_v33  ;;  %v5623_v3 = vld [vmem:[#allocation2 + $0x8b] sm:$0xff]  ;;  %7802 = vst [vmem:[#allocation54_spill] sm:$0xff] %v5625_v4 }
  0xe3   : > { %v1671_v36 = vadd.f32 %v1655_v59, %v1631_v7  ;;  %v2109_v16 = vadd.f32 %v2093_v54, %v2069_v0  ;;  %v2173_v11 = vmul.f32 %v7801_v39, %v5516_v41  ;;  %v1576_v60 = vmul.f32 %v5141_v10, %v5603_v24  ;;  %v7804_v0 = vld [vmem:[#allocation9_spill] sm:$0xff] }
  0xe4   : > { %v622_v51 = vadd.f32 %v606_v13, %v566_v47  ;;  %v1830_v55 = vadd.f32 %v1814_v52, %v1790_v32  ;;  %v2468_v26 = vadd.f32 %v2452_v49, %v2428_v44  ;;  %v1552_v8 = vadd.f32 %v1536_v50, %v1496_v21  ;;  %v701_v32 = vld [vmem:[#allocation2 + $0x87] sm:$0xff] }
  0xe5   : > { %v455_v15 = vadd.f32 %v439_v25, %v399_v23  ;;  %v495_v33 = vmul.f32 %v5625_v4, %v7789_v38  ;;  %v2149_v59 = vadd.f32 %v2133_v22, %v2109_v16  ;;  %v2213_v7 = vmul.f32 %v7785_v63, %v5535_v5  ;;  %v5645_v44 = vld [vmem:[#allocation2 + $0x8c] sm:$0xff]  ;;  %v5649_v16 = vld [vmem:[#allocation2 + $0x3c] sm:$0xff] }
  0xe6   : > { %3654 = vmatprep.mubr.msk.f32.mxu0 %vm271_vm0, %v2468_v26  ;;  %v1735_v54 = vmul.f32 %v7792_v53, %v645_v29  ;;  %v2253_v13 = vmul.f32 %v7791_v30, %v5558_v61  ;;  %v1854_v47 = vmul.f32 %v7790_v40, %v5516_v41  ;;  %v1894_v52 = vmul.f32 %v5270_v62, %v5535_v5  ;;  %v5641_v26 = vld [vmem:[#allocation2 + $0x37] sm:$0xff] }
  0xe7   : > { %v1711_v49 = vadd.f32 %v1695_v20, %v1671_v36  ;;  %v2189_v38 = vadd.f32 %v2173_v11, %v2149_v59  ;;  %v1592_v21 = vadd.f32 %v1576_v60, %v1552_v8  ;;  %v1616_v23 = vmul.f32 %v5160_v31, %v5623_v3  ;;  %7803 = vst [vmem:[#allocation56_spill] sm:$0xff] %v5641_v26  ;;  %v5664_v59 = vld [vmem:[#allocation2 + $0x38] sm:$0xff] }
  0xe8   : > { %v678_v25 = vadd.f32 %v662_v37, %v622_v51  ;;  %v718_v22 = vmul.f32 %v5641_v26, %v7804_v0  ;;  %v1870_v50 = vadd.f32 %v1854_v47, %v1830_v55  ;;  %v1934_v41 = vmul.f32 %v5280_v56, %v5558_v61  ;;  %7805 = vst [vmem:[#allocation37_spill] sm:$0xff] %v5649_v16  ;;  %v5706_v4 = vld [vmem:[#allocation2 + $0x93] sm:$0xff] }
  0xe9   : > { %v511_v5 = vadd.f32 %v495_v33, %v455_v15  ;;  %v551_v20 = vmul.f32 %v5649_v16, %v5029_v57  ;;  %v2229_v36 = vadd.f32 %v2213_v7, %v2189_v38  ;;  %v2293_v37 = vmul.f32 %v5414_v9, %v5576_v12  ;;  %7806 = vst [vmem:[#allocation18_spill] sm:$0xff] %v5664_v59  ;;  %v7807_v7 = vld [vmem:[#allocation19_spill] sm:$0xff]  ;;  %v5670_v38 = vld [vmem:[#allocation2 + $0x8d] sm:$0xff] }
  0xea   : > { %v1775_v11 = vmul.f32 %v5216_v18, %v701_v32  ;;  %v2333_v60 = vmul.f32 %v5426_v27, %v5592_v48  ;;  %v1910_v51 = vadd.f32 %v1894_v52, %v1870_v50  ;;  %v1974_v55 = vmul.f32 %v5293_v35, %v5576_v12  ;;  %v5695_v16 = vld [vmem:[#allocation2 + $0x8e] sm:$0xff] }
  0xeb   : > { %v1751_v61 = vadd.f32 %v1735_v54, %v1711_v49  ;;  %v2269_v33 = vadd.f32 %v2253_v13, %v2229_v36  ;;  %v1632_v8 = vadd.f32 %v1616_v23, %v1592_v21  ;;  %v1656_v15 = vmul.f32 %v5176_v43, %v5645_v44  ;;  %v5674_v13 = vld [vmem:[#allocation2 + $0x3d] sm:$0xff] }
  0xec   : > { %v5662_v57 = vadd.f32 %v718_v22, %v678_v25  ;;  %v5668_v47 = vmul.f32 %v5664_v59, %v7807_v7  ;;  %v1950_v52 = vadd.f32 %v1934_v41, %v1910_v51  ;;  %v2014_v12 = vmul.f32 %v5310_v58, %v5592_v48  ;;  %7808 = vst [vmem:[#allocation16_spill] sm:$0xff] %v5674_v13  ;;  %v5679_v25 = vld [vmem:[#allocation2 + $0x90] sm:$0xff] }
  0xed   : > { %v567_v54 = vadd.f32 %v551_v20, %v511_v5  ;;  %v607_v49 = vmul.f32 %v5674_v13, %v5055_v19  ;;  %v2309_v21 = vadd.f32 %v2293_v37, %v2269_v33  ;;  %v2373_v23 = vmul.f32 %v5441_v46, %v645_v29  ;;  %v5687_v19 = vld [vmem:[#allocation2 + $0x91] sm:$0xff]  ;;  %v5691_v33 = vld [vmem:[#allocation2 + $0x3e] sm:$0xff] }
  0xee   : > { %v1815_v22 = vmul.f32 %v5237_v17, %v5586_v14  ;;  %v2413_v50 = vmul.f32 %v5448_v1, %v701_v32  ;;  %v1990_v41 = vadd.f32 %v1974_v55, %v1950_v52  ;;  %v2054_v36 = vmul.f32 %v5327_v6, %v645_v29  ;;  %7809 = vst [vmem:[#allocation10_spill] sm:$0xff] %v5687_v19  ;;  %v5689_v37 = vld [vmem:[#allocation2 + $0x92] sm:$0xff]  ;;  %v7812_v52 = vld [vmem:[#allocation41_spill] sm:$0xff] }
  0xef   : > { %v1791_v48 = vadd.f32 %v1775_v11, %v1751_v61  ;;  %v2349_v5 = vadd.f32 %v2333_v60, %v2309_v21  ;;  %v1672_v20 = vadd.f32 %v1656_v15, %v1632_v8  ;;  %v1696_v51 = vmul.f32 %v7783_v45, %v5670_v38  ;;  %7810 = vst [vmem:[#allocation33_spill] sm:$0xff] %v5691_v33  ;;  %v5700_v61 = vld [vmem:[#allocation2 + $0x3f] sm:$0xff] }
  0xf0   : > { %v663_v13 = vmul.f32 %v5691_v33, %v5067_v42  ;;  %v1497_v29 = vmul.f32 %v7782_v2, %v5679_v25  ;;  %v2030_v11 = vadd.f32 %v2014_v12, %v1990_v41  ;;  %v2094_v60 = vmul.f32 %v5342_v34, %v701_v32  ;;  %7811 = vst [vmem:[#allocation57_spill] sm:$0xff] %v5700_v61  ;;  %v7813_v33 = vld [vmem:[#allocation36_spill] sm:$0xff]  ;;  %v5710_v2 = vld [vmem:[#allocation2 + $0x94] sm:$0xff] }
  0xf1   : > { %v623_v55 = vadd.f32 %v607_v49, %v567_v54  ;;  %v719_v8 = vmul.f32 %v5700_v61, %v7804_v0  ;;  %v2389_v15 = vadd.f32 %v2373_v23, %v2349_v5  ;;  %v2453_v21 = vmul.f32 %v7812_v52, %v5586_v14  ;;  %v702_v41 = vld [vmem:[#allocation2 + $0x8f] sm:$0xff] }
  0xf2   : > { %v2070_v42 = vadd.f32 %v2054_v36, %v2030_v11  ;;  %v2134_v59 = vmul.f32 %v7813_v33, %v5586_v14  ;;  %v1537_v32 = vmul.f32 %v7784_v28, %v5687_v19  ;;  %v1577_v12 = vmul.f32 %v5141_v10, %v5689_v37  ;;  %v7814_v36 = vld [vmem:[#allocation50_spill] sm:$0xff] }
  0xf3   : > { %v1831_v54 = vadd.f32 %v1815_v22, %v1791_v48  ;;  %v2429_v0 = vadd.f32 %v2413_v50, %v2389_v15  ;;  %v1712_v49 = vadd.f32 %v1696_v51, %v1672_v20  ;;  %v1736_v23 = vmul.f32 %v7792_v53, %v5695_v16  ;;  %v5720_v14 = vld [vmem:[#allocation2 + $0x95] sm:$0xff] }
  0xf4   : > { %v2110_v5 = vadd.f32 %v2094_v60, %v2070_v42  ;;  %v2174_v11 = vmul.f32 %v7801_v39, %v7814_v36  ;;  %v1553_v61 = vadd.f32 %v1537_v32, %v1497_v29  ;;  %v1617_v28 = vmul.f32 %v5160_v31, %v5706_v4  ;;  %v5728_v48 = vld [vmem:[#allocation2 + $0x96] sm:$0xff]  ;;  %v5744_v42 = vld [vmem:[#allocation2 + $0x40] sm:$0xff] }
  0xf5   : > { %v679_v26 = vadd.f32 %v663_v13, %v623_v55  ;;  %v2469_v19 = vadd.f32 %v2453_v21, %v2429_v0  ;;  %v2214_v10 = vmul.f32 %v7785_v63, %v5603_v24  ;;  %v1657_v22 = vmul.f32 %v5176_v43, %v5710_v2  ;;  %v5740_v55 = vld [vmem:[#allocation2 + $0x97] sm:$0xff]  ;;  %7815 = vst [vmem:[#allocation28_spill] sm:$0xff] %v5744_v42 }
  0xf6   : > { %v2150_v50 = vadd.f32 %v2134_v59, %v2110_v5  ;;  %v1593_v20 = vadd.f32 %v1577_v12, %v1553_v61  ;;  %v1855_v51 = vmul.f32 %v7790_v40, %v7814_v36  ;;  %v1895_v29 = vmul.f32 %v5270_v62, %v5603_v24  ;;  %v5752_v0 = vld [vmem:[#allocation2 + $0x98] sm:$0xff] }
  0xf7   : > { %3655 = vmatmul.mubr.msk.f32.gmra.mrb[10].mxu0 %vm271_vm0, %v2469_v19  ;;  %v1752_v31 = vadd.f32 %v1736_v23, %v1712_v49  ;;  %v1776_v13 = vmul.f32 %v5216_v18, %v702_v41  ;;  %v2254_v60 = vmul.f32 %v7791_v30, %v5623_v3  ;;  %v1697_v43 = vmul.f32 %v7783_v45, %v5720_v14 }
  0xf8   : > { %v2190_v59 = vadd.f32 %v2174_v11, %v2150_v50  ;;  %v1633_v61 = vadd.f32 %v1617_v28, %v1593_v20  ;;  %v1871_v15 = vadd.f32 %v1855_v51, %v1831_v54  ;;  %v1935_v21 = vmul.f32 %v5280_v56, %v5623_v3  ;;  %v7816_v28 = vld [vmem:[#allocation45_spill] sm:$0xff] }
  0xf9   : > { %v735_v24 = vadd.f32 %v719_v8, %v679_v26  ;;  %v761_v19 = vmul.f32 %v5744_v42, %v7807_v7  ;;  %v2294_v32 = vmul.f32 %v5414_v9, %v5645_v44  ;;  %v1737_v45 = vmul.f32 %v7792_v53, %v5728_v48 }
  0xfa   : > { %v2230_v12 = vadd.f32 %v2214_v10, %v2190_v59  ;;  %v1673_v49 = vadd.f32 %v1657_v22, %v1633_v61  ;;  %v1911_v54 = vadd.f32 %v1895_v29, %v1871_v15  ;;  %v1975_v3 = vmul.f32 %v5293_v35, %v5645_v44  ;;  %v7817_v10 = vld [vmem:[#allocation44_spill] sm:$0xff] }
  0xfb   : > { %v1792_v26 = vadd.f32 %v1776_v13, %v1752_v31  ;;  %v1816_v8 = vmul.f32 %v5237_v17, %v5679_v25  ;;  %v2334_v7 = vmul.f32 %v5426_v27, %v5670_v38  ;;  %v1777_v23 = vmul.f32 %v5216_v18, %v5740_v55  ;;  %v5778_v31 = vld [vmem:[#allocation2 + $0x99] sm:$0xff] }
  0xfc   : > { %v2270_v5 = vadd.f32 %v2254_v60, %v2230_v12  ;;  %v1713_v53 = vadd.f32 %v1697_v43, %v1673_v49  ;;  %v1951_v36 = vadd.f32 %v1935_v21, %v1911_v54  ;;  %v2015_v11 = vmul.f32 %v5310_v58, %v5670_v38  ;;  %v5785_v43 = vld [vmem:[#allocation2 + $0x9a] sm:$0xff] }
  0xfd   : > { %v5766_v22 = vadd.f32 %v7817_v10, %v7816_v28  ;;  %v5770_v44 = vadd.f32 %v5668_v47, %v5662_v57  ;;  %v2374_v50 = vmul.f32 %v5441_v46, %v5695_v16  ;;  %v1817_v18 = vmul.f32 %v5237_v17, %v5752_v0  ;;  %v5790_v21 = vld [vmem:[#allocation2 + $0x9b] sm:$0xff] }
  0xfe   : > { %v2310_v20 = vadd.f32 %v2294_v32, %v2270_v5  ;;  %v1753_v51 = vadd.f32 %v1737_v45, %v1713_v53  ;;  %v1991_v29 = vadd.f32 %v1975_v3, %v1951_v36  ;;  %v2055_v38 = vmul.f32 %v5327_v6, %v5695_v16  ;;  %v7822_v3 = vld [vmem:[#allocation22_spill] sm:$0xff]  ;;  %v7823_v28 = vld [vmem:[#allocation12_spill] sm:$0xff] }
  0xff   : > { %7818 = vst [vmem:[#allocation40_spill] sm:$0xff] %v5770_v44  ;;  %v5780_v13 = vadd.f32 %v761_v19, %v735_v24  ;;  %v1832_v60 = vadd.f32 %v1816_v8, %v1792_v26  ;;  %v2414_v57 = vmul.f32 %v5448_v1, %v702_v41  ;;  %v2454_v47 = vmul.f32 %v7812_v52, %v5679_v25  ;;  %v7820_v24 = vld [vmem:[#allocation10_spill] sm:$0xff]  ;;  %v5809_v8 = vld [vmem:[#allocation2 + $0x9c] sm:$0xff] }
 0x100   : > { %v2350_v59 = vadd.f32 %v2334_v7, %v2310_v20  ;;  %v1793_v17 = vadd.f32 %v1777_v23, %v1753_v51  ;;  %v2031_v61 = vadd.f32 %v2015_v11, %v1991_v29  ;;  %v2095_v15 = vmul.f32 %v5342_v34, %v702_v41  ;;  %v5818_v11 = vld [vmem:[%s7443_s1 + $0x1] ss:$0 sm:$0xff]  ;;  %v3997_v44 = vld [vmem:[#allocation2 + $0xc] sm:$0xff] }
 0x101   : > { %7819 = vst [vmem:[#allocation24_spill] sm:$0xff] %v5780_v13  ;;  %v2135_v16 = vmul.f32 %v7813_v33, %v5679_v25  ;;  %v1856_v19 = vmul.f32 %v7790_v40, %v7820_v24  ;;  %v1857_v32 = vmul.f32 %v7790_v40, %v5778_v31  ;;  %v1896_v45 = vmul.f32 %v5270_v62, %v5689_v37  ;;  %v5803_v25 = vld [vmem:[%s7443_s1] ss:$0 sm:$0xff]  ;;  %v7885_v13 = vld [vmem:[#allocation42_spill] sm:$0xff] }
 0x102   : > { %v2390_v12 = vadd.f32 %v2374_v50, %v2350_v59  ;;  %v1833_v49 = vadd.f32 %v1817_v18, %v1793_v17  ;;  %v2071_v54 = vadd.f32 %v2055_v38, %v2031_v61  ;;  %v1897_v41 = vmul.f32 %v5270_v62, %v5785_v43  ;;  %7821 = vst [vmem:[#allocation55_spill] sm:$0xff] %v5803_v25  ;;  %v5824_v18 = vld [vmem:[#allocation2 + $0x9d] sm:$0xff] }
 0x103   : > { %v330_v26 = vmul.f32 %v5803_v25, %v7822_v3  ;;  %v2175_v40 = vmul.f32 %v7801_v39, %v7820_v24  ;;  %v1872_v7 = vadd.f32 %v1856_v19, %v1832_v60  ;;  %v1936_v23 = vmul.f32 %v5280_v56, %v5706_v4  ;;  %v5835_v59 = vld [vmem:[#allocation2 + $0x41] sm:$0xff] }
 0x104   : > { %v2430_v5 = vadd.f32 %v2414_v57, %v2390_v12  ;;  %v2111_v53 = vadd.f32 %v2095_v15, %v2071_v54  ;;  %v1873_v62 = vadd.f32 %v1857_v32, %v1833_v49  ;;  %v1937_v36 = vmul.f32 %v5280_v56, %v5790_v21  ;;  %v5831_v56 = vld [vmem:[%s7443_s1 + $0xa] ss:$0 sm:$0xff]  ;;  %7824 = vst [vmem:[#allocation30_spill] sm:$0xff] %v5835_v59  ;;  %v5841_v61 = vld [vmem:[#allocation2 + $0x42] sm:$0xff]  ;;  %v7829_v54 = vld [vmem:[#allocation23_spill] sm:$0xff] }
 0x105   : > { %v386_v10 = vmul.f32 %v5818_v11, %v7823_v28  ;;  %v2215_v50 = vmul.f32 %v7785_v63, %v5689_v37  ;;  %v1912_v20 = vadd.f32 %v1896_v45, %v1872_v7  ;;  %v1976_v51 = vmul.f32 %v5293_v35, %v5710_v2  ;;  %v7825_v37 = vld [vmem:[#allocation27_spill] sm:$0xff]  ;;  %7827 = vst [vmem:[#allocation19_spill] sm:$0xff] %v5841_v61  ;;  %v5859_v49 = vld [vmem:[%s7443_s1 + $0x2] ss:$0 sm:$0xff]  ;;  %v7832_v28 = vld [vmem:[#allocation25_spill] sm:$0xff] }
 0x106   : > { %v2470_v29 = vadd.f32 %v2454_v47, %v2430_v5  ;;  %v2151_v38 = vadd.f32 %v2135_v16, %v2111_v53  ;;  %v1913_v60 = vadd.f32 %v1897_v41, %v1873_v62  ;;  %v1977_v57 = vmul.f32 %v5293_v35, %v5809_v8  ;;  %v5847_v24 = vld [vmem:[#allocation2 + $0x9e] sm:$0xff] }
 0x107   : > { %v5839_v17 = vmul.f32 %v5835_v59, %v7825_v37  ;;  %v5845_v15 = vmul.f32 %v5841_v61, %v5831_v56  ;;  %v1952_v47 = vadd.f32 %v1936_v23, %v1912_v20  ;;  %v2016_v16 = vmul.f32 %v5310_v58, %v5720_v14  ;;  %v5863_v3 = vld [vmem:[#allocation2 + $0x9f] sm:$0xff]  ;;  %v3985_v61 = vld [vmem:[#allocation2 + $0x9] sm:$0xff] }
 0x108   : > { %3657 = vmatprep.mubr.msk.f32.mxu0 %vm271_vm0, %v2470_v29  ;;  %v2191_v35 = vadd.f32 %v2175_v40, %v2151_v38  ;;  %v2255_v19 = vmul.f32 %v7791_v30, %v5706_v4  ;;  %v1953_v32 = vadd.f32 %v1937_v36, %v1913_v60  ;;  %v2017_v45 = vmul.f32 %v5310_v58, %v5824_v18  ;;  %v5870_v4 = vld [vmem:[%s7443_s1 + $0xb] ss:$0 sm:$0xff]  ;;  %v5876_v53 = vld [vmem:[#allocation2 + $0x43] sm:$0xff] }
 0x109   : > { %7826 = vst [vmem:[#allocation9_spill] sm:$0xff] %v5839_v17  ;;  %7828 = vst [vmem:[#allocation41_spill] sm:$0xff] %v5845_v15  ;;  %v402_v12 = vadd.f32 %v386_v10, %v330_v26  ;;  %v442_v41 = vmul.f32 %v5859_v49, %v7829_v54  ;;  %v1992_v7 = vadd.f32 %v1976_v51, %v1952_v47  ;;  %v5885_v36 = vld [vmem:[%s7443_s1 + $0x3] ss:$0 sm:$0xff] }
 0x10a   : > { %v2056_v40 = vmul.f32 %v5327_v6, %v5728_v48  ;;  %v2231_v58 = vadd.f32 %v2215_v50, %v2191_v35  ;;  %v2295_v26 = vmul.f32 %v5414_v9, %v5710_v2  ;;  %v1993_v23 = vadd.f32 %v1977_v57, %v1953_v32  ;;  %7830 = vst [vmem:[#allocation36_spill] sm:$0xff] %v5876_v53  ;;  %v5891_v2 = vld [vmem:[#allocation2 + $0xa0] sm:$0xff] }
 0x10b   : > { %v2057_v5 = vmul.f32 %v5327_v6, %v5847_v24  ;;  %v5880_v62 = vmul.f32 %v5876_v53, %v5870_v4  ;;  %v5889_v10 = vmul.f32 %v5885_v36, %v7832_v28  ;;  %v2032_v50 = vadd.f32 %v2016_v16, %v1992_v7  ;;  %v1123_v35 = vld [vmem:[#allocation2 + $0xa1] sm:$0xff]  ;;  %v5915_v7 = vld [vmem:[#allocation2 + $0x12] sm:$0xff] }
 0x10c   : > { %v2096_v6 = vmul.f32 %v5342_v34, %v5740_v55  ;;  %v2271_v20 = vadd.f32 %v2255_v19, %v2231_v58  ;;  %v2335_v51 = vmul.f32 %v5426_v27, %v5720_v14  ;;  %v2033_v29 = vadd.f32 %v2017_v45, %v1993_v23  ;;  %v7833_v28 = vld [vmem:[#allocation29_spill] sm:$0xff] }
 0x10d   : > { %7831 = vst [vmem:[#allocation50_spill] sm:$0xff] %v5880_v62  ;;  %v2097_v38 = vmul.f32 %v5342_v34, %v5863_v3  ;;  %v5899_v60 = vadd.f32 %v442_v41, %v402_v12  ;;  %v2375_v57 = vmul.f32 %v5441_v46, %v5728_v48  ;;  %v2072_v47 = vadd.f32 %v2056_v40, %v2032_v50  ;;  %v1165_v12 = vld [vmem:[#allocation2 + $0xa2] sm:$0xff]  ;;  %v5911_v41 = vld [vmem:[#allocation2 + $0x11] sm:$0xff] }
 0x10e   : > { %v2136_v16 = vmul.f32 %v7813_v33, %v5752_v0  ;;  %v2311_v32 = vadd.f32 %v2295_v26, %v2271_v20  ;;  %v2415_v19 = vmul.f32 %v5448_v1, %v5740_v55  ;;  %v2073_v54 = vadd.f32 %v2057_v5, %v2033_v29  ;;  %v5922_v55 = vld [vmem:[%s7443_s1 + $0xc] ss:$0 sm:$0xff]  ;;  %v1207_v5 = vld [vmem:[#allocation2 + $0xa3] sm:$0xff] }
 0x10f   : > { %v2137_v14 = vmul.f32 %v7813_v33, %v5891_v2  ;;  %v2112_v45 = vadd.f32 %v2096_v6, %v2072_v47  ;;  %v2176_v34 = vmul.f32 %v7801_v39, %v5778_v31  ;;  %v797_v48 = vmul.f32 %v5911_v41, %v7825_v37  ;;  %v5930_v6 = vld [vmem:[#allocation2 + $0x13] sm:$0xff]  ;;  %v5945_v47 = vld [vmem:[%s7443_s1 + $0xe] ss:$0 sm:$0xff] }
 0x110   : > { %v839_v40 = vmul.f32 %v5915_v7, %v5831_v56  ;;  %v2351_v33 = vadd.f32 %v2335_v51, %v2311_v32  ;;  %v2455_v31 = vmul.f32 %v7812_v52, %v5752_v0  ;;  %v2113_v58 = vadd.f32 %v2097_v38, %v2073_v54  ;;  %v5937_v51 = vld [vmem:[%s7443_s1 + $0xd] ss:$0 sm:$0xff]  ;;  %v1249_v38 = vld [vmem:[#allocation2 + $0xa4] sm:$0xff]  ;;  %7835 = vst [vmem:[#allocation44_spill] sm:$0xff] %v5945_v47  ;;  %v5949_v54 = vld [vmem:[#allocation2 + $0x14] sm:$0xff] }
 0x111   : > { %v2177_v26 = vmul.f32 %v7801_v39, %v1123_v35  ;;  %v2152_v23 = vadd.f32 %v2136_v16, %v2112_v45  ;;  %v2216_v37 = vmul.f32 %v7785_v63, %v5785_v43  ;;  %v813_v50 = vadd.f32 %v797_v48, %v7833_v28  ;;  %7834 = vst [vmem:[#allocation45_spill] sm:$0xff] %v5937_v51  ;;  %v1333_v28 = vld [vmem:[#allocation2 + $0xa6] sm:$0xff] }
 0x112   : > { %v881_v20 = vmul.f32 %v5930_v6, %v5870_v4  ;;  %v2391_v0 = vadd.f32 %v2375_v57, %v2351_v33  ;;  %v2153_v29 = vadd.f32 %v2137_v14, %v2113_v58  ;;  %v2256_v39 = vmul.f32 %v7791_v30, %v5790_v21  ;;  %v5962_v33 = vld [vmem:[#allocation2 + $0x15] sm:$0xff] }
 0x113   : > { %v2217_v43 = vmul.f32 %v7785_v63, %v1165_v12  ;;  %v2192_v16 = vadd.f32 %v2176_v34, %v2152_v23  ;;  %v2296_v35 = vmul.f32 %v5414_v9, %v5809_v8  ;;  %v855_v32 = vadd.f32 %v839_v40, %v813_v50  ;;  %v5959_v34 = vld [vmem:[%s7443_s1 + $0xf] ss:$0 sm:$0xff]  ;;  %v1291_v8 = vld [vmem:[#allocation2 + $0xa5] sm:$0xff] }
 0x114   : > { %v923_v57 = vmul.f32 %v5949_v54, %v5922_v55  ;;  %v2431_v14 = vadd.f32 %v2415_v19, %v2391_v0  ;;  %v2336_v21 = vmul.f32 %v5426_v27, %v5824_v18  ;;  %v2193_v63 = vadd.f32 %v2177_v26, %v2153_v29  ;;  %v5966_v26 = vld [vmem:[#allocation2 + $0x16] sm:$0xff]  ;;  %v3954_v23 = vld [vmem:[#allocation2] sm:$0xff] }
 0x115   : > { %v2257_v45 = vmul.f32 %v7791_v30, %v1207_v5  ;;  %v2232_v12 = vadd.f32 %v2216_v37, %v2192_v16  ;;  %v2297_v48 = vmul.f32 %v5414_v9, %v1249_v38  ;;  %v897_v40 = vadd.f32 %v881_v20, %v855_v32  ;;  %v5974_v9 = vld [vmem:[%s7443_s1 + $0x10] ss:$0 sm:$0xff]  ;;  %v3955_v20 = vld [vmem:[#allocation2 + $0x1] sm:$0xff]  ;;  %v5982_v32 = vld [vmem:[#allocation2 + $0x17] sm:$0xff] }
 0x116   : > { %v965_v19 = vmul.f32 %v5962_v33, %v5937_v51  ;;  %v2471_v58 = vadd.f32 %v2455_v31, %v2431_v14  ;;  %v2233_v18 = vadd.f32 %v2217_v43, %v2193_v63  ;;  %v1007_v30 = vmul.f32 %v5966_v26, %v5945_v47  ;;  %7836 = vst [vmem:[#allocation10_spill] sm:$0xff] %v5974_v9  ;;  %v3956_v0 = vld [vmem:[#allocation2 + $0x2] sm:$0xff] }
 0x117   : > { %v320_v5 = vmul.f32 %v3954_v23, %v5803_v25  ;;  %v2272_v37 = vadd.f32 %v2256_v39, %v2232_v12  ;;  %v939_v50 = vadd.f32 %v923_v57, %v897_v40  ;;  %v376_v31 = vmul.f32 %v3955_v20, %v5818_v11  ;;  %v1375_v14 = vld [vmem:[#allocation2 + $0xa7] sm:$0xff] }
 0x118   : > { %v432_v29 = vmul.f32 %v3956_v0, %v5859_v49  ;;  %3658 = vmatmul.mubr.msk.f32.gmra.mrb[12].mxu0 %vm271_vm0, %v2471_v58  ;;  %v2376_v38 = vmul.f32 %v5441_v46, %v5847_v24  ;;  %v2273_v43 = vadd.f32 %v2257_v45, %v2233_v18  ;;  %v2337_v16 = vmul.f32 %v5426_v27, %v1291_v8  ;;  %v3958_v40 = vld [vmem:[#allocation2 + $0x3] sm:$0xff]  ;;  %v5990_v45 = vld [vmem:[#allocation2 + $0x18] sm:$0xff] }
 0x119   : > { %v1049_v39 = vmul.f32 %v5982_v32, %v5959_v34  ;;  %v2312_v57 = vadd.f32 %v2296_v35, %v2272_v37  ;;  %v981_v63 = vadd.f32 %v965_v19, %v939_v50  ;;  %v392_v12 = vadd.f32 %v376_v31, %v320_v5  ;;  %7837 = vst [vmem:[#allocation22_spill] sm:$0xff] %v5990_v45  ;;  %v1417_v18 = vld [vmem:[#allocation2 + $0xa8] sm:$0xff]  ;;  %v5997_v19 = vld [vmem:[%s7443_s1 + $0x11] ss:$0 sm:$0xff] }
 0x11a   : > { %v488_v23 = vmul.f32 %v3958_v40, %v5885_v36  ;;  %v2416_v58 = vmul.f32 %v5448_v1, %v5863_v3  ;;  %v2313_v20 = vadd.f32 %v2297_v48, %v2273_v43  ;;  %v2377_v24 = vmul.f32 %v5441_v46, %v1333_v28  ;;  %v3960_v37 = vld [vmem:[#allocation2 + $0x4] sm:$0xff]  ;;  %v6005_v48 = vld [vmem:[#allocation2 + $0x6c] sm:$0xff] }
 0x11b   : > { %v1091_v27 = vmul.f32 %v5990_v45, %v5974_v9  ;;  %v2352_v8 = vadd.f32 %v2336_v21, %v2312_v57  ;;  %v1023_v35 = vadd.f32 %v1007_v30, %v981_v63  ;;  %v448_v5 = vadd.f32 %v432_v29, %v392_v12  ;;  %v6002_v3 = vld [vmem:[%s7443_s1 + $0x4] ss:$0 sm:$0xff]  ;;  %7839 = vst [vmem:[#allocation27_spill] sm:$0xff] %v6005_v48  ;;  %v3963_v43 = vld [vmem:[#allocation2 + $0x5] sm:$0xff] }
 0x11c   : > { %7838 = vst [vmem:[#allocation12_spill] sm:$0xff] %v6002_v3  ;;  %v544_v46 = vmul.f32 %v6002_v3, %v3960_v37  ;;  %v554_v21 = vmul.f32 %v6005_v48, %v6002_v3  ;;  %v2456_v30 = vmul.f32 %v7812_v52, %v5891_v2  ;;  %v2353_v28 = vadd.f32 %v2337_v16, %v2313_v20  ;;  %v6015_v57 = vld [vmem:[%s7443_s1 + $0x5] ss:$0 sm:$0xff]  ;;  %v3965_v16 = vld [vmem:[#allocation2 + $0x19] sm:$0xff]  ;;  %v3966_v20 = vld [vmem:[#allocation2 + $0x6] sm:$0xff] }
 0x11d   : > { %v2417_v50 = vmul.f32 %v5448_v1, %v1375_v14  ;;  %v2392_v31 = vadd.f32 %v2376_v38, %v2352_v8  ;;  %v1065_v0 = vadd.f32 %v1049_v39, %v1023_v35  ;;  %v504_v29 = vadd.f32 %v488_v23, %v448_v5  ;;  %7840 = vst [vmem:[#allocation23_spill] sm:$0xff] %v6015_v57  ;;  %v6025_v14 = vld [vmem:[%s7443_s1 + $0x12] ss:$0 sm:$0xff]  ;;  %v6030_v8 = vld [vmem:[%s7443_s1 + $0x6] ss:$0 sm:$0xff] }
 0x11e   : > { %v600_v63 = vmul.f32 %v6015_v57, %v3963_v43  ;;  %v514_v12 = vadd.f32 %v5889_v10, %v5899_v60  ;;  %v2393_v40 = vadd.f32 %v2377_v24, %v2353_v28  ;;  %v2457_v2 = vmul.f32 %v7812_v52, %v1417_v18  ;;  %v6033_v52 = vld [vmem:[#allocation2 + $0x44] sm:$0xff]  ;;  %v6051_v5 = vld [vmem:[#allocation2 + $0x6d] sm:$0xff] }
 0x11f   : > { %v1133_v1 = vmul.f32 %v3965_v16, %v5997_v19  ;;  %v2432_v38 = vadd.f32 %v2416_v58, %v2392_v31  ;;  %v1107_v39 = vadd.f32 %v1091_v27, %v1065_v0  ;;  %v560_v23 = vadd.f32 %v544_v46, %v504_v29  ;;  %7841 = vst [vmem:[#allocation25_spill] sm:$0xff] %v6033_v52  ;;  %v6039_v58 = vld [vmem:[#allocation2 + $0x45] sm:$0xff]  ;;  %v6107_v48 = vld [vmem:[#allocation2 + $0x70] sm:$0xff] }
 0x120   : > { %v656_v10 = vmul.f32 %v6030_v8, %v3966_v20  ;;  %v6037_v60 = vmul.f32 %v6033_v52, %v5922_v55  ;;  %7843 = vst [vmem:[#allocation58_spill] sm:$0xff] %v6039_v58  ;;  %v6043_v24 = vmul.f32 %v6039_v58, %v5937_v51  ;;  %v6045_v27 = vld [vmem:[#allocation2 + $0x46] sm:$0xff]  ;;  %v2433_v35 = vadd.f32 %v2417_v50, %v2393_v40  ;;  %v3974_v20 = vld [vmem:[#allocation2 + $0x1a] sm:$0xff] }
 0x121   : > { %7845 = vst [vmem:[#allocation60_spill] sm:$0xff] %v6045_v27  ;;  %v6049_v18 = vmul.f32 %v6045_v27, %v5945_v47  ;;  %7847 = vst [vmem:[#allocation62_spill] sm:$0xff] %v6051_v5  ;;  %v610_v37 = vmul.f32 %v6051_v5, %v6015_v57  ;;  %v2472_v46 = vadd.f32 %v2456_v30, %v2432_v38  ;;  %v3972_v31 = vld [vmem:[#allocation2 + $0x7] sm:$0xff]  ;;  %v7855_v5 = vld [vmem:[#allocation38_spill] sm:$0xff] }
 0x122   : > { %7842 = vst [vmem:[#allocation29_spill] sm:$0xff] %v6037_v60  ;;  %7844 = vst [vmem:[#allocation59_spill] sm:$0xff] %v6043_v24  ;;  %v616_v28 = vadd.f32 %v600_v63, %v560_v23  ;;  %v6058_v0 = vld [vmem:[%s7443_s1 + $0x7] ss:$0 sm:$0xff]  ;;  %v2473_v43 = vadd.f32 %v2457_v2, %v2433_v35  ;;  %v1149_v16 = vadd.f32 %v1133_v1, %v1107_v39  ;;  %v6067_v30 = vld [vmem:[%s7443_s1 + $0x9] ss:$0 sm:$0xff] }
 0x123   : > { %7846 = vst [vmem:[#allocation61_spill] sm:$0xff] %v6049_v18  ;;  %v712_v29 = vmul.f32 %v6058_v0, %v3972_v31  ;;  %v1175_v50 = vmul.f32 %v3974_v20, %v6025_v14  ;;  %v6062_v40 = vld [vmem:[#allocation2 + $0x21] sm:$0xff]  ;;  %v570_v38 = vadd.f32 %v554_v21, %v514_v12  ;;  %3660 = vmatprep.mubr.msk.f32.mxu0 %vm271_vm0, %v2472_v46  ;;  %v6075_v2 = vld [vmem:[%s7443_s1 + $0x13] ss:$0 sm:$0xff]  ;;  %7856 = vst [vmem:[#allocation38_spill] sm:$0xff] %v6107_v48 }
 0x124   : > { %v799_v63 = vmul.f32 %v6067_v30, %v6062_v40  ;;  %v672_v1 = vadd.f32 %v656_v10, %v616_v28  ;;  %v3977_v39 = vld [vmem:[#allocation2 + $0x8] sm:$0xff]  ;;  %v6099_v27 = vld [vmem:[#allocation2 + $0x60] sm:$0xff]  ;;  %3661 = vmatmul.mubr.msk.f32.gmra.mrb[14].mxu0 %vm271_vm0, %v2473_v43 }
 0x125   : > { %v6080_v23 = vld [vmem:[%s7443_s1 + $0x8] ss:$0 sm:$0xff]  ;;  %7853 = vst [vmem:[#allocation68_spill] sm:$0xff] %v6099_v27  ;;  %v3986_v43 = vld [vmem:[#allocation2 + $0x1b] sm:$0xff]  ;;  %v626_v42 = vadd.f32 %v610_v37, %v570_v38 }
 0x126   : > { %v754_v35 = vmul.f32 %v6080_v23, %v3977_v39  ;;  %v6083_v31 = vld [vmem:[#allocation2 + $0x22] sm:$0xff]  ;;  %v6103_v39 = vmul.f32 %v6099_v27, %v5803_v25  ;;  %v815_v58 = vadd.f32 %v799_v63, %v7855_v5  ;;  %v728_v53 = vadd.f32 %v712_v29, %v672_v1  ;;  %v6124_v63 = vld [vmem:[%s7443_s1 + $0x14] ss:$0 sm:$0xff] }
 0x127   : > { %7848 = vst [vmem:[#allocation63_spill] sm:$0xff] %v6083_v31  ;;  %v841_v21 = vmul.f32 %v6083_v31, %v5831_v56  ;;  %v6087_v12 = vld [vmem:[#allocation2 + $0x47] sm:$0xff]  ;;  %v796_v27 = vmul.f32 %v3985_v61, %v6067_v30  ;;  %v1217_v5 = vmul.f32 %v3986_v43, %v6075_v2  ;;  %v6252_v31 = vld [vmem:[#allocation2 + $0x74] sm:$0xff] }
 0x128   : > { %7849 = vst [vmem:[#allocation64_spill] sm:$0xff] %v6087_v12  ;;  %v6091_v46 = vmul.f32 %v6087_v12, %v5959_v34  ;;  %v6093_v10 = vld [vmem:[#allocation2 + $0x48] sm:$0xff]  ;;  %7854 = vst [vmem:[#allocation69_spill] sm:$0xff] %v6103_v39  ;;  %v6111_v12 = vmul.f32 %v6107_v48, %v5803_v25  ;;  %v840_v39 = vmul.f32 %v3974_v20, %v5831_v56  ;;  %v7870_v20 = vld [vmem:[#allocation35_spill] sm:$0xff] }
 0x129   : > { %7851 = vst [vmem:[#allocation66_spill] sm:$0xff] %v6093_v10  ;;  %v6097_v28 = vmul.f32 %v6093_v10, %v5974_v9  ;;  %v6113_v52 = vld [vmem:[#allocation2 + $0x61] sm:$0xff]  ;;  %v857_v59 = vadd.f32 %v841_v21, %v815_v58  ;;  %v6130_v29 = vld [vmem:[#allocation2 + $0x6e] sm:$0xff]  ;;  %7887 = vst [vmem:[#allocation96_spill] sm:$0xff] %v6252_v31 }
 0x12a   : > { %7850 = vst [vmem:[#allocation65_spill] sm:$0xff] %v6091_v46  ;;  %7857 = vst [vmem:[#allocation70_spill] sm:$0xff] %v6113_v52  ;;  %v6117_v10 = vmul.f32 %v6113_v52, %v5818_v11  ;;  %v6126_v46 = vld [vmem:[#allocation2 + $0x23] sm:$0xff]  ;;  %v666_v61 = vmul.f32 %v6130_v29, %v6030_v8 }
 0x12b   : > { %7852 = vst [vmem:[#allocation67_spill] sm:$0xff] %v6097_v28  ;;  %v1191_v28 = vadd.f32 %v1175_v50, %v1149_v16  ;;  %7859 = vst [vmem:[#allocation72_spill] sm:$0xff] %v6126_v46  ;;  %v883_v52 = vmul.f32 %v6126_v46, %v5870_v4  ;;  %v770_v16 = vadd.f32 %v754_v35, %v728_v53  ;;  %v3989_v50 = vld [vmem:[#allocation2 + $0xa] sm:$0xff]  ;;  %v6135_v18 = vld [vmem:[#allocation2 + $0x62] sm:$0xff] }
 0x12c   : > { %7858 = vst [vmem:[#allocation71_spill] sm:$0xff] %v6117_v10  ;;  %7860 = vst [vmem:[#allocation73_spill] sm:$0xff] %v6130_v29  ;;  %v838_v1 = vmul.f32 %v3989_v50, %v5831_v56  ;;  %v6139_v58 = vmul.f32 %v6135_v18, %v5859_v49  ;;  %v6141_v21 = vld [vmem:[#allocation2 + $0x63] sm:$0xff]  ;;  %v6153_v35 = vld [vmem:[#allocation2 + $0x6f] sm:$0xff] }
 0x12d   : > { %7861 = vst [vmem:[#allocation74_spill] sm:$0xff] %v6135_v18  ;;  %7863 = vst [vmem:[#allocation76_spill] sm:$0xff] %v6141_v21  ;;  %v6145_v37 = vmul.f32 %v6141_v21, %v5885_v36  ;;  %v6147_v38 = vld [vmem:[#allocation2 + $0x64] sm:$0xff]  ;;  %v722_v50 = vmul.f32 %v6153_v35, %v6058_v0  ;;  %v3994_v18 = vld [vmem:[#allocation2 + $0x1c] sm:$0xff]  ;;  %v812_v24 = vadd.f32 %v796_v27, %v770_v16 }
 0x12e   : > { %7862 = vst [vmem:[#allocation75_spill] sm:$0xff] %v6139_v58  ;;  %7865 = vst [vmem:[#allocation78_spill] sm:$0xff] %v6147_v38  ;;  %v6151_v53 = vmul.f32 %v6147_v38, %v6002_v3  ;;  %v1259_v58 = vmul.f32 %v3994_v18, %v6124_v63  ;;  %v3995_v10 = vld [vmem:[#allocation2 + $0xb] sm:$0xff]  ;;  %v1233_v38 = vadd.f32 %v1217_v5, %v1191_v28 }
 0x12f   : > { %7864 = vst [vmem:[#allocation77_spill] sm:$0xff] %v6145_v37  ;;  %7867 = vst [vmem:[#allocation80_spill] sm:$0xff] %v6153_v35  ;;  %v6157_v29 = vpop.f32.mrb[0].mxu0  ;;  %v880_v21 = vmul.f32 %v3995_v10, %v5870_v4  ;;  %v899_v35 = vadd.f32 %v883_v52, %v857_v59  ;;  %v6169_v60 = vld [vmem:[#allocation2 + $0x24] sm:$0xff]  ;;  %v882_v27 = vmul.f32 %v3986_v43, %v5870_v4 }
 0x130   : > { %7866 = vst [vmem:[#allocation79_spill] sm:$0xff] %v6151_v53  ;;  %v6161_v37 = vpop.f32.mrb[1].mxu0  ;;  %v6167_v53 = vld [vmem:[%s7443_s1 + $0x15] ss:$0 sm:$0xff]  ;;  %7869 = vst [vmem:[#allocation82_spill] sm:$0xff] %v6169_v60  ;;  %v925_v62 = vmul.f32 %v6169_v60, %v5922_v55  ;;  %v682_v16 = vadd.f32 %v666_v61, %v626_v42  ;;  %v854_v10 = vadd.f32 %v838_v1, %v812_v24  ;;  %v6176_v5 = vld [vmem:[#allocation2 + $0x65] sm:$0xff] }
 0x131   : > { %7868 = vst [vmem:[#allocation81_spill] sm:$0xff] %v6161_v37  ;;  %v922_v37 = vmul.f32 %v3997_v44, %v5922_v55  ;;  %v856_v28 = vadd.f32 %v840_v39, %v7870_v20  ;;  %7871 = vst [vmem:[#allocation35_spill] sm:$0xff] %v6176_v5  ;;  %v6180_v15 = vmul.f32 %v6176_v5, %v6015_v57  ;;  %v6182_v59 = vld [vmem:[#allocation2 + $0x66] sm:$0xff]  ;;  %v6194_v44 = vld [vmem:[#allocation2 + $0x71] sm:$0xff] }
 0x132   : > { %7873 = vst [vmem:[#allocation84_spill] sm:$0xff] %v6182_v59  ;;  %v6186_v52 = vmul.f32 %v6182_v59, %v6030_v8  ;;  %v6188_v43 = vld [vmem:[#allocation2 + $0x67] sm:$0xff]  ;;  %7877 = vst [vmem:[#allocation88_spill] sm:$0xff] %v6194_v44  ;;  %v387_v24 = vmul.f32 %v6194_v44, %v5818_v11  ;;  %v4002_v39 = vld [vmem:[#allocation2 + $0x1d] sm:$0xff]  ;;  %v896_v1 = vadd.f32 %v880_v21, %v854_v10 }
 0x133   : > { %7872 = vst [vmem:[#allocation83_spill] sm:$0xff] %v6180_v15  ;;  %7875 = vst [vmem:[#allocation86_spill] sm:$0xff] %v6188_v43  ;;  %v6192_v42 = vmul.f32 %v6188_v43, %v6058_v0  ;;  %v1301_v61 = vmul.f32 %v4002_v39, %v6167_v53  ;;  %v4003_v20 = vld [vmem:[#allocation2 + $0xd] sm:$0xff]  ;;  %v6200_v59 = vld [vmem:[#allocation2 + $0x25] sm:$0xff]  ;;  %v1275_v15 = vadd.f32 %v1259_v58, %v1233_v38 }
 0x134   : > { %7874 = vst [vmem:[#allocation85_spill] sm:$0xff] %v6186_v52  ;;  %v964_v5 = vmul.f32 %v4003_v20, %v5937_v51  ;;  %7878 = vst [vmem:[#allocation89_spill] sm:$0xff] %v6200_v59  ;;  %v967_v52 = vmul.f32 %v6200_v59, %v5937_v51  ;;  %v6207_v43 = vld [vmem:[%s7443_s1 + $0x16] ss:$0 sm:$0xff]  ;;  %v898_v44 = vadd.f32 %v882_v27, %v856_v28  ;;  %v4005_v20 = vld [vmem:[#allocation2 + $0xe] sm:$0xff] }
 0x135   : > { %7876 = vst [vmem:[#allocation87_spill] sm:$0xff] %v6192_v42  ;;  %v941_v42 = vadd.f32 %v925_v62, %v899_v35  ;;  %v924_v60 = vmul.f32 %v3994_v18, %v5922_v55  ;;  %v6210_v46 = vadd.f32 %v722_v50, %v682_v16  ;;  %v6214_v21 = vmul.f32 %v6107_v48, %v6080_v23  ;;  %v6217_v58 = vld [vmem:[#allocation2 + $0x78] sm:$0xff]  ;;  %v6234_v48 = vld [vmem:[#allocation2 + $0x26] sm:$0xff] }
 0x136   : > { %v938_v10 = vadd.f32 %v922_v37, %v896_v1  ;;  %v1006_v59 = vmul.f32 %v4005_v20, %v5945_v47  ;;  %7881 = vst [vmem:[#allocation92_spill] sm:$0xff] %v6217_v58  ;;  %v6221_v38 = vmul.f32 %v6217_v58, %v5803_v25  ;;  %v403_v62 = vadd.f32 %v387_v24, %v6111_v12  ;;  %v6224_v35 = vld [vmem:[#allocation2 + $0x72] sm:$0xff]  ;;  %v4009_v27 = vld [vmem:[#allocation2 + $0x1e] sm:$0xff] }
 0x137   : > { %7879 = vst [vmem:[#allocation90_spill] sm:$0xff] %v6210_v46  ;;  %7880 = vst [vmem:[#allocation91_spill] sm:$0xff] %v6214_v21  ;;  %v443_v18 = vmul.f32 %v6224_v35, %v5859_v49  ;;  %v6228_v50 = vld [vmem:[#allocation2 + $0x31] sm:$0xff]  ;;  %v1343_v16 = vmul.f32 %v4009_v27, %v6207_v43  ;;  %v1009_v12 = vmul.f32 %v6234_v48, %v5945_v47 }
 0x138   : > { %7882 = vst [vmem:[#allocation93_spill] sm:$0xff] %v6224_v35  ;;  %7883 = vst [vmem:[#allocation94_spill] sm:$0xff] %v6228_v50  ;;  %v801_v37 = vmul.f32 %v6228_v50, %v6067_v30  ;;  %v980_v28 = vadd.f32 %v964_v5, %v938_v10  ;;  %v4010_v1 = vld [vmem:[#allocation2 + $0xf] sm:$0xff]  ;;  %v1317_v24 = vadd.f32 %v1301_v61, %v1275_v15  ;;  %v6241_v35 = vld [vmem:[%s7443_s1 + $0x17] ss:$0 sm:$0xff] }
 0x139   : > { %v1048_v20 = vmul.f32 %v4010_v1, %v5959_v34  ;;  %7884 = vst [vmem:[#allocation95_spill] sm:$0xff] %v6234_v48  ;;  %v983_v21 = vadd.f32 %v967_v52, %v941_v42  ;;  %v940_v46 = vadd.f32 %v924_v60, %v898_v44  ;;  %v966_v50 = vmul.f32 %v4002_v39, %v5937_v51  ;;  %v4012_v5 = vld [vmem:[#allocation2 + $0x10] sm:$0xff] }
 0x13a   : > { %v1022_v17 = vadd.f32 %v1006_v59, %v980_v28  ;;  %v1090_v10 = vmul.f32 %v4012_v5, %v5974_v9  ;;  %v817_v1 = vadd.f32 %v801_v37, %v5766_v22  ;;  %v843_v25 = vmul.f32 %v7885_v13, %v5831_v56  ;;  %v6248_v15 = vld [vmem:[#allocation2 + $0x73] sm:$0xff]  ;;  %v4016_v22 = vld [vmem:[#allocation2 + $0x1f] sm:$0xff] }
 0x13b   : > { %v459_v48 = vadd.f32 %v443_v18, %v403_v62  ;;  %7886 = vst [vmem:[#allocation42_spill] sm:$0xff] %v6248_v15  ;;  %v499_v61 = vmul.f32 %v6248_v15, %v5885_v36  ;;  %v555_v60 = vmul.f32 %v6252_v31, %v6002_v3  ;;  %v6256_v59 = vld [vmem:[#allocation2 + $0x75] sm:$0xff]  ;;  %v1385_v42 = vmul.f32 %v4016_v22, %v6241_v35  ;;  %v6268_v62 = vld [vmem:[#allocation2 + $0x27] sm:$0xff] }
 0x13c   : > { %7888 = vst [vmem:[#allocation97_spill] sm:$0xff] %v6256_v59  ;;  %v611_v52 = vmul.f32 %v6256_v59, %v6015_v57  ;;  %v6264_v13 = vld [vmem:[%s7443_s1 + $0x18] ss:$0 sm:$0xff]  ;;  %v1064_v44 = vadd.f32 %v1048_v20, %v1022_v17  ;;  %v1132_v39 = vmul.f32 %v5911_v41, %v5997_v19  ;;  %7889 = vst [vmem:[#allocation98_spill] sm:$0xff] %v6268_v62  ;;  %v7890_v17 = vld [vmem:[#allocation46_spill] sm:$0xff] }
 0x13d   : > { %v1051_v18 = vmul.f32 %v6268_v62, %v5959_v34  ;;  %v1359_v37 = vadd.f32 %v1343_v16, %v1317_v24  ;;  %v1025_v28 = vadd.f32 %v1009_v12, %v983_v21  ;;  %v982_v5 = vadd.f32 %v966_v50, %v940_v46  ;;  %v6277_v41 = vld [vmem:[#allocation2 + $0x76] sm:$0xff]  ;;  %v4019_v62 = vld [vmem:[#allocation2 + $0x20] sm:$0xff] }
 0x13e   : > { %v1008_v59 = vmul.f32 %v4009_v27, %v5945_v47  ;;  %v1106_v31 = vadd.f32 %v1090_v10, %v1064_v44  ;;  %v1174_v15 = vmul.f32 %v5915_v7, %v6025_v14  ;;  %v859_v57 = vadd.f32 %v843_v25, %v817_v1  ;;  %7891 = vst [vmem:[#allocation46_spill] sm:$0xff] %v6277_v41  ;;  %v6286_v25 = vld [vmem:[#allocation2 + $0x28] sm:$0xff] }
 0x13f   : > { %v885_v20 = vmul.f32 %v7890_v17, %v5870_v4  ;;  %v515_v3 = vadd.f32 %v499_v61, %v459_v48  ;;  %v667_v45 = vmul.f32 %v6277_v41, %v6030_v8  ;;  %v1427_v21 = vmul.f32 %v4019_v62, %v6264_v13  ;;  %7892 = vst [vmem:[#allocation99_spill] sm:$0xff] %v6286_v25  ;;  %v4021_v10 = vld [vmem:[#allocation2 + $0x29] sm:$0xff]  ;;  %v6295_v41 = vld [vmem:[#allocation2 + $0x79] sm:$0xff] }
 0x140   : > { %v1216_v46 = vmul.f32 %v5930_v6, %v6075_v2  ;;  %v1148_v50 = vadd.f32 %v1132_v39, %v1106_v31  ;;  %v1258_v7 = vmul.f32 %v5949_v54, %v6124_v63  ;;  %v1093_v48 = vmul.f32 %v6286_v25, %v5974_v9  ;;  %v7893_v6 = vld [vmem:[#allocation48_spill] sm:$0xff]  ;;  %v4022_v39 = vld [vmem:[#allocation2 + $0x2a] sm:$0xff] }
 0x141   : > { %v1050_v27 = vmul.f32 %v4016_v22, %v5959_v34  ;;  %v1401_v16 = vadd.f32 %v1385_v42, %v1359_v37  ;;  %v1067_v12 = vadd.f32 %v1051_v18, %v1025_v28  ;;  %v1024_v24 = vadd.f32 %v1008_v59, %v982_v5  ;;  %7894 = vst [vmem:[#allocation48_spill] sm:$0xff] %v6295_v41  ;;  %v7895_v42 = vld [vmem:[#allocation39_spill] sm:$0xff]  ;;  %v4024_v28 = vld [vmem:[#allocation2 + $0x2b] sm:$0xff] }
 0x142   : > { %v800_v1 = vmul.f32 %v4021_v10, %v6067_v30  ;;  %v1190_v61 = vadd.f32 %v1174_v15, %v1148_v50  ;;  %v901_v44 = vadd.f32 %v885_v20, %v859_v57  ;;  %v927_v31 = vmul.f32 %v7893_v6, %v5922_v55 }
 0x143   : > { %v842_v54 = vmul.f32 %v4022_v39, %v5831_v56  ;;  %v571_v17 = vadd.f32 %v555_v60, %v515_v3  ;;  %v388_v22 = vmul.f32 %v6295_v41, %v5818_v11  ;;  %v1300_v59 = vmul.f32 %v5962_v33, %v6167_v53  ;;  %v7896_v33 = vld [vmem:[#allocation47_spill] sm:$0xff] }
 0x144   : > { %v816_v18 = vadd.f32 %v800_v1, %v7895_v42  ;;  %v1232_v37 = vadd.f32 %v1216_v46, %v1190_v61  ;;  %v1342_v57 = vmul.f32 %v5966_v26, %v6207_v43  ;;  %v1135_v15 = vmul.f32 %v4021_v10, %v5997_v19  ;;  %v6309_v61 = vld [vmem:[#allocation2 + $0x77] sm:$0xff] }
 0x145   : > { %v884_v5 = vmul.f32 %v4024_v28, %v5870_v4  ;;  %v1109_v3 = vadd.f32 %v1093_v48, %v1067_v12  ;;  %v1066_v60 = vadd.f32 %v1050_v27, %v1024_v24  ;;  %v1092_v20 = vmul.f32 %v4019_v62, %v5974_v9  ;;  %7897 = vst [vmem:[#allocation39_spill] sm:$0xff] %v6309_v61  ;;  %v6316_v48 = vld [vmem:[#allocation2 + $0x7a] sm:$0xff] }
 0x146   : > { %v858_v50 = vadd.f32 %v842_v54, %v816_v18  ;;  %v1443_v6 = vadd.f32 %v1427_v21, %v1401_v16  ;;  %v1274_v41 = vadd.f32 %v1258_v7, %v1232_v37  ;;  %v943_v25 = vadd.f32 %v927_v31, %v901_v44  ;;  %7899 = vst [vmem:[#allocation100_spill] sm:$0xff] %v6316_v48  ;;  %v4027_v16 = vld [vmem:[#allocation2 + $0x2c] sm:$0xff]  ;;  %v6335_v18 = vld [vmem:[#allocation2 + $0x7b] sm:$0xff] }
 0x147   : > { %v969_v1 = vmul.f32 %v7896_v33, %v5937_v51  ;;  %v627_v46 = vadd.f32 %v611_v52, %v571_v17  ;;  %v6313_v26 = vmul.f32 %v6309_v61, %v6058_v0  ;;  %v404_v10 = vadd.f32 %v388_v22, %v6221_v38  ;;  %7903 = vst [vmem:[#allocation102_spill] sm:$0xff] %v6335_v18  ;;  %v7907_v33 = vld [vmem:[#allocation55_spill] sm:$0xff]  ;;  %v7916_v61 = vld [vmem:[#allocation49_spill] sm:$0xff] }
 0x148   : > { %v444_v62 = vmul.f32 %v6316_v48, %v5859_v49  ;;  %v1316_v21 = vadd.f32 %v1300_v59, %v1274_v41  ;;  %v1384_v7 = vmul.f32 %v5982_v32, %v6241_v35  ;;  %v900_v27 = vadd.f32 %v884_v5, %v858_v50  ;;  %v7900_v41 = vld [vmem:[#allocation53_spill] sm:$0xff] }
 0x149   : > { %7898 = vst [vmem:[#allocation47_spill] sm:$0xff] %v6313_v26  ;;  %v926_v52 = vmul.f32 %v4027_v16, %v5922_v55  ;;  %v1151_v12 = vadd.f32 %v1135_v15, %v1109_v3  ;;  %v1177_v24 = vmul.f32 %v4022_v39, %v6025_v14  ;;  %v1108_v44 = vadd.f32 %v1092_v20, %v1066_v60  ;;  %v7905_v20 = vld [vmem:[#allocation63_spill] sm:$0xff] }
 0x14a   : > { %v1134_v38 = vmul.f32 %v6062_v40, %v5997_v19  ;;  %v2672_v31 = vadd.f32 %v6157_v29, %v1443_v6  ;;  %v1358_v54 = vadd.f32 %v1342_v57, %v1316_v21  ;;  %v985_v17 = vadd.f32 %v969_v1, %v943_v25  ;;  %v6342_v40 = vld [vmem:[%s7445_s3] ss:$0 sm:$0xff]  ;;  %v7904_v29 = vld [vmem:[#allocation22_spill] sm:$0xff] }
 0x14b   : > { %v1011_v22 = vmul.f32 %v7900_v41, %v5945_v47  ;;  %v6329_v59 = vadd.f32 %v667_v45, %v627_v46  ;;  %v6333_v32 = vmul.f32 %v6217_v58, %v6080_v23  ;;  %v460_v42 = vadd.f32 %v444_v62, %v404_v10  ;;  %v4029_v57 = vld [vmem:[#allocation2 + $0x2d] sm:$0xff]  ;;  %v6350_v6 = vld [vmem:[#allocation2 + $0x80] sm:$0xff] }
 0x14c   : > { %v500_v39 = vmul.f32 %v6335_v18, %v5885_v36  ;;  %v1426_v25 = vmul.f32 %v7904_v29, %v6264_v13  ;;  %v1219_v45 = vmul.f32 %v4024_v28, %v6075_v2  ;;  %v942_v37 = vadd.f32 %v926_v52, %v900_v27  ;;  %7906 = vst [vmem:[#allocation22_spill] sm:$0xff] %v6350_v6  ;;  %v7908_v10 = vld [vmem:[#allocation56_spill] sm:$0xff] }
 0x14d   : > { %7901 = vst [vmem:[#allocation53_spill] sm:$0xff] %v6329_v59  ;;  %7902 = vst [vmem:[#allocation101_spill] sm:$0xff] %v6333_v32  ;;  %v968_v15 = vmul.f32 %v4029_v57, %v5937_v51  ;;  %v1400_v5 = vadd.f32 %v1384_v7, %v1358_v54  ;;  %v1193_v3 = vadd.f32 %v1177_v24, %v1151_v12  ;;  %v6361_v7 = vld [vmem:[#allocation2 + $0x7c] sm:$0xff]  ;;  %v7914_v54 = vld [vmem:[#allocation9_spill] sm:$0xff] }
 0x14e   : > { %v1150_v60 = vadd.f32 %v1134_v38, %v1108_v44  ;;  %v1176_v50 = vmul.f32 %v7905_v20, %v6025_v14  ;;  %v6354_v1 = vmul.f32 %v6350_v6, %v7907_v33  ;;  %v6357_v46 = vadd.f32 %v6342_v40, %v2672_v31  ;;  %7909 = vst [vmem:[#allocation63_spill] sm:$0xff] %v6361_v7  ;;  %v7910_v27 = vld [vmem:[#allocation12_spill] sm:$0xff]  ;;  %v7912_v24 = vld [vmem:[#allocation23_spill] sm:$0xff]  ;;  %v6378_v18 = vpop.f32.mrb[2].mxu0 }
 0x14f   : > { %v1027_v28 = vadd.f32 %v1011_v22, %v985_v17  ;;  %v1053_v62 = vmul.f32 %v7908_v10, %v5959_v34  ;;  %v516_v21 = vadd.f32 %v500_v39, %v460_v42  ;;  %v556_v52 = vmul.f32 %v6361_v7, %v7910_v27  ;;  %v6365_v12 = vld [vmem:[#allocation2 + $0x7d] sm:$0xff]  ;;  %v4033_v42 = vld [vmem:[#allocation2 + $0x2e] sm:$0xff] }
 0x150   : > { %7911 = vst [vmem:[#allocation55_spill] sm:$0xff] %v6365_v12  ;;  %v612_v44 = vmul.f32 %v6365_v12, %v7912_v24  ;;  %v7913_v38 = vld [vmem:[#allocation24_spill] sm:$0xff]  ;;  %v1261_v31 = vmul.f32 %v4027_v16, %v6124_v63  ;;  %v984_v29 = vadd.f32 %v968_v15, %v942_v37  ;;  %v1010_v39 = vmul.f32 %v4033_v42, %v5945_v47  ;;  %v7917_v16 = vld [vmem:[#allocation18_spill] sm:$0xff] }
 0x151   : > { %v819_v41 = vadd.f32 %v7914_v54, %v7913_v38  ;;  %v7915_v17 = vld [vmem:[#allocation72_spill] sm:$0xff]  ;;  %v1442_v20 = vadd.f32 %v1426_v25, %v1400_v5  ;;  %v1235_v10 = vadd.f32 %v1219_v45, %v1193_v3  ;;  %v1192_v58 = vadd.f32 %v1176_v50, %v1150_v60  ;;  %v6385_v25 = vpop.f32.mrb[3].mxu0  ;;  %v7919_v45 = vld [vmem:[#allocation41_spill] sm:$0xff]  ;;  %v7921_v60 = vld [vmem:[#allocation82_spill] sm:$0xff] }
 0x152   : > { %v1218_v22 = vmul.f32 %v7915_v17, %v6075_v2  ;;  %v802_v7 = vmul.f32 %v6067_v30, %v7916_v61  ;;  %v2727_v12 = vmul.f32 0.70710677, %v6357_v46  ;;  %v1069_v38 = vadd.f32 %v1053_v62, %v1027_v28  ;;  %v7918_v17 = vld [vmem:[#allocation51_spill] sm:$0xff]  ;;  %v7920_v3 = vld [vmem:[#allocation40_spill] sm:$0xff]  ;;  %v4034_v28 = vld [vmem:[#allocation2 + $0x2f] sm:$0xff] }
 0x153   : > { %v1095_v54 = vmul.f32 %v7917_v16, %v5974_v9  ;;  %v844_v37 = vmul.f32 %v7918_v17, %v5831_v56  ;;  %v572_v15 = vadd.f32 %v556_v52, %v516_v21  ;;  %v1303_v48 = vmul.f32 %v4029_v57, %v6167_v53  ;;  %v7922_v16 = vld [vmem:[#allocation54_spill] sm:$0xff]  ;;  %v7923_v17 = vld [vmem:[#allocation81_spill] sm:$0xff] }
 0x154   : > { %v861_v5 = vadd.f32 %v7919_v45, %v819_v41  ;;  %v818_v61 = vadd.f32 %v802_v7, %v7920_v3  ;;  %v1260_v50 = vmul.f32 %v7921_v60, %v6124_v63  ;;  %v1026_v32 = vadd.f32 %v1010_v39, %v984_v29  ;;  %v4035_v41 = vld [vmem:[#allocation2 + $0x39] sm:$0xff]  ;;  %v7924_v45 = vld [vmem:[#allocation37_spill] sm:$0xff] }
 0x155   : > { %v1052_v62 = vmul.f32 %v4034_v28, %v5959_v34  ;;  %v886_v6 = vmul.f32 %v7922_v16, %v5870_v4  ;;  %v2671_v21 = vadd.f32 %v7923_v17, %v1442_v20  ;;  %v1277_v52 = vadd.f32 %v1261_v31, %v1235_v10  ;;  %v6400_v39 = vld [vmem:[#allocation2 + $0x7e] sm:$0xff]  ;;  %v7931_v17 = vld [vmem:[#allocation89_spill] sm:$0xff] }
 0x156   : > { %v1234_v57 = vadd.f32 %v1218_v22, %v1192_v58  ;;  %v860_v26 = vadd.f32 %v844_v37, %v818_v61  ;;  %3832 = verf.f32 %v2727_v12  ;;  %v1111_v59 = vadd.f32 %v1095_v54, %v1069_v38  ;;  %7926 = vst [vmem:[#allocation12_spill] sm:$0xff] %v6400_v39  ;;  %v6406_v20 = vld [vmem:[#allocation2 + $0x7f] sm:$0xff]  ;;  %v7930_v12 = vld [vmem:[#allocation50_spill] sm:$0xff] }
 0x157   : > { %v1137_v7 = vmul.f32 %v4035_v41, %v5997_v19  ;;  %v928_v3 = vmul.f32 %v7924_v45, %v5922_v55  ;;  %v6398_v29 = vadd.f32 %v612_v44, %v572_v15  ;;  %v6404_v60 = vmul.f32 %v6400_v39, %v6030_v8  ;;  %7928 = vst [vmem:[#allocation24_spill] sm:$0xff] %v6406_v20  ;;  %v4038_v38 = vld [vmem:[#allocation2 + $0x30] sm:$0xff] }
 0x158   : > { %v6410_v58 = vmul.f32 %v6406_v20, %v6058_v0  ;;  %v903_v31 = vadd.f32 %v7930_v12, %v861_v5  ;;  %v1345_v22 = vmul.f32 %v4033_v42, %v6207_v43  ;;  %v1068_v10 = vadd.f32 %v1052_v62, %v1026_v32  ;;  %v4039_v20 = vld [vmem:[#allocation2 + $0x3a] sm:$0xff] }
 0x159   : > { %7925 = vst [vmem:[#allocation56_spill] sm:$0xff] %v6398_v29  ;;  %7927 = vst [vmem:[#allocation23_spill] sm:$0xff] %v6404_v60  ;;  %v1094_v44 = vmul.f32 %v4038_v38, %v5974_v9  ;;  %v902_v54 = vadd.f32 %v886_v6, %v860_v26  ;;  %v6416_v37 = vadd.f32 %v6342_v40, %v2671_v21  ;;  %v7932_v42 = vld [vmem:[#allocation16_spill] sm:$0xff]  ;;  %v7948_v29 = vld [vmem:[#allocation77_spill] sm:$0xff] }
 0x15a   : > { %7929 = vst [vmem:[#allocation9_spill] sm:$0xff] %v6410_v58  ;;  %v1319_v15 = vadd.f32 %v1303_v48, %v1277_v52  ;;  %v1276_v61 = vadd.f32 %v1260_v50, %v1234_v57  ;;  %v1302_v41 = vmul.f32 %v7931_v17, %v6167_v53  ;;  %v1153_v39 = vadd.f32 %v1137_v7, %v1111_v59  ;;  %v6423_v62 = vld [vmem:[#allocation2 + $0x81] sm:$0xff]  ;;  %v7938_v57 = vld [vmem:[#allocation95_spill] sm:$0xff] }
 0x15b   : > { %v1179_v58 = vmul.f32 %v4039_v20, %v6025_v14  ;;  %v944_v5 = vadd.f32 %v928_v3, %v902_v54  ;;  %v970_v32 = vmul.f32 %v7932_v42, %v5937_v51  ;;  %7933 = vst [vmem:[#allocation72_spill] sm:$0xff] %v6423_v62  ;;  %v6427_v26 = vmul.f32 %v6423_v62, %v5818_v11  ;;  %v6429_v6 = vld [vmem:[#allocation2 + $0x82] sm:$0xff]  ;;  %v7939_v20 = vld [vmem:[#allocation94_spill] sm:$0xff]  ;;  %v7942_v51 = vld [vmem:[#allocation71_spill] sm:$0xff] }
 0x15c   : > { %7935 = vst [vmem:[#allocation18_spill] sm:$0xff] %v6429_v6  ;;  %v6433_v48 = vmul.f32 %v6429_v6, %v5859_v49  ;;  %v1387_v59 = vmul.f32 %v4034_v28, %v6241_v35  ;;  %v7937_v50 = vld [vmem:[#allocation29_spill] sm:$0xff]  ;;  %v1429_v52 = vmul.f32 %v4038_v38, %v6264_v13  ;;  %v1344_v7 = vmul.f32 %v7938_v57, %v6207_v43 }
 0x15d   : > { %7934 = vst [vmem:[#allocation49_spill] sm:$0xff] %v6427_v26  ;;  %v945_v21 = vadd.f32 %v7937_v50, %v903_v31  ;;  %v1110_v3 = vadd.f32 %v1094_v44, %v1068_v10  ;;  %v1136_v12 = vmul.f32 %v7939_v20, %v5997_v19  ;;  %v2726_v54 = vmul.f32 0.70710677, %v6416_v37  ;;  %v7940_v31 = vld [vmem:[#allocation33_spill] sm:$0xff]  ;;  %v7943_v44 = vld [vmem:[#allocation98_spill] sm:$0xff]  ;;  %v7944_v20 = vld [vmem:[#allocation99_spill] sm:$0xff] }
 0x15e   : > { %7936 = vst [vmem:[#allocation51_spill] sm:$0xff] %v6433_v48  ;;  %v1361_v17 = vadd.f32 %v1345_v22, %v1319_v15  ;;  %v1318_v62 = vadd.f32 %v1302_v41, %v1276_v61  ;;  %v1221_v6 = vmul.f32 %v7922_v16, %v6075_v2  ;;  %v1195_v48 = vadd.f32 %v1179_v58, %v1153_v39  ;;  %v7941_v38 = vld [vmem:[#allocation69_spill] sm:$0xff]  ;;  %v7945_v15 = vld [vmem:[#allocation59_spill] sm:$0xff] }
 0x15f   : > { %v986_v28 = vadd.f32 %v970_v32, %v944_v5  ;;  %v1012_v50 = vmul.f32 %v7940_v31, %v5945_v47  ;;  %v401_v60 = vadd.f32 %v7942_v51, %v7941_v38  ;;  %v2711_v10 = vmul.f32 0.5, %v6357_v46  ;;  %v4042_v58 = vld [vmem:[#allocation2 + $0x32] sm:$0xff] }
 0x160   : > { %v1386_v57 = vmul.f32 %v7943_v44, %v6241_v35  ;;  %v1428_v22 = vmul.f32 %v7944_v20, %v6264_v13  ;;  %v987_v61 = vadd.f32 %v7945_v15, %v945_v21  ;;  %v3833_v41 = vpop.eup %3832  ;;  %v1263_v16 = vmul.f32 %v7924_v45, %v6124_v63  ;;  %v7946_v32 = vld [vmem:[#allocation75_spill] sm:$0xff]  ;;  %v7947_v21 = vld [vmem:[#allocation57_spill] sm:$0xff] }
 0x161   : > { %v1152_v39 = vadd.f32 %v1136_v12, %v1110_v3  ;;  %v1178_v5 = vmul.f32 %v4042_v58, %v6025_v14  ;;  %v457_v51 = vadd.f32 %v7946_v32, %v401_v60  ;;  %3834 = verf.f32 %v2726_v54  ;;  %v7951_v54 = vld [vmem:[#allocation79_spill] sm:$0xff] }
 0x162   : > { %v1403_v46 = vadd.f32 %v1387_v59, %v1361_v17  ;;  %v1360_v38 = vadd.f32 %v1344_v7, %v1318_v62  ;;  %v1305_v44 = vmul.f32 %v7932_v42, %v6167_v53  ;;  %v1237_v47 = vadd.f32 %v1221_v6, %v1195_v48  ;;  %v7949_v59 = vld [vmem:[#allocation61_spill] sm:$0xff]  ;;  %v7950_v7 = vld [vmem:[#allocation28_spill] sm:$0xff]  ;;  %v4043_v48 = vld [vmem:[#allocation2 + $0x33] sm:$0xff] }
 0x163   : > { %v1028_v20 = vadd.f32 %v1012_v50, %v986_v28  ;;  %v1054_v15 = vmul.f32 %v7947_v21, %v5959_v34  ;;  %v513_v26 = vadd.f32 %v7948_v29, %v457_v51  ;;  %v2759_v45 = vadd.f32 1.0, %v3833_v41  ;;  %v4044_v50 = vld [vmem:[#allocation2 + $0x34] sm:$0xff] }
 0x164   : > { %v1347_v3 = vmul.f32 %v7940_v31, %v6207_v43  ;;  %v6468_v60 = vmul.f32 %v7947_v21, %v6241_v35  ;;  %v1029_v62 = vadd.f32 %v7949_v59, %v987_v61  ;;  %v6473_v42 = vmul.f32 %v7950_v7, %v6264_v13  ;;  %v4045_v41 = vld [vmem:[#allocation2 + $0x35] sm:$0xff] }
 0x165   : > { %v1194_v6 = vadd.f32 %v1178_v5, %v1152_v39  ;;  %v1220_v12 = vmul.f32 %v4043_v48, %v6075_v2  ;;  %v569_v29 = vadd.f32 %v7951_v54, %v513_v26  ;;  %v1445_v17 = vadd.f32 %v1429_v52, %v1403_v46  ;;  %v7952_v21 = vld [vmem:[#allocation83_spill] sm:$0xff]  ;;  %v7953_v46 = vld [vmem:[#allocation65_spill] sm:$0xff] }
 0x166   : > { %v1402_v28 = vadd.f32 %v1386_v57, %v1360_v38  ;;  %v1262_v31 = vmul.f32 %v4044_v50, %v6124_v63  ;;  %v1304_v58 = vmul.f32 %v4045_v41, %v6167_v53  ;;  %v1279_v32 = vadd.f32 %v1263_v16, %v1237_v47  ;;  %v4046_v59 = vld [vmem:[#allocation2 + $0x36] sm:$0xff]  ;;  %v7954_v47 = vld [vmem:[#allocation85_spill] sm:$0xff] }
 0x167   : > { %v1070_v61 = vadd.f32 %v1054_v15, %v1028_v20  ;;  %v1096_v51 = vmul.f32 %v7950_v7, %v5974_v9  ;;  %v625_v39 = vadd.f32 %v7952_v21, %v569_v29  ;;  %v6482_v5 = vmul.f32 %v2759_v45, %v2711_v10  ;;  %v4047_v52 = vld [vmem:[#allocation2 + $0x37] sm:$0xff]  ;;  %v6492_v20 = vld [vmem:[#allocation2 + $0x68] sm:$0xff] }
 0x168   : > { %v6485_v26 = vmul.f32 %v4046_v59, %v6207_v43  ;;  %v6488_v57 = vmul.f32 %v4047_v52, %v6241_v35  ;;  %v1071_v38 = vadd.f32 %v7953_v46, %v1029_v62  ;;  %v1236_v48 = vadd.f32 %v1220_v12, %v1194_v6  ;;  %7955 = vst [vmem:[#allocation41_spill] sm:$0xff] %v6492_v20  ;;  %v4049_v10 = vld [vmem:[#allocation2 + $0x58] sm:$0xff]  ;;  %v4050_v54 = vld [vmem:[#allocation2 + $0x49] sm:$0xff] }
 0x169   : > { %v681_v16 = vadd.f32 %v7954_v47, %v625_v39  ;;  %v763_v15 = vmul.f32 %v6492_v20, %v6080_v23  ;;  %v328_v45 = vmul.f32 %v4049_v10, %v7907_v33  ;;  %v1444_v7 = vadd.f32 %v1428_v22, %v1402_v28  ;;  %v4051_v50 = vld [vmem:[#allocation2 + $0x59] sm:$0xff]  ;;  %v7956_v39 = vld [vmem:[#allocation30_spill] sm:$0xff] }
 0x16a   : > { %v1139_v29 = vmul.f32 %v4050_v54, %v5997_v19  ;;  %v384_v41 = vmul.f32 %v4051_v50, %v5818_v11  ;;  %v4052_v21 = vld [vmem:[#allocation2 + $0x5a] sm:$0xff]  ;;  %v1321_v6 = vadd.f32 %v1305_v44, %v1279_v32  ;;  %v1112_v12 = vadd.f32 %v1096_v51, %v1070_v61  ;;  %v4053_v22 = vld [vmem:[#allocation2 + $0x4a] sm:$0xff] }
 0x16b   : > { %v440_v62 = vmul.f32 %v4052_v21, %v5859_v49  ;;  %v1138_v59 = vmul.f32 %v7956_v39, %v5997_v19  ;;  %v7957_v52 = vld [vmem:[#allocation87_spill] sm:$0xff]  ;;  %v3835_v47 = vpop.eup %3834  ;;  %v1181_v28 = vmul.f32 %v4053_v22, %v6025_v14  ;;  %v1278_v50 = vadd.f32 %v1262_v31, %v1236_v48  ;;  %v4055_v9 = vld [vmem:[#allocation2 + $0x4b] sm:$0xff] }
 0x16c   : > { %v737_v46 = vadd.f32 %v7957_v52, %v681_v16  ;;  %v7958_v20 = vld [vmem:[#allocation67_spill] sm:$0xff]  ;;  %v400_v10 = vadd.f32 %v384_v41, %v328_v45  ;;  %v1223_v49 = vmul.f32 %v4055_v9, %v6075_v2  ;;  %v6507_v32 = vld [vmem:[#allocation2 + $0x69] sm:$0xff]  ;;  %v2674_v51 = vadd.f32 %v6378_v18, %v1445_v17 }
 0x16d   : > { %v1113_v33 = vadd.f32 %v7958_v20, %v1071_v38  ;;  %v4054_v54 = vld [vmem:[#allocation2 + $0x5b] sm:$0xff]  ;;  %v805_v61 = vmul.f32 %v6507_v32, %v6067_v30  ;;  %v2673_v38 = vadd.f32 %v6385_v25, %v1444_v7  ;;  %v2758_v41 = vadd.f32 1.0, %v3835_v47  ;;  %v4058_v39 = vld [vmem:[#allocation2 + $0x4c] sm:$0xff] }
 0x16e   : > { %v496_v11 = vmul.f32 %v4054_v54, %v5885_v36  ;;  %v779_v44 = vadd.f32 %v763_v15, %v737_v46  ;;  %v456_v16 = vadd.f32 %v440_v62, %v400_v10  ;;  %v4057_v20 = vld [vmem:[#allocation2 + $0x5c] sm:$0xff]  ;;  %v1363_v21 = vadd.f32 %v1347_v3, %v1321_v6  ;;  %v6519_v62 = vld [vmem:[#allocation2 + $0x6a] sm:$0xff] }
 0x16f   : > { %v552_v45 = vmul.f32 %v4057_v20, %v7910_v27  ;;  %v1154_v31 = vadd.f32 %v1138_v59, %v1112_v12  ;;  %v7959_v48 = vld [vmem:[#allocation19_spill] sm:$0xff]  ;;  %v1155_v15 = vadd.f32 %v1139_v29, %v1113_v33  ;;  %v1265_v52 = vmul.f32 %v4058_v39, %v6124_v63 }
 0x170   : > { %v1180_v9 = vmul.f32 %v7959_v48, %v6025_v14  ;;  %v512_v46 = vadd.f32 %v496_v11, %v456_v16  ;;  %v4059_v22 = vld [vmem:[#allocation2 + $0x5d] sm:$0xff]  ;;  %v2710_v25 = vmul.f32 0.5, %v6416_v37  ;;  %v1320_v17 = vadd.f32 %v1304_v58, %v1278_v50  ;;  %v3647_v11 = vpop.f32.mrb[4].mxu0 }
 0x171   : > { %v608_v18 = vmul.f32 %v4059_v22, %v7912_v24  ;;  %v821_v7 = vadd.f32 %v805_v61, %v779_v44  ;;  %v847_v3 = vmul.f32 %v6519_v62, %v5831_v56  ;;  %v6524_v6 = vadd.f32 %v6342_v40, %v2674_v51  ;;  %v4061_v59 = vld [vmem:[#allocation2 + $0x5e] sm:$0xff]  ;;  %v7966_v22 = vld [vmem:[#allocation25_spill] sm:$0xff] }
 0x172   : > { %v6527_v29 = vadd.f32 %v6342_v40, %v2673_v38  ;;  %v568_v12 = vadd.f32 %v552_v45, %v512_v46  ;;  %v664_v47 = vmul.f32 %v4061_v59, %v6030_v8  ;;  %v1405_v33 = vadd.f32 %v6468_v60, %v1363_v21  ;;  %v7960_v58 = vld [vmem:[#allocation36_spill] sm:$0xff]  ;;  %v7961_v16 = vld [vmem:[#allocation7_spill] sm:$0xff]  ;;  %v2612_v45 = vpop.f32.mrb[5].mxu0  ;;  %v6539_v60 = vld [vmem:[#allocation2 + $0x6b] sm:$0xff] }
 0x173   : > { %v1196_v37 = vadd.f32 %v1180_v9, %v1154_v31  ;;  %v1222_v10 = vmul.f32 %v7960_v58, %v6075_v2  ;;  %v2774_v54 = vmul.f32 %v2758_v41, %v2710_v25  ;;  %v1197_v50 = vadd.f32 %v1181_v28, %v1155_v15  ;;  %v4062_v61 = vld [vmem:[#allocation2 + $0x5f] sm:$0xff]  ;;  %v7963_v41 = vld [vmem:[#allocation6_spill] sm:$0xff] }
 0x174   : > { %v624_v44 = vadd.f32 %v608_v18, %v568_v12  ;;  %v720_v51 = vmul.f32 %v4062_v61, %v6058_v0  ;;  %v6536_v38 = vadd.f32 %v6482_v5, %v7961_v16  ;;  %v1362_v20 = vadd.f32 %v6485_v26, %v1320_v17  ;;  %v7965_v15 = vld [vmem:[#allocation68_spill] sm:$0xff]  ;;  %v4064_v58 = vld [vmem:[#allocation2 + $0x38] sm:$0xff]  ;;  %v7969_v61 = vld [vmem:[#allocation49_spill] sm:$0xff] }
 0x175   : > { %v863_v48 = vadd.f32 %v847_v3, %v821_v7  ;;  %v889_v21 = vmul.f32 %v6539_v60, %v5870_v4  ;;  %v6544_v31 = vadd.f32 %v2774_v54, %v7963_v41  ;;  %v2728_v28 = vmul.f32 0.70710677, %v6527_v29  ;;  %v7967_v3 = vld [vmem:[#allocation70_spill] sm:$0xff] }
 0x176   : > { %7962 = vst [vmem:[#allocation40_spill] sm:$0xff] %v6536_v38  ;;  %v680_v9 = vadd.f32 %v664_v47, %v624_v44  ;;  %v762_v39 = vmul.f32 %v7965_v15, %v6080_v23  ;;  %v2872_v5 = vmul.f32 %v6536_v38, %v6536_v38  ;;  %v2729_v26 = vmul.f32 0.70710677, %v6524_v6 }
 0x177   : > { %7964 = vst [vmem:[#allocation82_spill] sm:$0xff] %v6544_v31  ;;  %v1238_v46 = vadd.f32 %v1222_v10, %v1196_v37  ;;  %v1264_v18 = vmul.f32 %v7966_v22, %v6124_v63  ;;  %v2806_v25 = vsel %vm271_vm0, %v6544_v31, 0.0  ;;  %v1239_v17 = vadd.f32 %v1223_v49, %v1197_v50  ;;  %v7968_v10 = vld [vmem:[#allocation27_spill] sm:$0xff]  ;;  %v7972_v22 = vld [vmem:[#allocation76_spill] sm:$0xff] }
 0x178   : > { %v736_v7 = vadd.f32 %v720_v51, %v680_v9  ;;  %v804_v12 = vmul.f32 %v7967_v3, %v6067_v30  ;;  %2807 = vadd.xlane.f32.xlu0 %v2806_v25  ;;  %v2890_v59 = vsel %vm271_vm0, %v2872_v5, 0.0  ;;  %v1404_v47 = vadd.f32 %v6488_v57, %v1362_v20  ;;  %v7970_v51 = vld [vmem:[#allocation74_spill] sm:$0xff]  ;;  %v7975_v3 = vld [vmem:[#allocation45_spill] sm:$0xff] }
 0x179   : > { %v1430_v54 = vmul.f32 %v4064_v58, %v6264_v13  ;;  %v905_v37 = vadd.f32 %v889_v21, %v863_v48  ;;  %v931_v44 = vmul.f32 %v7968_v10, %v5922_v55  ;;  %2891 = vadd.xlane.f32.xlu1 %v2890_v59  ;;  %v405_v49 = vadd.f32 %v7969_v61, %v6354_v1  ;;  %v4065_v9 = vld [vmem:[#allocation2 + $0x4d] sm:$0xff]  ;;  %v7977_v59 = vld [vmem:[#allocation51_spill] sm:$0xff] }
 0x17a   : > { %3836 = verf.f32 %v2728_v28  ;;  %v778_v50 = vadd.f32 %v762_v39, %v736_v7  ;;  %v846_v16 = vmul.f32 %v7970_v51, %v5831_v56  ;;  %v1447_v41 = vadd.f32 %v6473_v42, %v1405_v33  ;;  %v7971_v48 = vld [vmem:[#allocation58_spill] sm:$0xff]  ;;  %v7973_v28 = vld [vmem:[#allocation56_spill] sm:$0xff]  ;;  %v7974_v39 = vld [vmem:[#allocation23_spill] sm:$0xff] }
 0x17b   : > { %v1307_v57 = vmul.f32 %v4065_v9, %v6167_v53  ;;  %v1280_v20 = vadd.f32 %v1264_v18, %v1238_v46  ;;  %v1306_v21 = vmul.f32 %v7971_v48, %v6167_v53  ;;  %3838 = verf.f32 %v2729_v26  ;;  %v7976_v42 = vld [vmem:[#allocation62_spill] sm:$0xff]  ;;  %v6578_v46 = vld [vmem:[#allocation2 + $0x83] sm:$0xff] }
 0x17c   : > { %v1281_v15 = vadd.f32 %v1265_v52, %v1239_v17  ;;  %v820_v5 = vadd.f32 %v804_v12, %v778_v50  ;;  %v888_v1 = vmul.f32 %v7972_v22, %v5870_v4  ;;  %v684_v25 = vadd.f32 %v7974_v39, %v7973_v28  ;;  %7978 = vst [vmem:[#allocation54_spill] sm:$0xff] %v6578_v46  ;;  %v7979_v18 = vld [vmem:[#allocation78_spill] sm:$0xff]  ;;  %v7980_v4 = vld [vmem:[#allocation53_spill] sm:$0xff]  ;;  %v7981_v12 = vld [vmem:[#allocation47_spill] sm:$0xff] }
 0x17d   : > { %v1446_v7 = vadd.f32 %v1430_v54, %v1404_v47  ;;  %v947_v56 = vadd.f32 %v931_v44, %v905_v37  ;;  %v973_v33 = vmul.f32 %v7976_v42, %v7975_v3  ;;  %v461_v58 = vadd.f32 %v7977_v59, %v405_v49  ;;  %v4067_v50 = vld [vmem:[#allocation2 + $0x4e] sm:$0xff]  ;;  %v6587_v54 = vpop.f32.mrb[6].mxu0  ;;  %v7982_v44 = vld [vmem:[#allocation60_spill] sm:$0xff] }
 0x17e   : > { %v501_v26 = vmul.f32 %v6578_v46, %v5885_v36  ;;  %v862_v52 = vadd.f32 %v846_v16, %v820_v5  ;;  %v930_v17 = vmul.f32 %v7979_v18, %v5922_v55  ;;  %v739_v61 = vadd.f32 %v7981_v12, %v7980_v4  ;;  %v6591_v48 = vpop.f32.mrb[7].mxu0  ;;  %v7983_v16 = vld [vmem:[#allocation35_spill] sm:$0xff]  ;;  %v7984_v5 = vld [vmem:[#allocation22_spill] sm:$0xff]  ;;  %v7985_v59 = vld [vmem:[#allocation44_spill] sm:$0xff] }
 0x17f   : > { %v1349_v47 = vmul.f32 %v4067_v50, %v6207_v43  ;;  %v1322_v37 = vadd.f32 %v1306_v21, %v1280_v20  ;;  %v1348_v49 = vmul.f32 %v7982_v44, %v6207_v43  ;;  %v2676_v51 = vadd.f32 %v3647_v11, %v1447_v41  ;;  %v7986_v18 = vld [vmem:[#allocation73_spill] sm:$0xff] }
 0x180   : > { %v1323_v9 = vadd.f32 %v1307_v57, %v1281_v15  ;;  %v904_v36 = vadd.f32 %v888_v1, %v862_v52  ;;  %v972_v55 = vmul.f32 %v7983_v16, %v7975_v3  ;;  %v766_v22 = vmul.f32 %v7984_v5, %v6080_v23  ;;  %v7987_v20 = vld [vmem:[#allocation9_spill] sm:$0xff]  ;;  %v7989_v57 = vld [vmem:[#allocation90_spill] sm:$0xff]  ;;  %v7990_v15 = vld [vmem:[#allocation91_spill] sm:$0xff] }
 0x181   : > { %v2675_v28 = vadd.f32 %v2612_v45, %v1446_v7  ;;  %v989_v39 = vadd.f32 %v973_v33, %v947_v56  ;;  %v1015_v4 = vmul.f32 %v7986_v18, %v7985_v59  ;;  %v740_v21 = vadd.f32 %v7987_v20, %v684_v25  ;;  %v6600_v50 = vld [vmem:[#allocation2 + $0x84] sm:$0xff] }
 0x182   : > { %v517_v12 = vadd.f32 %v501_v26, %v461_v58  ;;  %7988 = vst [vmem:[#allocation81_spill] sm:$0xff] %v6600_v50  ;;  %v557_v11 = vmul.f32 %v6600_v50, %v7910_v27  ;;  %v946_v41 = vadd.f32 %v930_v17, %v904_v36  ;;  %v6606_v1 = vadd.f32 %v7990_v15, %v7989_v57  ;;  %v7991_v45 = vld [vmem:[#allocation64_spill] sm:$0xff]  ;;  %v4069_v26 = vld [vmem:[#allocation2 + $0x4f] sm:$0xff] }
 0x183   : > { %v1364_v3 = vadd.f32 %v1348_v49, %v1322_v37  ;;  %v1390_v7 = vmul.f32 %v7991_v45, %v6241_v35  ;;  %v7992_v56 = vld [vmem:[#allocation84_spill] sm:$0xff]  ;;  %v6613_v25 = vadd.f32 %v6342_v40, %v2676_v51  ;;  %v1365_v58 = vadd.f32 %v1349_v47, %v1323_v9  ;;  %v7993_v36 = vld [vmem:[#allocation101_spill] sm:$0xff]  ;;  %v7996_v9 = vld [vmem:[#allocation66_spill] sm:$0xff] }
 0x184   : > { %v1014_v33 = vmul.f32 %v7992_v56, %v7985_v59  ;;  %v3837_v52 = vpop.eup %3836  ;;  %v1391_v44 = vmul.f32 %v4069_v26, %v6241_v35  ;;  %v988_v17 = vadd.f32 %v972_v55, %v946_v41  ;;  %v781_v16 = vadd.f32 %v7993_v36, %v739_v61  ;;  %v7994_v49 = vld [vmem:[#allocation80_spill] sm:$0xff] }
 0x185   : > { %v6618_v20 = vadd.f32 %v6342_v40, %v2675_v28  ;;  %v1031_v37 = vadd.f32 %v1015_v4, %v989_v39  ;;  %v1057_v57 = vmul.f32 %v7994_v49, %v5959_v34  ;;  %v3839_v15 = vpop.eup %3838  ;;  %v6622_v59 = vadd.f32 %v766_v22, %v740_v21  ;;  %v6624_v51 = vld [vmem:[#allocation2 + $0x85] sm:$0xff]  ;;  %v7997_v39 = vld [vmem:[#allocation86_spill] sm:$0xff] }
 0x186   : > { %v573_v45 = vadd.f32 %v557_v11, %v517_v12  ;;  %7995 = vst [vmem:[#allocation37_spill] sm:$0xff] %v6624_v51  ;;  %v613_v47 = vmul.f32 %v6624_v51, %v7912_v24  ;;  %v1432_v55 = vmul.f32 %v7996_v9, %v6264_v13  ;;  %v2760_v61 = vadd.f32 1.0, %v3837_v52  ;;  %v4071_v12 = vld [vmem:[#allocation2 + $0x50] sm:$0xff] }
 0x187   : > { %v1406_v41 = vadd.f32 %v1390_v7, %v1364_v3  ;;  %v1030_v28 = vadd.f32 %v1014_v33, %v988_v17  ;;  %v1056_v4 = vmul.f32 %v7997_v39, %v5959_v34  ;;  %v2712_v56 = vmul.f32 0.5, %v6527_v29  ;;  %v7998_v51 = vld [vmem:[#allocation10_spill] sm:$0xff]  ;;  %v6641_v3 = vld [vmem:[%s7443_s1] ss:$0 sm:$0xff]  ;;  %v6643_v34 = vld [vmem:[#allocation2 + $0x88] sm:$0xff] }
 0x188   : > { %v2731_v22 = vmul.f32 0.70710677, %v6613_v25  ;;  %v1407_v21 = vadd.f32 %v1391_v44, %v1365_v58  ;;  %v1433_v11 = vmul.f32 %v4071_v12, %v6264_v13  ;;  %v2761_v26 = vadd.f32 1.0, %v3839_v15  ;;  %v7999_v9 = vld [vmem:[#allocation38_spill] sm:$0xff]  ;;  %8000 = vst [vmem:[#allocation50_spill] sm:$0xff] %v6643_v34  ;;  %v6647_v33 = vld [vmem:[#allocation2 + $0x86] sm:$0xff] }
 0x189   : > { %v2730_v24 = vmul.f32 0.70710677, %v6618_v20  ;;  %v1073_v36 = vadd.f32 %v1057_v57, %v1031_v37  ;;  %v1099_v52 = vmul.f32 %v7999_v9, %v7998_v51  ;;  %v334_v29 = vmul.f32 %v6643_v34, %v6641_v3  ;;  %8001 = vst [vmem:[#allocation89_spill] sm:$0xff] %v6647_v33  ;;  %v8002_v15 = vld [vmem:[#allocation41_spill] sm:$0xff] }
 0x18a   : > { %v629_v7 = vadd.f32 %v613_v47, %v573_v45  ;;  %v669_v58 = vmul.f32 %v6647_v33, %v6030_v8  ;;  %v2713_v44 = vmul.f32 0.5, %v6524_v6  ;;  %v2776_v17 = vmul.f32 %v2760_v61, %v2712_v56  ;;  %v6654_v12 = vld [vmem:[#allocation2 + $0x87] sm:$0xff] }
 0x18b   : > { %v1448_v37 = vadd.f32 %v1432_v55, %v1406_v41  ;;  %v1072_v57 = vadd.f32 %v1056_v4, %v1030_v28  ;;  %v1098_v39 = vmul.f32 %v8002_v15, %v7998_v51  ;;  %8003 = vst [vmem:[#allocation16_spill] sm:$0xff] %v6654_v12  ;;  %v725_v9 = vmul.f32 %v6654_v12, %v6058_v0  ;;  %v8004_v47 = vld [vmem:[#allocation88_spill] sm:$0xff] }
 0x18c   : > { %3840 = verf.f32 %v2731_v22  ;;  %v1449_v45 = vadd.f32 %v1433_v11, %v1407_v21  ;;  %v1141_v50 = vmul.f32 %v8004_v47, %v5997_v19  ;;  %v2777_v46 = vmul.f32 %v2761_v26, %v2713_v44  ;;  %v8005_v6 = vld [vmem:[#allocation48_spill] sm:$0xff] }
 0x18d   : > { %3842 = verf.f32 %v2730_v24  ;;  %v1115_v8 = vadd.f32 %v1099_v52, %v1073_v36  ;;  %v807_v55 = vmul.f32 %v8005_v6, %v6067_v30  ;;  %v685_v61 = vadd.f32 %v669_v58, %v629_v7  ;;  %v8006_v22 = vld [vmem:[#allocation8_spill] sm:$0xff]  ;;  %v6686_v24 = vld [vmem:[%s7443_s1 + $0xa] ss:$0 sm:$0xff] }
 0x18e   : > { %v1140_v51 = vmul.f32 %v6507_v32, %v5997_v19  ;;  %v806_v41 = vmul.f32 %v8004_v47, %v6067_v30  ;;  %v2809_v0 = vsel %vm271_vm0, %v6536_v38, 0.0  ;;  %v2677_v28 = vadd.f32 %v6591_v48, %v1448_v37  ;;  %v4076_v19 = vld [vmem:[%s7443_s1 + $0x1] ss:$0 sm:$0xff]  ;;  %v6677_v32 = vld [vmem:[#allocation2 + $0x89] sm:$0xff] }
 0x18f   : > { %v1114_v4 = vadd.f32 %v1098_v39, %v1072_v57  ;;  %2810 = vadd.xlane.f32.xlu0 %v2809_v0  ;;  %v2871_v56 = vmul.f32 %v6544_v31, %v6544_v31  ;;  %v6672_v21 = vadd.f32 %v2776_v17, %v8006_v22  ;;  %v390_v30 = vmul.f32 %v6677_v32, %v4076_v19  ;;  %v8008_v48 = vld [vmem:[#allocation93_spill] sm:$0xff]  ;;  %v8009_v36 = vld [vmem:[#allocation100_spill] sm:$0xff]  ;;  %v8010_v17 = vld [vmem:[#allocation11_spill] sm:$0xff] }
 0x190   : > { %v2678_v11 = vadd.f32 %v6587_v54, %v1449_v45  ;;  %v1183_v26 = vmul.f32 %v8008_v48, %v6025_v14  ;;  %v849_v52 = vmul.f32 %v6686_v24, %v8009_v36  ;;  %v1157_v7 = vadd.f32 %v1141_v50, %v1115_v8  ;;  %v8012_v8 = vld [vmem:[#allocation42_spill] sm:$0xff] }
 0x191   : > { %8007 = vst [vmem:[#allocation29_spill] sm:$0xff] %v6672_v21  ;;  %v823_v58 = vadd.f32 %v807_v55, %v781_v16  ;;  %v2887_v44 = vsel %vm271_vm0, %v2871_v56, 0.0  ;;  %v6692_v37 = vadd.f32 %v2777_v46, %v8010_v17  ;;  %v741_v57 = vadd.f32 %v725_v9, %v685_v61  ;;  %v6728_v56 = vld [vmem:[#allocation2 + $0x90] sm:$0xff] }
 0x192   : > { %v767_v54 = vmul.f32 %v6643_v34, %v6080_v23  ;;  %v1182_v15 = vmul.f32 %v6519_v62, %v6025_v14  ;;  %2888 = vadd.xlane.f32.xlu1 %v2887_v44  ;;  %v2812_v39 = vsel %vm271_vm0, %v6672_v21, 0.0  ;;  %v6701_v45 = vadd.f32 %v6342_v40, %v2677_v28  ;;  %v4079_v23 = vld [vmem:[%s7443_s1 + $0x2] ss:$0 sm:$0xff]  ;;  %v6709_v14 = vld [vmem:[#allocation2 + $0x8a] sm:$0xff] }
 0x193   : > { %8011 = vst [vmem:[#allocation95_spill] sm:$0xff] %v6692_v37  ;;  %v1156_v50 = vadd.f32 %v1140_v51, %v1114_v4  ;;  %v822_v16 = vadd.f32 %v806_v41, %v6606_v1  ;;  %v848_v46 = vmul.f32 %v6686_v24, %v8008_v48  ;;  %2813 = vadd.xlane.f32.xlu0 %v2812_v39  ;;  %v8013_v51 = vld [vmem:[#allocation102_spill] sm:$0xff]  ;;  %v2815_v0 = vsel %vm271_vm0, %v6692_v37, 0.0 }
 0x194   : > { %v406_v9 = vadd.f32 %v390_v30, %v334_v29  ;;  %v446_v62 = vmul.f32 %v6709_v14, %v4079_v23  ;;  %v6713_v47 = vadd.f32 %v6342_v40, %v2678_v11  ;;  %v1225_v55 = vmul.f32 %v8012_v8, %v6075_v2  ;;  %v6720_v29 = vld [vmem:[%s7443_s1 + $0xb] ss:$0 sm:$0xff]  ;;  %v4083_v30 = vld [vmem:[%s7443_s1 + $0x3] ss:$0 sm:$0xff]  ;;  %v6749_v39 = vld [vmem:[#allocation2 + $0x91] sm:$0xff] }
 0x195   : > { %v1199_v1 = vadd.f32 %v1183_v26, %v1157_v7  ;;  %v865_v61 = vadd.f32 %v849_v52, %v823_v58  ;;  %v891_v41 = vmul.f32 %v6720_v29, %v8013_v51  ;;  %v6726_v4 = vadd.f32 %v767_v54, %v741_v57  ;;  %v6735_v11 = vld [vmem:[#allocation2 + $0x8b] sm:$0xff] }
 0x196   : > { %v3841_v28 = vpop.eup %3840  ;;  %v335_v22 = vmul.f32 %v6728_v56, %v6641_v3  ;;  %v502_v48 = vmul.f32 %v6735_v11, %v4083_v30  ;;  %v1224_v26 = vmul.f32 %v6539_v60, %v6075_v2  ;;  %2816 = vadd.xlane.f32.xlu1 %v2815_v0  ;;  %v2732_v7 = vmul.f32 0.70710677, %v6701_v45  ;;  %v6743_v57 = vld [vmem:[#allocation2 + $0x8c] sm:$0xff] }
 0x197   : > { %v3843_v52 = vpop.eup %3842  ;;  %v1198_v58 = vadd.f32 %v1182_v15, %v1156_v50  ;;  %v864_v44 = vadd.f32 %v848_v46, %v822_v16  ;;  %v890_v3 = vmul.f32 %v6720_v29, %v8012_v8  ;;  %v462_v17 = vadd.f32 %v446_v62, %v406_v9  ;;  %v8014_v15 = vld [vmem:[#allocation96_spill] sm:$0xff]  ;;  %v6758_v46 = vld [vmem:[%s7443_s1 + $0xc] ss:$0 sm:$0xff]  ;;  %v8015_v9 = vld [vmem:[#allocation63_spill] sm:$0xff] }
 0x198   : > { %v6747_v54 = vmul.f32 %v6743_v57, %v7910_v27  ;;  %v391_v2 = vmul.f32 %v6749_v39, %v4076_v19  ;;  %v2733_v60 = vmul.f32 0.70710677, %v6713_v47  ;;  %v1241_v0 = vadd.f32 %v1225_v55, %v1199_v1  ;;  %v6762_v62 = vld [vmem:[#allocation2 + $0x92] sm:$0xff] }
 0x199   : > { %v1267_v50 = vmul.f32 %v8014_v15, %v6124_v63  ;;  %v907_v16 = vadd.f32 %v891_v41, %v865_v61  ;;  %v933_v27 = vmul.f32 %v6758_v46, %v8015_v9  ;;  %v447_v8 = vmul.f32 %v6762_v62, %v4079_v23  ;;  %v8016_v23 = vld [vmem:[#allocation97_spill] sm:$0xff] }
 0x19a   : > { %v2763_v19 = vadd.f32 1.0, %v3841_v28  ;;  %v2762_v31 = vadd.f32 1.0, %v3843_v52  ;;  %v1266_v55 = vmul.f32 %v7968_v10, %v6124_v63  ;;  %3844 = verf.f32 %v2732_v7  ;;  %v6776_v63 = vld [vmem:[%s7443_s1 + $0xd] ss:$0 sm:$0xff]  ;;  %v8017_v10 = vld [vmem:[#allocation55_spill] sm:$0xff] }
 0x19b   : > { %v1240_v1 = vadd.f32 %v1224_v26, %v1198_v58  ;;  %v906_v61 = vadd.f32 %v890_v3, %v864_v44  ;;  %v932_v41 = vmul.f32 %v6758_v46, %v8014_v15  ;;  %v407_v38 = vadd.f32 %v391_v2, %v335_v22  ;;  %v6780_v22 = vld [vmem:[#allocation2 + $0x93] sm:$0xff] }
 0x19c   : > { %v2715_v34 = vmul.f32 0.5, %v6613_v25  ;;  %v2714_v12 = vmul.f32 0.5, %v6618_v20  ;;  %3846 = verf.f32 %v2733_v60  ;;  %v1283_v33 = vadd.f32 %v1267_v50, %v1241_v0  ;;  %v8018_v15 = vld [vmem:[#allocation46_spill] sm:$0xff] }
 0x19d   : > { %v1309_v28 = vmul.f32 %v8016_v23, %v6167_v53  ;;  %v949_v52 = vadd.f32 %v933_v27, %v907_v16  ;;  %v975_v26 = vmul.f32 %v6776_v63, %v8017_v10  ;;  %v518_v7 = vadd.f32 %v502_v48, %v462_v17  ;;  %v8020_v27 = vld [vmem:[#allocation13_spill] sm:$0xff] }
 0x19e   : > { %v503_v25 = vmul.f32 %v6780_v22, %v4083_v30  ;;  %v2779_v20 = vmul.f32 %v2763_v19, %v2715_v34  ;;  %v2778_v58 = vmul.f32 %v2762_v31, %v2714_v12  ;;  %v1282_v44 = vadd.f32 %v1266_v55, %v1240_v1  ;;  %v4092_v1 = vld [vmem:[%s7443_s1 + $0x5] ss:$0 sm:$0xff] }
 0x19f   : > { %v1308_v3 = vmul.f32 %v7976_v42, %v6167_v53  ;;  %v948_v2 = vadd.f32 %v932_v41, %v906_v61  ;;  %v974_v60 = vmul.f32 %v6776_v63, %v8016_v23  ;;  %v463_v0 = vadd.f32 %v447_v8, %v407_v38  ;;  %v6798_v53 = vld [vmem:[%s7443_s1 + $0xe] ss:$0 sm:$0xff]  ;;  %v8019_v38 = vld [vmem:[#allocation12_spill] sm:$0xff] }
 0x1a0   : > { %v1351_v50 = vmul.f32 %v8018_v15, %v6207_v43  ;;  %v2873_v48 = vmul.f32 %v6672_v21, %v6672_v21  ;;  %v2874_v30 = vmul.f32 %v6692_v37, %v6692_v37  ;;  %v1325_v34 = vadd.f32 %v1309_v28, %v1283_v33  ;;  %v8022_v33 = vld [vmem:[#allocation14_spill] sm:$0xff]  ;;  %v4094_v23 = vld [vmem:[%s7443_s1 + $0x6] ss:$0 sm:$0xff] }
 0x1a1   : > { %v1350_v31 = vmul.f32 %v7986_v18, %v6207_v43  ;;  %v991_v12 = vadd.f32 %v975_v26, %v949_v52  ;;  %v1017_v42 = vmul.f32 %v6798_v53, %v8019_v38  ;;  %v6805_v8 = vadd.f32 %v2778_v58, %v8020_v27  ;;  %v6815_v61 = vld [vmem:[#allocation2 + $0x8d] sm:$0xff]  ;;  %v6848_v37 = vld [vmem:[#allocation2 + $0x95] sm:$0xff] }
 0x1a2   : > { %v2893_v17 = vsel %vm271_vm0, %v2873_v48, 0.0  ;;  %v2896_v16 = vsel %vm271_vm0, %v2874_v30, 0.0  ;;  %v6808_v19 = vadd.f32 %v2779_v20, %v8022_v33  ;;  %v1324_v43 = vadd.f32 %v1308_v3, %v1282_v44  ;;  %v6821_v28 = vld [vmem:[#allocation2 + $0x8e] sm:$0xff]  ;;  %v4096_v20 = vld [vmem:[%s7443_s1 + $0x4] ss:$0 sm:$0xff] }
 0x1a3   : > { %8021 = vst [vmem:[#allocation94_spill] sm:$0xff] %v6805_v8  ;;  %v990_v18 = vadd.f32 %v974_v60, %v948_v2  ;;  %v1016_v55 = vmul.f32 %v6798_v53, %v8018_v15  ;;  %2894 = vadd.xlane.f32.xlu0 %v2893_v17  ;;  %2897 = vadd.xlane.f32.xlu1 %v2896_v16  ;;  %v6827_v58 = vld [vmem:[#allocation2 + $0x94] sm:$0xff] }
 0x1a4   : > { %8023 = vst [vmem:[#allocation33_spill] sm:$0xff] %v6808_v19  ;;  %v614_v41 = vmul.f32 %v6815_v61, %v4092_v1  ;;  %v670_v52 = vmul.f32 %v6821_v28, %v4094_v23  ;;  %v519_v26 = vadd.f32 %v503_v25, %v463_v0  ;;  %v559_v44 = vmul.f32 %v6827_v58, %v4096_v20  ;;  %v3845_v3 = vpop.eup %3844  ;;  %v8024_v60 = vld [vmem:[#allocation39_spill] sm:$0xff]  ;;  %v6838_v25 = vld [vmem:[%s7443_s1 + $0xf] ss:$0 sm:$0xff]  ;;  %v8025_v0 = vld [vmem:[#allocation24_spill] sm:$0xff] }
 0x1a5   : > { %v574_v2 = vadd.f32 %v6747_v54, %v518_v7  ;;  %v1393_v15 = vmul.f32 %v8024_v60, %v6241_v35  ;;  %v1392_v48 = vmul.f32 %v7994_v49, %v6241_v35  ;;  %v1059_v30 = vmul.f32 %v6838_v25, %v8025_v0 }
 0x1a6   : > { %v3847_v17 = vpop.eup %3846  ;;  %v1367_v16 = vadd.f32 %v1351_v50, %v1325_v34  ;;  %v1033_v27 = vadd.f32 %v1017_v42, %v991_v12  ;;  %v2818_v54 = vsel %vm271_vm0, %v6805_v8, 0.0  ;;  %v2821_v7 = vsel %vm271_vm0, %v6808_v19, 0.0  ;;  %v4100_v42 = vld [vmem:[%s7443_s1 + $0x7] ss:$0 sm:$0xff] }
 0x1a7   : > { %v1366_v33 = vadd.f32 %v1350_v31, %v1324_v43  ;;  %v1032_v20 = vadd.f32 %v1016_v55, %v990_v18  ;;  %v1058_v35 = vmul.f32 %v6838_v25, %v8024_v60  ;;  %2819 = vadd.xlane.f32.xlu0 %v2818_v54  ;;  %2822 = vadd.xlane.f32.xlu1 %v2821_v7  ;;  %v2716_v50 = vmul.f32 0.5, %v6701_v45  ;;  %v6855_v31 = vld [vmem:[#allocation2 + $0x8f] sm:$0xff] }
 0x1a8   : > { %v575_v49 = vadd.f32 %v559_v44, %v519_v26  ;;  %v615_v21 = vmul.f32 %v6848_v37, %v4092_v1  ;;  %v2764_v34 = vadd.f32 1.0, %v3845_v3  ;;  %v630_v12 = vadd.f32 %v614_v41, %v574_v2  ;;  %v8026_v44 = vld [vmem:[#allocation92_spill] sm:$0xff]  ;;  %v6866_v45 = vld [vmem:[%s7443_s1 + $0x10] ss:$0 sm:$0xff] }
 0x1a9   : > { %v6858_v43 = vmul.f32 %v6855_v31, %v4100_v42  ;;  %v2717_v18 = vmul.f32 0.5, %v6713_v47  ;;  %v2765_v55 = vadd.f32 1.0, %v3847_v17  ;;  %v1409_v26 = vadd.f32 %v1393_v15, %v1367_v16  ;;  %v4103_v2 = vld [vmem:[#allocation2 + $0x70] sm:$0xff]  ;;  %v4104_v15 = vld [vmem:[%s7443_s1 + $0x8] ss:$0 sm:$0xff] }
 0x1aa   : > { %v1435_v1 = vmul.f32 %v8026_v44, %v6264_v13  ;;  %v1075_v60 = vadd.f32 %v1059_v30, %v1033_v27  ;;  %v1101_v41 = vmul.f32 %v6866_v45, %v7984_v5  ;;  %v1408_v3 = vadd.f32 %v1392_v48, %v1366_v33  ;;  %v6879_v16 = vld [vmem:[#allocation2 + $0x96] sm:$0xff] }
 0x1ab   : > { %v1434_v54 = vmul.f32 %v4103_v2, %v6264_v13  ;;  %v1074_v7 = vadd.f32 %v1058_v35, %v1032_v20  ;;  %v1100_v47 = vmul.f32 %v6866_v45, %v8026_v44  ;;  %v6877_v30 = vmul.f32 %v4104_v15, %v6728_v56  ;;  %8027 = vst [vmem:[#allocation69_spill] sm:$0xff] %v6879_v16  ;;  %v6882_v33 = vld [vmem:[#allocation2 + $0x97] sm:$0xff]  ;;  %v6888_v35 = vld [vmem:[%s7443_s1 + $0x11] ss:$0 sm:$0xff]  ;;  %v8029_v44 = vld [vmem:[#allocation72_spill] sm:$0xff] }
 0x1ac   : > { %v631_v17 = vadd.f32 %v615_v21, %v575_v49  ;;  %v671_v5 = vmul.f32 %v6879_v16, %v4094_v23  ;;  %v2780_v48 = vmul.f32 %v2764_v34, %v2716_v50  ;;  %v686_v27 = vadd.f32 %v670_v52, %v630_v12  ;;  %8028 = vst [vmem:[#allocation71_spill] sm:$0xff] %v6882_v33  ;;  %v6897_v52 = vld [vmem:[%s7443_s1 + $0x9] ss:$0 sm:$0xff] }
 0x1ad   : > { %v727_v13 = vmul.f32 %v6882_v33, %v4100_v42  ;;  %v2781_v20 = vmul.f32 %v2765_v55, %v2717_v18  ;;  %v1143_v2 = vmul.f32 %v6888_v35, %v8029_v44  ;;  %v1451_v21 = vadd.f32 %v1435_v1, %v1409_v26  ;;  %v6905_v26 = vld [vmem:[#allocation2 + $0x98] sm:$0xff]  ;;  %v3653_v33 = vpop.f32.mrb[8].mxu0 }
 0x1ae   : > { %v1117_v49 = vadd.f32 %v1101_v41, %v1075_v60  ;;  %v1142_v23 = vmul.f32 %v6888_v35, %v8005_v6  ;;  %v809_v50 = vmul.f32 %v6897_v52, %v6677_v32  ;;  %v1450_v34 = vadd.f32 %v1434_v54, %v1408_v3  ;;  %8030 = vst [vmem:[#allocation98_spill] sm:$0xff] %v6905_v26  ;;  %v8031_v60 = vld [vmem:[#allocation15_spill] sm:$0xff]  ;;  %v6916_v3 = vld [vmem:[%s7443_s1 + $0x12] ss:$0 sm:$0xff] }
 0x1af   : > { %v1116_v12 = vadd.f32 %v1100_v47, %v1074_v7  ;;  %v2875_v42 = vmul.f32 %v6805_v8, %v6805_v8  ;;  %v2876_v18 = vmul.f32 %v6808_v19, %v6808_v19  ;;  %v687_v55 = vadd.f32 %v671_v5, %v631_v17  ;;  %v8032_v54 = vld [vmem:[#allocation18_spill] sm:$0xff]  ;;  %v2632_v19 = vpop.f32.mrb[9].mxu0 }
 0x1b0   : > { %v769_v6 = vmul.f32 %v6905_v26, %v4104_v15  ;;  %v808_v1 = vmul.f32 %v6897_v52, %v8029_v44  ;;  %v6911_v41 = vadd.f32 %v2780_v48, %v8031_v60  ;;  %v1185_v7 = vmul.f32 %v6916_v3, %v8032_v54  ;;  %v8033_v15 = vld [vmem:[#allocation17_spill] sm:$0xff] }
 0x1b1   : > { %v2899_v47 = vsel %vm271_vm0, %v2875_v42, 0.0  ;;  %v2902_v17 = vsel %vm271_vm0, %v2876_v18, 0.0  ;;  %v6923_v5 = vadd.f32 %v2781_v20, %v8033_v15  ;;  %v2680_v44 = vadd.f32 %v3653_v33, %v1451_v21 }
 0x1b2   : > { %v1159_v48 = vadd.f32 %v1143_v2, %v1117_v49  ;;  %v1184_v60 = vmul.f32 %v6916_v3, %v8009_v36  ;;  %2900 = vadd.xlane.f32.xlu0 %v2899_v47  ;;  %2903 = vadd.xlane.f32.xlu1 %v2902_v17  ;;  %v2679_v8 = vadd.f32 %v2632_v19, %v1450_v34  ;;  %v2824_v2 = vsel %vm271_vm0, %v6911_v41, 0.0 }
 0x1b3   : > { %v1158_v26 = vadd.f32 %v1142_v23, %v1116_v12  ;;  %v825_v16 = vadd.f32 %v809_v50, %v6726_v4  ;;  %v851_v42 = vmul.f32 %v6709_v14, %v6686_v24  ;;  %v2703_v18 = vadd.f32 %v6342_v40, %v2680_v44  ;;  %v8034_v50 = vld [vmem:[#allocation54_spill] sm:$0xff] }
 0x1b4   : > { %v824_v20 = vadd.f32 %v808_v1, %v6622_v59  ;;  %v850_v33 = vmul.f32 %v6686_v24, %v8032_v54  ;;  %v2702_v36 = vadd.f32 %v6342_v40, %v2679_v8  ;;  %v2827_v19 = vsel %vm271_vm0, %v6923_v5, 0.0  ;;  %v6946_v59 = vld [vmem:[%s7443_s1 + $0x13] ss:$0 sm:$0xff] }
 0x1b5   : > { %v2877_v4 = vmul.f32 %v6911_v41, %v6911_v41  ;;  %v2878_v21 = vmul.f32 %v6923_v5, %v6923_v5  ;;  %v2735_v49 = vmul.f32 0.70710677, %v2703_v18  ;;  %v1201_v23 = vadd.f32 %v1185_v7, %v1159_v48 }
 0x1b6   : > { %v1227_v34 = vmul.f32 %v6946_v59, %v8034_v50  ;;  %v1226_v40 = vmul.f32 %v6946_v59, %v8013_v51  ;;  %2825 = vadd.xlane.f32.xlu0 %v2824_v2  ;;  %2828 = vadd.xlane.f32.xlu1 %v2827_v19  ;;  %v2734_v8 = vmul.f32 0.70710677, %v2702_v36  ;;  %v1200_v12 = vadd.f32 %v1184_v60, %v1158_v26  ;;  %v8035_v26 = vld [vmem:[#allocation81_spill] sm:$0xff] }
 0x1b7   : > { %v867_v1 = vadd.f32 %v851_v42, %v825_v16  ;;  %v893_v54 = vmul.f32 %v6735_v11, %v6720_v29  ;;  %v743_v7 = vadd.f32 %v727_v13, %v687_v55  ;;  %3848 = verf.f32 %v2735_v49  ;;  %v6962_v16 = vld [vmem:[%s7443_s1 + $0x14] ss:$0 sm:$0xff]  ;;  %v6982_v49 = vld [vmem:[%s7443_s1 + $0x15] ss:$0 sm:$0xff] }
 0x1b8   : > { %v866_v47 = vadd.f32 %v850_v33, %v824_v20  ;;  %v892_v17 = vmul.f32 %v6720_v29, %v8034_v50  ;;  %v742_v15 = vadd.f32 %v6858_v43, %v686_v27  ;;  %3850 = verf.f32 %v2734_v8  ;;  %v6970_v20 = vld [vmem:[#allocation2 + $0x99] sm:$0xff] }
 0x1b9   : > { %v2905_v44 = vsel %vm271_vm0, %v2877_v4, 0.0  ;;  %v2908_v51 = vsel %vm271_vm0, %v2878_v21, 0.0  ;;  %v1243_v48 = vadd.f32 %v1227_v34, %v1201_v23  ;;  %v1269_v13 = vmul.f32 %v6962_v16, %v8035_v26  ;;  %v6990_v8 = vld [vmem:[#allocation2 + $0x9a] sm:$0xff] }
 0x1ba   : > { %2906 = vadd.xlane.f32.xlu0 %v2905_v44  ;;  %2909 = vadd.xlane.f32.xlu1 %v2908_v51  ;;  %v1242_v55 = vadd.f32 %v1226_v40, %v1200_v12  ;;  %v1268_v43 = vmul.f32 %v6962_v16, %v8015_v9  ;;  %v909_v27 = vadd.f32 %v893_v54, %v867_v1  ;;  %v2718_v51 = vmul.f32 0.5, %v2702_v36 }
 0x1bb   : > { %v935_v60 = vmul.f32 %v6758_v46, %v6743_v57  ;;  %v785_v42 = vadd.f32 %v769_v6, %v743_v7  ;;  %v811_v33 = vmul.f32 %v6970_v20, %v6897_v52  ;;  %v908_v2 = vadd.f32 %v892_v17, %v866_v47  ;;  %v8036_v6 = vld [vmem:[#allocation37_spill] sm:$0xff]  ;;  %v6996_v7 = vld [vmem:[#allocation2 + $0x9b] sm:$0xff] }
 0x1bc   : > { %v934_v19 = vmul.f32 %v6758_v46, %v8035_v26  ;;  %v784_v4 = vadd.f32 %v6877_v30, %v742_v15  ;;  %v810_v21 = vmul.f32 %v6897_v52, %v6749_v39  ;;  %v1285_v9 = vadd.f32 %v1269_v13, %v1243_v48  ;;  %v7005_v26 = vld [vmem:[%s7443_s1 + $0x16] ss:$0 sm:$0xff]  ;;  %v8037_v13 = vld [vmem:[#allocation89_spill] sm:$0xff] }
 0x1bd   : > { %v1311_v23 = vmul.f32 %v6982_v49, %v8036_v6  ;;  %v1284_v50 = vadd.f32 %v1268_v43, %v1242_v55  ;;  %v1310_v34 = vmul.f32 %v6982_v49, %v8017_v10  ;;  %v951_v40 = vadd.f32 %v935_v60, %v909_v27 }
 0x1be   : > { %v977_v30 = vmul.f32 %v6815_v61, %v6776_v63  ;;  %v853_v52 = vmul.f32 %v6990_v8, %v6686_v24  ;;  %v950_v12 = vadd.f32 %v934_v19, %v908_v2  ;;  %v976_v1 = vmul.f32 %v6776_v63, %v8036_v6 }
 0x1bf   : > { %v827_v54 = vadd.f32 %v811_v33, %v785_v42  ;;  %v895_v47 = vmul.f32 %v6996_v7, %v6720_v29  ;;  %v2719_v10 = vmul.f32 0.5, %v2703_v18  ;;  %v826_v17 = vadd.f32 %v810_v21, %v784_v4  ;;  %v7015_v4 = vld [vmem:[#allocation2 + $0x9c] sm:$0xff] }
 0x1c0   : > { %v852_v15 = vmul.f32 %v6762_v62, %v6686_v24  ;;  %v1327_v48 = vadd.f32 %v1311_v23, %v1285_v9  ;;  %v1353_v55 = vmul.f32 %v7005_v26, %v8037_v13  ;;  %v1352_v43 = vmul.f32 %v7005_v26, %v8019_v38 }
 0x1c1   : > { %v3849_v44 = vpop.eup %3848  ;;  %v1326_v60 = vadd.f32 %v1310_v34, %v1284_v50  ;;  %v993_v42 = vadd.f32 %v977_v30, %v951_v40  ;;  %v1019_v24 = vmul.f32 %v6821_v28, %v6798_v53  ;;  %v992_v33 = vadd.f32 %v976_v1, %v950_v12  ;;  %v7024_v34 = vld [vmem:[%s7443_s1 + $0x17] ss:$0 sm:$0xff]  ;;  %v8038_v40 = vld [vmem:[#allocation16_spill] sm:$0xff] }
 0x1c2   : > { %v3851_v27 = vpop.eup %3850  ;;  %v2767_v18 = vadd.f32 1.0, %v3849_v44  ;;  %v1018_v2 = vmul.f32 %v6798_v53, %v8037_v13  ;;  %v869_v19 = vadd.f32 %v853_v52, %v827_v54  ;;  %v937_v21 = vmul.f32 %v7015_v4, %v6758_v46  ;;  %v8039_v54 = vld [vmem:[#allocation21_spill] sm:$0xff] }
 0x1c3   : > { %v2766_v36 = vadd.f32 1.0, %v3851_v27  ;;  %v868_v38 = vadd.f32 %v852_v15, %v826_v17  ;;  %v894_v6 = vmul.f32 %v6780_v22, %v6720_v29  ;;  %v1369_v50 = vadd.f32 %v1353_v55, %v1327_v48  ;;  %v7046_v27 = vld [vmem:[#allocation2 + $0x9d] sm:$0xff] }
 0x1c4   : > { %v2783_v9 = vmul.f32 %v2767_v18, %v2719_v10  ;;  %v1395_v30 = vmul.f32 %v7024_v34, %v8038_v40  ;;  %v1394_v52 = vmul.f32 %v7024_v34, %v8025_v0  ;;  %v1368_v12 = vadd.f32 %v1352_v43, %v1326_v60 }
 0x1c5   : > { %v2782_v23 = vmul.f32 %v2766_v36, %v2718_v51  ;;  %v1061_v1 = vmul.f32 %v6855_v31, %v6838_v25  ;;  %v1060_v29 = vmul.f32 %v6838_v25, %v8038_v40  ;;  %v1035_v17 = vadd.f32 %v1019_v24, %v993_v42  ;;  %v8040_v51 = vld [vmem:[#allocation20_spill] sm:$0xff]  ;;  %v8041_v24 = vld [vmem:[#allocation50_spill] sm:$0xff] }
 0x1c6   : > { %v7035_v10 = vadd.f32 %v2783_v9, %v8039_v54  ;;  %v1034_v15 = vadd.f32 %v1018_v2, %v992_v33  ;;  %v911_v44 = vadd.f32 %v895_v47, %v869_v19  ;;  %v910_v13 = vadd.f32 %v894_v6, %v868_v38  ;;  %v4122_v33 = vld [vmem:[#allocation2 + $0x80] sm:$0xff] }
 0x1c7   : > { %v7038_v48 = vadd.f32 %v2782_v23, %v8040_v51  ;;  %v936_v0 = vmul.f32 %v6827_v58, %v6758_v46  ;;  %v979_v18 = vmul.f32 %v7046_v27, %v6776_v63  ;;  %v1411_v42 = vadd.f32 %v1395_v30, %v1369_v50  ;;  %v7057_v46 = vld [vmem:[%s7443_s1 + $0x18] ss:$0 sm:$0xff] }
 0x1c8   : > { %v2833_v55 = vsel %vm271_vm0, %v7035_v10, 0.0  ;;  %v2880_v43 = vmul.f32 %v7035_v10, %v7035_v10  ;;  %v1437_v36 = vmul.f32 %v7057_v46, %v8041_v24  ;;  %v1436_v2 = vmul.f32 %v4122_v33, %v7057_v46 }
 0x1c9   : > { %v2830_v47 = vsel %vm271_vm0, %v7038_v48, 0.0  ;;  %2834 = vadd.xlane.f32.xlu1 %v2833_v55  ;;  %v2879_v60 = vmul.f32 %v7038_v48, %v7038_v48  ;;  %v1103_v19 = vmul.f32 %v6866_v45, %v6728_v56  ;;  %v1410_v9 = vadd.f32 %v1394_v52, %v1368_v12  ;;  %v7070_v55 = vld [vmem:[#allocation2 + $0x9e] sm:$0xff] }
 0x1ca   : > { %2831 = vadd.xlane.f32.xlu0 %v2830_v47  ;;  %v1077_v38 = vadd.f32 %v1061_v1, %v1035_v17  ;;  %v1102_v6 = vmul.f32 %v6866_v45, %v8041_v24  ;;  %v953_v23 = vadd.f32 %v937_v21, %v911_v44  ;;  %v1076_v50 = vadd.f32 %v1060_v29, %v1034_v15  ;;  %v7080_v47 = vld [vmem:[#allocation2 + $0x9f] sm:$0xff] }
 0x1cb   : > { %v952_v40 = vadd.f32 %v936_v0, %v910_v13  ;;  %v978_v30 = vmul.f32 %v6848_v37, %v6776_v63  ;;  %v2914_v54 = vsel %vm271_vm0, %v2880_v43, 0.0  ;;  %v2911_v51 = vsel %vm271_vm0, %v2879_v60, 0.0  ;;  %v8042_v13 = vld [vmem:[#allocation69_spill] sm:$0xff]  ;;  %v3656_v43 = vpop.f32.mrb[10].mxu0 }
 0x1cc   : > { %v1021_v52 = vmul.f32 %v7070_v55, %v6798_v53  ;;  %v1453_v12 = vadd.f32 %v1437_v36, %v1411_v42  ;;  %v1452_v1 = vadd.f32 %v1436_v2, %v1410_v9  ;;  %v1119_v17 = vadd.f32 %v1103_v19, %v1077_v38  ;;  %v2642_v24 = vpop.f32.mrb[11].mxu0  ;;  %v8043_v38 = vld [vmem:[#allocation71_spill] sm:$0xff] }
 0x1cd   : > { %2915 = vadd.xlane.f32.xlu1 %v2914_v54  ;;  %v1145_v21 = vmul.f32 %v6888_v35, %v6749_v39  ;;  %v995_v29 = vadd.f32 %v979_v18, %v953_v23  ;;  %v1118_v15 = vadd.f32 %v1102_v6, %v1076_v50  ;;  %v1144_v63 = vmul.f32 %v6888_v35, %v6677_v32  ;;  %v7097_v23 = vld [vmem:[#allocation2 + $0xa0] sm:$0xff] }
 0x1ce   : > { %2912 = vadd.xlane.f32.xlu0 %v2911_v51  ;;  %v994_v44 = vadd.f32 %v978_v30, %v952_v40  ;;  %v1020_v0 = vmul.f32 %v8042_v13, %v6798_v53  ;;  %v1063_v60 = vmul.f32 %v7080_v47, %v6838_v25  ;;  %v2682_v42 = vadd.f32 %v3656_v43, %v1453_v12  ;;  %v7091_v53 = vld [vmem:[%s7445_s3] ss:$0 sm:$0xff] }
 0x1cf   : > { %v1187_v39 = vmul.f32 %v6916_v3, %v6762_v62  ;;  %v2681_v18 = vadd.f32 %v2642_v24, %v1452_v1  ;;  %v1161_v36 = vadd.f32 %v1145_v21, %v1119_v17  ;;  %v1186_v32 = vmul.f32 %v6916_v3, %v6709_v14  ;;  %v8044_v1 = vld [vmem:[#allocation98_spill] sm:$0xff]  ;;  %v4128_v24 = vld [vmem:[#allocation2 + $0xa2] sm:$0xff] }
 0x1d0   : > { %v1037_v33 = vadd.f32 %v1021_v52, %v995_v29  ;;  %v2705_v2 = vadd.f32 %v7091_v53, %v2682_v42  ;;  %v1160_v19 = vadd.f32 %v1144_v63, %v1118_v15  ;;  %v1036_v9 = vadd.f32 %v1020_v0, %v994_v44  ;;  %v4127_v63 = vld [vmem:[#allocation2 + $0xa1] sm:$0xff] }
 0x1d1   : > { %v1062_v6 = vmul.f32 %v8043_v38, %v6838_v25  ;;  %v2704_v62 = vadd.f32 %v7091_v53, %v2681_v18  ;;  %v1105_v14 = vmul.f32 %v7097_v23, %v6866_v45  ;;  %v1229_v40 = vmul.f32 %v6946_v59, %v6780_v22 }
 0x1d2   : > { %v2737_v50 = vmul.f32 0.70710677, %v2705_v2  ;;  %v1203_v54 = vadd.f32 %v1187_v39, %v1161_v36  ;;  %v1228_v51 = vmul.f32 %v6946_v59, %v6735_v11  ;;  %v1079_v52 = vadd.f32 %v1063_v60, %v1037_v33 }
 0x1d3   : > { %v2736_v30 = vmul.f32 0.70710677, %v2704_v62  ;;  %v1202_v12 = vadd.f32 %v1186_v32, %v1160_v19  ;;  %v1078_v25 = vadd.f32 %v1062_v6, %v1036_v9  ;;  %v1104_v17 = vmul.f32 %v8044_v1, %v6866_v45 }
 0x1d4   : > { %3852 = verf.f32 %v2737_v50  ;;  %v1245_v21 = vadd.f32 %v1229_v40, %v1203_v54  ;;  %v1271_v29 = vmul.f32 %v6962_v16, %v6827_v58  ;;  %v1121_v15 = vadd.f32 %v1105_v14, %v1079_v52  ;;  %v4129_v50 = vld [vmem:[#allocation2 + $0xa3] sm:$0xff] }
 0x1d5   : > { %3854 = verf.f32 %v2736_v30  ;;  %v1147_v22 = vmul.f32 %v4127_v63, %v6888_v35  ;;  %v1244_v44 = vadd.f32 %v1228_v51, %v1202_v12  ;;  %v1270_v11 = vmul.f32 %v6962_v16, %v6743_v57  ;;  %v4130_v52 = vld [vmem:[#allocation2 + $0xa4] sm:$0xff] }
 0x1d6   : > { %v1120_v0 = vadd.f32 %v1104_v17, %v1078_v25  ;;  %v1146_v43 = vmul.f32 %v6970_v20, %v6888_v35  ;;  %v1287_v60 = vadd.f32 %v1271_v29, %v1245_v21  ;;  %v1313_v45 = vmul.f32 %v6982_v49, %v6848_v37  ;;  %v8045_v25 = vld [vmem:[#allocation31_spill] sm:$0xff] }
 0x1d7   : > { %v1163_v42 = vadd.f32 %v1147_v22, %v1121_v15  ;;  %v1189_v58 = vmul.f32 %v4128_v24, %v6916_v3  ;;  %v1286_v39 = vadd.f32 %v1270_v11, %v1244_v44  ;;  %v1312_v18 = vmul.f32 %v6982_v49, %v6815_v61  ;;  %v4131_v11 = vld [vmem:[#allocation2 + $0xa5] sm:$0xff] }
 0x1d8   : > { %v1162_v36 = vadd.f32 %v1146_v43, %v1120_v0  ;;  %v1188_v57 = vmul.f32 %v6990_v8, %v6916_v3  ;;  %v2721_v32 = vmul.f32 0.5, %v2705_v2  ;;  %v2720_v19 = vmul.f32 0.5, %v2704_v62 }
 0x1d9   : > { %v1355_v35 = vmul.f32 %v7005_v26, %v8042_v13  ;;  %v1354_v37 = vmul.f32 %v7005_v26, %v6821_v28  ;;  %v1329_v6 = vadd.f32 %v1313_v45, %v1287_v60  ;;  %v1205_v14 = vadd.f32 %v1189_v58, %v1163_v42 }
 0x1da   : > { %v1231_v61 = vmul.f32 %v4129_v50, %v6946_v59  ;;  %v1328_v30 = vadd.f32 %v1312_v18, %v1286_v39  ;;  %v1204_v54 = vadd.f32 %v1188_v57, %v1162_v36  ;;  %v1230_v3 = vmul.f32 %v6996_v7, %v6946_v59  ;;  %v8046_v7 = vld [vmem:[#allocation26_spill] sm:$0xff]  ;;  %v4132_v18 = vld [vmem:[#allocation2 + $0xa6] sm:$0xff] }
 0x1db   : > { %v1397_v13 = vmul.f32 %v7024_v34, %v8043_v38  ;;  %v1396_v28 = vmul.f32 %v7024_v34, %v6855_v31  ;;  %v1371_v62 = vadd.f32 %v1355_v35, %v1329_v6  ;;  %v1273_v12 = vmul.f32 %v4130_v52, %v6962_v16 }
 0x1dc   : > { %v1247_v51 = vadd.f32 %v1231_v61, %v1205_v14  ;;  %v1370_v21 = vadd.f32 %v1354_v37, %v1328_v30  ;;  %v1246_v29 = vadd.f32 %v1230_v3, %v1204_v54  ;;  %v1272_v59 = vmul.f32 %v7015_v4, %v6962_v16  ;;  %v4134_v30 = vld [vmem:[#allocation2 + $0xa8] sm:$0xff] }
 0x1dd   : > { %v1413_v44 = vadd.f32 %v1397_v13, %v1371_v62  ;;  %v1439_v16 = vmul.f32 %v7057_v46, %v8044_v1  ;;  %v1315_v0 = vmul.f32 %v4131_v11, %v6982_v49  ;;  %v1438_v60 = vmul.f32 %v7057_v46, %v6728_v56 }
 0x1de   : > { %v3853_v33 = vpop.eup %3852  ;;  %v1289_v4 = vadd.f32 %v1273_v12, %v1247_v51  ;;  %v1412_v43 = vadd.f32 %v1396_v28, %v1370_v21  ;;  %v1288_v45 = vadd.f32 %v1272_v59, %v1246_v29  ;;  %v1314_v42 = vmul.f32 %v7046_v27, %v6982_v49  ;;  %v4133_v27 = vld [vmem:[#allocation2 + $0xa7] sm:$0xff] }
 0x1df   : > { %v3855_v20 = vpop.eup %3854  ;;  %v2769_v9 = vadd.f32 1.0, %v3853_v33  ;;  %v1455_v39 = vadd.f32 %v1439_v16, %v1413_v44  ;;  %v1357_v36 = vmul.f32 %v4132_v18, %v7005_v26  ;;  %v1356_v56 = vmul.f32 %v7070_v55, %v7005_v26 }
 0x1e0   : > { %v2768_v40 = vadd.f32 1.0, %v3855_v20  ;;  %v1331_v1 = vadd.f32 %v1315_v0, %v1289_v4  ;;  %v1454_v57 = vadd.f32 %v1438_v60, %v1412_v43  ;;  %v1399_v37 = vmul.f32 %v4133_v27, %v7024_v34 }
 0x1e1   : > { %v2785_v8 = vmul.f32 %v2769_v9, %v2721_v32  ;;  %v1330_v32 = vadd.f32 %v1314_v42, %v1288_v45  ;;  %v1398_v6 = vmul.f32 %v7080_v47, %v7024_v34  ;;  %v1441_v26 = vmul.f32 %v4134_v30, %v7057_v46 }
 0x1e2   : > { %v2784_v2 = vmul.f32 %v2768_v40, %v2720_v19  ;;  %v1373_v49 = vadd.f32 %v1357_v36, %v1331_v1  ;;  %v1440_v3 = vmul.f32 %v7097_v23, %v7057_v46  ;;  %v8049_v36 = vld [vmem:[#allocation52_spill] sm:$0xff] }
 0x1e3   : > { %v7134_v17 = vadd.f32 %v2785_v8, %v8045_v25  ;;  %v1372_v9 = vadd.f32 %v1356_v56, %v1330_v32  ;;  %v8050_v32 = vld [vmem:[#allocation43_spill] sm:$0xff] }
 0x1e4   : > { %v7139_v15 = vadd.f32 %v2784_v2, %v8046_v7  ;;  %v1415_v40 = vadd.f32 %v1399_v37, %v1373_v49 }
 0x1e5   : > { %v2839_v38 = vsel %vm271_vm0, %v7134_v17, 0.0  ;;  %v2882_v31 = vmul.f32 %v7134_v17, %v7134_v17  ;;  %v1414_v54 = vadd.f32 %v1398_v6, %v1372_v9 }
 0x1e6   : > { %v2836_v63 = vsel %vm271_vm0, %v7139_v15, 0.0  ;;  %2840 = vadd.xlane.f32.xlu1 %v2839_v38  ;;  %v2881_v22 = vmul.f32 %v7139_v15, %v7139_v15  ;;  %v1457_v8 = vadd.f32 %v1441_v26, %v1415_v40 }
 0x1e7   : > { %2837 = vadd.xlane.f32.xlu0 %v2836_v63  ;;  %v2920_v24 = vsel %vm271_vm0, %v2882_v31, 0.0  ;;  %v1456_v2 = vadd.f32 %v1440_v3, %v1414_v54  ;;  %v8047_v31 = vld [vmem:[#allocation34_spill] sm:$0xff] }
 0x1e8   : > { %v2917_v58 = vsel %vm271_vm0, %v2881_v22, 0.0  ;;  %v8048_v22 = vld [vmem:[#allocation32_spill] sm:$0xff] }
 0x1ea   : > { %2921 = vadd.xlane.f32.xlu1 %v2920_v24 }
 0x1eb   : > { %2918 = vadd.xlane.f32.xlu0 %v2917_v58  ;;  %v3659_v33 = vpop.f32.mrb[12].mxu0 }
 0x1ec   : > { %v2684_v19 = vadd.f32 %v3659_v33, %v1455_v39  ;;  %v2652_v35 = vpop.f32.mrb[13].mxu0 }
 0x1ed   : > { %v2683_v20 = vadd.f32 %v2652_v35, %v1454_v57 }
 0x1ee   : > { %v2707_v14 = vadd.f32 %v7091_v53, %v2684_v19 }
 0x1ef   : > { %v2706_v50 = vadd.f32 %v7091_v53, %v2683_v20 }
 0x1f0   : > { %v2739_v61 = vmul.f32 0.70710677, %v2707_v14  ;;  %v2723_v51 = vmul.f32 0.5, %v2707_v14 }
 0x1f1   : > { %v2738_v55 = vmul.f32 0.70710677, %v2706_v50  ;;  %v2722_v25 = vmul.f32 0.5, %v2706_v50 }
 0x1f2   : > { %3856 = verf.f32 %v2739_v61 }
 0x1f3   : > { %3858 = verf.f32 %v2738_v55 }
 0x1f7   : > { %v3662_v13 = vpop.f32.mrb[14].mxu0 }
 0x1f8   : > { %v2686_v34 = vadd.f32 %v3662_v13, %v1457_v8  ;;  %v2662_v47 = vpop.f32.mrb[15].mxu0 }
 0x1f9   : > { %v2685_v28 = vadd.f32 %v2662_v47, %v1456_v2 }
 0x1fa   : > { %v2709_v62 = vadd.f32 %v7091_v53, %v2686_v34 }
 0x1fb   : > { %v2708_v52 = vadd.f32 %v7091_v53, %v2685_v28 }
 0x1fc   : > { %v3857_v12 = vpop.eup %3856  ;;  %v2741_v21 = vmul.f32 0.70710677, %v2709_v62  ;;  %v2725_v0 = vmul.f32 0.5, %v2709_v62  ;;  %v8051_v62 = vld [vmem:[#allocation40_spill] sm:$0xff] }
 0x1fd   : > { %v3859_v29 = vpop.eup %3858  ;;  %v2771_v59 = vadd.f32 1.0, %v3857_v12  ;;  %v2740_v7 = vmul.f32 0.70710677, %v2708_v52  ;;  %v2724_v45 = vmul.f32 0.5, %v2708_v52  ;;  %v8052_v12 = vld [vmem:[#allocation82_spill] sm:$0xff] }
 0x1fe   : > { %v2770_v46 = vadd.f32 1.0, %v3859_v29  ;;  %3860 = verf.f32 %v2741_v21 }
 0x1ff   : > { %v2787_v23 = vmul.f32 %v2771_v59, %v2723_v51  ;;  %3862 = verf.f32 %v2740_v7 }
 0x200   : > { %v2786_v38 = vmul.f32 %v2770_v46, %v2722_v25 }
 0x201   : > { %v7172_v63 = vadd.f32 %v2787_v23, %v8047_v31 }
 0x202   : > { %v7175_v44 = vadd.f32 %v2786_v38, %v8048_v22 }
 0x203   : > { %v2845_v53 = vsel %vm271_vm0, %v7172_v63, 0.0  ;;  %v2884_v16 = vmul.f32 %v7172_v63, %v7172_v63 }
 0x204   : > { %v2842_v4 = vsel %vm271_vm0, %v7175_v44, 0.0  ;;  %2846 = vadd.xlane.f32.xlu1 %v2845_v53  ;;  %v2883_v11 = vmul.f32 %v7175_v44, %v7175_v44  ;;  %v3050_v53 = vld [vmem:[%s7446_s4 + $0x18] sm:$0xff] }
 0x205   : > { %2843 = vadd.xlane.f32.xlu0 %v2842_v4  ;;  %v2926_v43 = vsel %vm271_vm0, %v2884_v16, 0.0  ;;  %v2808_v33 = vpop.xlane.xlu0 %2807 }
 0x206   : > { %v2923_v42 = vsel %vm271_vm0, %v2883_v11, 0.0  ;;  %v2892_v37 = vpop.xlane.xlu1 %2891  ;;  %v2855_v6 = vmul.f32 0.03125, %v2808_v33 }
 0x207   : > { %v2936_v61 = vmul.f32 0.03125, %v2892_v37  ;;  %v3047_v37 = vld [vmem:[%s7446_s4] sm:$0xff] }
 0x208   : > { %v3861_v60 = vpop.eup %3860  ;;  %2927 = vadd.xlane.f32.xlu1 %v2926_v43  ;;  %v2951_v26 = vmul.f32 %v2855_v6, %v2855_v6  ;;  %v2983_v25 = vsub.f32 %v8052_v12, %v2855_v6  ;;  %3695 = vmatprep.mubr.msk.f32.mxu0 %vm271_vm0, %v3047_v37  ;;  %v3062_v37 = vld [vmem:[%s7447_s5 + $0x18] sm:$0xff] }
 0x209   : > { %v3863_v24 = vpop.eup %3862  ;;  %v2773_v58 = vadd.f32 1.0, %v3861_v60  ;;  %2924 = vadd.xlane.f32.xlu0 %v2923_v42 }
 0x20a   : > { %v2772_v39 = vadd.f32 1.0, %v3863_v24 }
 0x20b   : > { %v2789_v1 = vmul.f32 %v2773_v58, %v2725_v0  ;;  %v8055_v58 = vld [vmem:[#allocation29_spill] sm:$0xff] }
 0x20c   : > { %v2788_v18 = vmul.f32 %v2772_v39, %v2724_v45 }
 0x20d   : > { %v7188_v57 = vadd.f32 %v2789_v1, %v8049_v36 }
 0x20e   : > { %v7191_v56 = vadd.f32 %v2788_v18, %v8050_v32 }
 0x20f   : > { %v2851_v19 = vsel %vm271_vm0, %v7188_v57, 0.0  ;;  %v2886_v35 = vmul.f32 %v7188_v57, %v7188_v57 }
 0x210   : > { %v2848_v49 = vsel %vm271_vm0, %v7191_v56, 0.0  ;;  %2852 = vadd.xlane.f32.xlu1 %v2851_v19  ;;  %v2885_v27 = vmul.f32 %v7191_v56, %v7191_v56 }
 0x211   : > { %2849 = vadd.xlane.f32.xlu0 %v2848_v49  ;;  %v2932_v20 = vsel %vm271_vm0, %v2886_v35, 0.0  ;;  %v8056_v49 = vld [vmem:[#allocation95_spill] sm:$0xff] }
 0x212   : > { %v2929_v9 = vsel %vm271_vm0, %v2885_v27, 0.0 }
 0x214   : > { %2933 = vadd.xlane.f32.xlu1 %v2932_v20  ;;  %v3051_v20 = vld [vmem:[%s7446_s4 + $0x20] sm:$0xff] }
 0x215   : > { %2930 = vadd.xlane.f32.xlu0 %v2929_v9  ;;  %3701 = vmatprep.mubr.msk.f32.mxu1 %vm271_vm0, %v3051_v20  ;;  %v3070_v20 = vld [vmem:[%s7447_s5 + $0x58] sm:$0xff] }
 0x21c   : > { %v2811_v14 = vpop.xlane.xlu0 %2810 }
 0x21d   : > { %v2856_v50 = vmul.f32 0.03125, %v2811_v14 }
 0x21f   : > { %v2952_v40 = vmul.f32 %v2856_v50, %v2856_v50  ;;  %v2889_v30 = vpop.xlane.xlu1 %2888  ;;  %v2984_v51 = vsub.f32 %v8051_v62, %v2856_v50 }
 0x220   : > { %v2935_v55 = vmul.f32 0.03125, %v2889_v30  ;;  %v2814_v13 = vpop.xlane.xlu0 %2813 }
 0x221   : > { %v2968_v54 = vsub.f32 %v2936_v61, %v2952_v40  ;;  %v2857_v47 = vmul.f32 0.03125, %v2814_v13 }
 0x222   : > { %v2967_v3 = vsub.f32 %v2935_v55, %v2951_v26 }
 0x223   : > { %v3000_v8 = vadd.f32 1e-05, %v2968_v54  ;;  %v2817_v34 = vpop.xlane.xlu1 %2816  ;;  %v2953_v59 = vmul.f32 %v2857_v47, %v2857_v47  ;;  %v2985_v39 = vsub.f32 %v8055_v58, %v2857_v47 }
 0x224   : > { %v2999_v2 = vadd.f32 1e-05, %v2967_v3  ;;  %v2858_v28 = vmul.f32 0.03125, %v2817_v34 }
 0x225   : > { %3864 = vrsqrt.f32 %v3000_v8 }
 0x226   : > { %3866 = vrsqrt.f32 %v2999_v2  ;;  %v2954_v23 = vmul.f32 %v2858_v28, %v2858_v28  ;;  %v2986_v27 = vsub.f32 %v8056_v49, %v2858_v28 }
 0x22f   : > { %v3865_v52 = vpop.eup %3864 }
 0x230   : > { %v3867_v21 = vpop.eup %3866  ;;  %v3032_v29 = vmul.f32 %v3865_v52, %v2984_v51  ;;  %v2895_v7 = vpop.xlane.xlu0 %2894 }
 0x231   : > { %v2898_v46 = vpop.xlane.xlu1 %2897  ;;  %v2937_v38 = vmul.f32 0.03125, %v2895_v7  ;;  %v3031_v22 = vmul.f32 %v3867_v21, %v2983_v25  ;;  %v8057_v21 = vld [vmem:[#allocation94_spill] sm:$0xff]  ;;  %v8058_v7 = vld [vmem:[#allocation33_spill] sm:$0xff] }
 0x232   : > { %v2938_v31 = vmul.f32 0.03125, %v2898_v46 }
 0x233   : > { %v2969_v16 = vsub.f32 %v2937_v38, %v2953_v59  ;;  %v3721_v11 = vpack.c.bf16 %v3032_v29, %v3031_v22 }
 0x234   : > { %v2970_v4 = vsub.f32 %v2938_v31, %v2954_v23  ;;  %v2820_v60 = vpop.xlane.xlu0 %2819 }
 0x235   : > { %v3001_v0 = vadd.f32 1e-05, %v2969_v16  ;;  %3723 = vmatprep.subr.msk.bf16.mxu0 %vm7207_vm2, %v3721_v11  ;;  %3769 = vmatprep.subr.msk.bf16.mxu1 %vm7207_vm2, %v3721_v11  ;;  %v2823_v45 = vpop.xlane.xlu1 %2822  ;;  %v2859_v42 = vmul.f32 0.03125, %v2820_v60  ;;  %v4200_v16 = vmov 0  }
 0x236   : > { %v3002_v43 = vadd.f32 1e-05, %v2970_v4  ;;  %3726 = vmatpush3.bf16.xpose.msk.msra.mxu0 %vm7207_vm2, %v3721_v11  ;;  %3777 = vmatpush3.bf16.xpose.msk.msra.mxu1 %vm7207_vm2, %v3721_v11  ;;  %v2860_v24 = vmul.f32 0.03125, %v2823_v45  ;;  %v3060_v4 = vld [vmem:[%s7447_s5 + $0x8] sm:$0xff] }
 0x237   : > { %3868 = vrsqrt.f32 %v3001_v0  ;;  %v2955_v36 = vmul.f32 %v2859_v42, %v2859_v42  ;;  %v2987_v29 = vsub.f32 %v8057_v21, %v2859_v42  ;;  %3831 = vset.pattern.permute.xlu1 %v4200_v16  ;;  %3830 = vset.pattern.permute.xlu0 %v4200_v16 }
 0x238   : > { %3870 = vrsqrt.f32 %v3002_v43  ;;  %v2956_v32 = vmul.f32 %v2860_v24, %v2860_v24  ;;  %v2988_v46 = vsub.f32 %v8058_v7, %v2860_v24  ;;  %v3059_v43 = vld [vmem:[%s7447_s5] sm:$0xff]  ;;  %3078 = vperm.xlu1 %3831, %v3060_v4  }
 0x239   : > { %3073 = vperm.xlu0 %3830, %v3059_v43  }
 0x23f   : > { %v2901_v1 = vpop.xlane.xlu0 %2900  ;;  %v2904_v18 = vpop.xlane.xlu1 %2903 }
 0x240   : > { %v2939_v33 = vmul.f32 0.03125, %v2901_v1  ;;  %v2940_v19 = vmul.f32 0.03125, %v2904_v18  ;;  %v3061_v1 = vld [vmem:[%s7447_s5 + $0x10] sm:$0xff]  ;;  %v3068_v18 = vld [vmem:[%s7447_s5 + $0x48] sm:$0xff] }
 0x241   : > { %v3869_v35 = vpop.eup %3868  ;;  %3083 = vperm.xlu1 %3831, %v3061_v1   ;;  %3118 = vperm.xlu0 %3830, %v3068_v18  }
 0x242   : > { %v3871_v9 = vpop.eup %3870  ;;  %v2971_v6 = vsub.f32 %v2939_v33, %v2955_v36  ;;  %v2972_v14 = vsub.f32 %v2940_v19, %v2956_v32  ;;  %v3033_v50 = vmul.f32 %v3869_v35, %v2985_v39 }
 0x243   : > { %v2826_v61 = vpop.xlane.xlu0 %2825  ;;  %v2829_v40 = vpop.xlane.xlu1 %2828  ;;  %v3034_v30 = vmul.f32 %v3871_v9, %v2986_v27 }
 0x244   : > { %v3003_v26 = vadd.f32 1e-05, %v2971_v6  ;;  %v3004_v55 = vadd.f32 1e-05, %v2972_v14  ;;  %v2861_v54 = vmul.f32 0.03125, %v2826_v61  ;;  %v2862_v3 = vmul.f32 0.03125, %v2829_v40 }
 0x245   : > { %v3727_v8 = vpack.c.bf16 %v3034_v30, %v3033_v50  ;;  %3088 = vperm.xlu1 %3831, %v3062_v37   ;;  %3128 = vperm.xlu0 %3830, %v3070_v20   ;;  %v3063_v61 = vld [vmem:[%s7447_s5 + $0x20] sm:$0xff]  ;;  %v3064_v40 = vld [vmem:[%s7447_s5 + $0x28] sm:$0xff]  ;;  %v3065_v30 = vld [vmem:[%s7447_s5 + $0x30] sm:$0xff] }
 0x246   : > { %3872 = vrsqrt.f32 %v3003_v26  ;;  %v2957_v34 = vmul.f32 %v2861_v54, %v2861_v54  ;;  %v2958_v47 = vmul.f32 %v2862_v3, %v2862_v3  ;;  %v2989_v11 = vsub.f32 %v6911_v41, %v2861_v54 }
 0x247   : > { %3874 = vrsqrt.f32 %v3004_v55  ;;  %v2907_v2 = vpop.xlane.xlu0 %2906  ;;  %v2910_v13 = vpop.xlane.xlu1 %2909  ;;  %3729 = vmatprep.subr.msk.bf16.mxu0 %vm7207_vm2, %v3727_v8  ;;  %3770 = vmatprep.subr.msk.bf16.mxu1 %vm7207_vm2, %v3727_v8  ;;  %v2990_v45 = vsub.f32 %v6923_v5, %v2862_v3 }
 0x248   : > { %v2941_v28 = vmul.f32 0.03125, %v2907_v2  ;;  %v2942_v62 = vmul.f32 0.03125, %v2910_v13  ;;  %3732 = vmatpush3.bf16.xpose.msk.msra.mxu0 %vm7207_vm2, %v3727_v8  ;;  %3778 = vmatpush3.bf16.xpose.msk.msra.mxu1 %vm7207_vm2, %v3727_v8  ;;  %v3066_v2 = vld [vmem:[%s7447_s5 + $0x38] sm:$0xff] }
 0x249   : > { %3093 = vperm.xlu1 %3831, %v3063_v61  }
 0x24a   : > { %v2973_v51 = vsub.f32 %v2941_v28, %v2957_v34  ;;  %v2974_v52 = vsub.f32 %v2942_v62, %v2958_v47  ;;  %v3067_v47 = vld [vmem:[%s7447_s5 + $0x40] sm:$0xff] }
 0x24c   : > { %v3005_v12 = vadd.f32 1e-05, %v2973_v51  ;;  %v3006_v25 = vadd.f32 1e-05, %v2974_v52 }
 0x24d   : > { %3098 = vperm.xlu1 %3831, %v3064_v40  }
 0x24e   : > { %3876 = vrsqrt.f32 %v3005_v12 }
 0x24f   : > { %3878 = vrsqrt.f32 %v3006_v25 }
 0x250   : > { %v3873_v59 = vpop.eup %3872 }
 0x251   : > { %v3875_v23 = vpop.eup %3874  ;;  %v3035_v38 = vmul.f32 %v3873_v59, %v2987_v29  ;;  %3103 = vperm.xlu1 %3831, %v3065_v30  }
 0x252   : > { %v3036_v31 = vmul.f32 %v3875_v23, %v2988_v46 }
 0x254   : > { %v3733_v22 = vpack.c.bf16 %v3036_v31, %v3035_v38 }
 0x255   : > { %3108 = vperm.xlu1 %3831, %v3066_v2  }
 0x256   : > { %3735 = vmatprep.subr.msk.bf16.mxu0 %vm7207_vm2, %v3733_v22  ;;  %3771 = vmatprep.subr.msk.bf16.mxu1 %vm7207_vm2, %v3733_v22  ;;  %v2835_v0 = vpop.xlane.xlu1 %2834 }
 0x257   : > { %3738 = vmatpush3.bf16.xpose.msk.msra.mxu0 %vm7207_vm2, %v3733_v22  ;;  %3779 = vmatpush3.bf16.xpose.msk.msra.mxu1 %vm7207_vm2, %v3733_v22  ;;  %v2832_v42 = vpop.xlane.xlu0 %2831  ;;  %v2864_v24 = vmul.f32 0.03125, %v2835_v0 }
 0x258   : > { %v3877_v60 = vpop.eup %3876  ;;  %v2863_v41 = vmul.f32 0.03125, %v2832_v42 }
 0x259   : > { %v3879_v58 = vpop.eup %3878  ;;  %v3037_v39 = vmul.f32 %v3877_v60, %v2989_v11  ;;  %v2960_v33 = vmul.f32 %v2864_v24, %v2864_v24  ;;  %v2992_v26 = vsub.f32 %v7035_v10, %v2864_v24  ;;  %3113 = vperm.xlu1 %3831, %v3067_v47   ;;  %v3069_v10 = vld [vmem:[%s7447_s5 + $0x50] sm:$0xff] }
 0x25a   : > { %v3038_v36 = vmul.f32 %v3879_v58, %v2990_v45  ;;  %v2916_v32 = vpop.xlane.xlu1 %2915  ;;  %v2959_v49 = vmul.f32 %v2863_v41, %v2863_v41  ;;  %v2991_v54 = vsub.f32 %v7038_v48, %v2863_v41 }
 0x25b   : > { %v2913_v19 = vpop.xlane.xlu0 %2912  ;;  %v2944_v5 = vmul.f32 0.03125, %v2916_v32 }
 0x25c   : > { %v3739_v35 = vpack.c.bf16 %v3038_v36, %v3037_v39  ;;  %v2943_v27 = vmul.f32 0.03125, %v2913_v19 }
 0x25d   : > { %v2976_v9 = vsub.f32 %v2944_v5, %v2960_v33  ;;  %3123 = vperm.xlu1 %3831, %v3069_v10  }
 0x25e   : > { %3741 = vmatprep.subr.msk.bf16.mxu0 %vm7207_vm2, %v3739_v35  ;;  %3772 = vmatprep.subr.msk.bf16.mxu1 %vm7207_vm2, %v3739_v35  ;;  %v2975_v6 = vsub.f32 %v2943_v27, %v2959_v49 }
 0x25f   : > { %3744 = vmatpush3.bf16.xpose.msk.msra.mxu0 %vm7207_vm2, %v3739_v35  ;;  %3780 = vmatpush3.bf16.xpose.msk.msra.mxu1 %vm7207_vm2, %v3739_v35  ;;  %v3008_v14 = vadd.f32 1e-05, %v2976_v9 }
 0x260   : > { %v3007_v50 = vadd.f32 1e-05, %v2975_v6 }
 0x261   : > { %3880 = vrsqrt.f32 %v3008_v14 }
 0x262   : > { %3882 = vrsqrt.f32 %v3007_v50 }
 0x26b   : > { %v3881_v55 = vpop.eup %3880 }
 0x26c   : > { %v3883_v3 = vpop.eup %3882  ;;  %v3040_v8 = vmul.f32 %v3881_v55, %v2992_v26 }
 0x26d   : > { %v3039_v13 = vmul.f32 %v3883_v3, %v2991_v54 }
 0x26f   : > { %v3745_v34 = vpack.c.bf16 %v3040_v8, %v3039_v13 }
 0x271   : > { %3747 = vmatprep.subr.msk.bf16.mxu0 %vm7207_vm2, %v3745_v34  ;;  %3773 = vmatprep.subr.msk.bf16.mxu1 %vm7207_vm2, %v3745_v34 }
 0x272   : > { %3750 = vmatpush3.bf16.xpose.msk.msra.mxu0 %vm7207_vm2, %v3745_v34  ;;  %3781 = vmatpush3.bf16.xpose.msk.msra.mxu1 %vm7207_vm2, %v3745_v34 }
 0x273   : > { %v2841_v48 = vpop.xlane.xlu1 %2840 }
 0x274   : > { %v2838_v28 = vpop.xlane.xlu0 %2837  ;;  %v2866_v62 = vmul.f32 0.03125, %v2841_v48 }
 0x275   : > { %v2865_v51 = vmul.f32 0.03125, %v2838_v28 }
 0x276   : > { %v2962_v12 = vmul.f32 %v2866_v62, %v2866_v62  ;;  %v2994_v31 = vsub.f32 %v7134_v17, %v2866_v62  ;;  %v3049_v62 = vld [vmem:[%s7446_s4 + $0x10] sm:$0xff] }
 0x277   : > { %v2922_v52 = vpop.xlane.xlu1 %2921  ;;  %v2961_v29 = vmul.f32 %v2865_v51, %v2865_v51  ;;  %v2993_v16 = vsub.f32 %v7139_v15, %v2865_v51  ;;  %v3053_v51 = vld [vmem:[%s7446_s4 + $0x30] sm:$0xff] }
 0x278   : > { %v2919_v25 = vpop.xlane.xlu0 %2918  ;;  %v2946_v21 = vmul.f32 0.03125, %v2922_v52  ;;  %v3054_v52 = vld [vmem:[%s7446_s4 + $0x38] sm:$0xff] }
 0x279   : > { %v2945_v59 = vmul.f32 0.03125, %v2919_v25  ;;  %v3056_v25 = vld [vmem:[%s7446_s4 + $0x48] sm:$0xff] }
 0x27a   : > { %v2978_v7 = vsub.f32 %v2946_v21, %v2962_v12  ;;  %v3055_v12 = vld [vmem:[%s7446_s4 + $0x40] sm:$0xff]  ;;  %v3057_v21 = vld [vmem:[%s7446_s4 + $0x50] sm:$0xff] }
 0x27b   : > { %v2977_v46 = vsub.f32 %v2945_v59, %v2961_v29  ;;  %v3058_v29 = vld [vmem:[%s7446_s4 + $0x58] sm:$0xff] }
 0x27c   : > { %v3010_v23 = vadd.f32 1e-05, %v2978_v7 }
 0x27d   : > { %v3009_v38 = vadd.f32 1e-05, %v2977_v46 }
 0x27e   : > { %3884 = vrsqrt.f32 %v3010_v23 }
 0x27f   : > { %3886 = vrsqrt.f32 %v3009_v38 }
 0x288   : > { %v3885_v22 = vpop.eup %3884 }
 0x289   : > { %v3887_v4 = vpop.eup %3886  ;;  %v3042_v11 = vmul.f32 %v3885_v22, %v2994_v31 }
 0x28a   : > { %v3041_v0 = vmul.f32 %v3887_v4, %v2993_v16 }
 0x28c   : > { %v3751_v43 = vpack.c.bf16 %v3042_v11, %v3041_v0 }
 0x28e   : > { %3753 = vmatprep.subr.msk.bf16.mxu0 %vm7207_vm2, %v3751_v43  ;;  %3774 = vmatprep.subr.msk.bf16.mxu1 %vm7207_vm2, %v3751_v43 }
 0x28f   : > { %3756 = vmatpush3.bf16.xpose.msk.msra.mxu0 %vm7207_vm2, %v3751_v43  ;;  %3782 = vmatpush3.bf16.xpose.msk.msra.mxu1 %vm7207_vm2, %v3751_v43 }
 0x291   : > { %v2847_v17 = vpop.xlane.xlu1 %2846 }
 0x292   : > { %v2844_v60 = vpop.xlane.xlu0 %2843  ;;  %v2868_v45 = vmul.f32 0.03125, %v2847_v17 }
 0x293   : > { %v2867_v15 = vmul.f32 0.03125, %v2844_v60 }
 0x294   : > { %v2964_v24 = vmul.f32 %v2868_v45, %v2868_v45  ;;  %v2996_v61 = vsub.f32 %v7172_v63, %v2868_v45 }
 0x295   : > { %v2928_v42 = vpop.xlane.xlu1 %2927  ;;  %v2963_v39 = vmul.f32 %v2867_v15, %v2867_v15  ;;  %v2995_v26 = vsub.f32 %v7175_v44, %v2867_v15 }
 0x296   : > { %v2925_v58 = vpop.xlane.xlu0 %2924  ;;  %v2948_v41 = vmul.f32 0.03125, %v2928_v42 }
 0x297   : > { %v2947_v1 = vmul.f32 0.03125, %v2925_v58 }
 0x298   : > { %v2980_v18 = vsub.f32 %v2948_v41, %v2964_v24 }
 0x299   : > { %v2979_v36 = vsub.f32 %v2947_v1, %v2963_v39 }
 0x29a   : > { %v3012_v32 = vadd.f32 1e-05, %v2980_v18 }
 0x29b   : > { %v3011_v33 = vadd.f32 1e-05, %v2979_v36 }
 0x29c   : > { %3888 = vrsqrt.f32 %v3012_v32 }
 0x29d   : > { %3890 = vrsqrt.f32 %v3011_v33  ;;  %v2853_v19 = vpop.xlane.xlu1 %2852 }
 0x29e   : > { %v2850_v5 = vpop.xlane.xlu0 %2849  ;;  %v2870_v35 = vmul.f32 0.03125, %v2853_v19 }
 0x29f   : > { %v2869_v49 = vmul.f32 0.03125, %v2850_v5 }
 0x2a0   : > { %v2966_v37 = vmul.f32 %v2870_v35, %v2870_v35  ;;  %v2998_v63 = vsub.f32 %v7188_v57, %v2870_v35  ;;  %v3048_v57 = vld [vmem:[%s7446_s4 + $0x8] sm:$0xff] }
 0x2a1   : > { %v2934_v27 = vpop.xlane.xlu1 %2933  ;;  %v2965_v6 = vmul.f32 %v2869_v49, %v2869_v49  ;;  %v2997_v34 = vsub.f32 %v7191_v56, %v2869_v49  ;;  %v3052_v56 = vld [vmem:[%s7446_s4 + $0x28] sm:$0xff] }
 0x2a2   : > { %v2931_v20 = vpop.xlane.xlu0 %2930  ;;  %v2950_v9 = vmul.f32 0.03125, %v2934_v27 }
 0x2a3   : > { %v2949_v14 = vmul.f32 0.03125, %v2931_v20 }
 0x2a4   : > { %v2982_v50 = vsub.f32 %v2950_v9, %v2966_v37 }
 0x2a5   : > { %v2981_v40 = vsub.f32 %v2949_v14, %v2965_v6 }
 0x2a6   : > { %v3889_v30 = vpop.eup %3888  ;;  %v3014_v55 = vadd.f32 1e-05, %v2982_v50 }
 0x2a7   : > { %v3891_v54 = vpop.eup %3890  ;;  %v3013_v3 = vadd.f32 1e-05, %v2981_v40  ;;  %v3044_v8 = vmul.f32 %v3889_v30, %v2996_v61 }
 0x2a8   : > { %3892 = vrsqrt.f32 %v3014_v55  ;;  %v3043_v2 = vmul.f32 %v3891_v54, %v2995_v26 }
 0x2a9   : > { %3894 = vrsqrt.f32 %v3013_v3 }
 0x2aa   : > { %v3757_v13 = vpack.c.bf16 %v3044_v8, %v3043_v2 }
 0x2ac   : > { %3759 = vmatprep.subr.msk.bf16.mxu0 %vm7207_vm2, %v3757_v13  ;;  %3775 = vmatprep.subr.msk.bf16.mxu1 %vm7207_vm2, %v3757_v13 }
 0x2ad   : > { %3762 = vmatpush3.bf16.xpose.msk.msra.mxu0 %vm7207_vm2, %v3757_v13  ;;  %3783 = vmatpush3.bf16.xpose.msk.msra.mxu1 %vm7207_vm2, %v3757_v13 }
 0x2b2   : > { %v3893_v44 = vpop.eup %3892 }
 0x2b3   : > { %v3895_v47 = vpop.eup %3894  ;;  %v3046_v10 = vmul.f32 %v3893_v44, %v2998_v63 }
 0x2b4   : > { %v3045_v48 = vmul.f32 %v3895_v47, %v2997_v34 }
 0x2b6   : > { %v3763_v28 = vpack.c.bf16 %v3046_v10, %v3045_v48 }
 0x2b7   : > { %v3079_v59 = vpop.permute.xlu1 %3078 }
 0x2b8   : > { %3765 = vmatprep.subr.msk.bf16.mxu0 %vm7207_vm2, %v3763_v28  ;;  %3776 = vmatprep.subr.msk.bf16.mxu1 %vm7207_vm2, %v3763_v28  ;;  %v3074_v16 = vpop.permute.xlu0 %3073 }
 0x2b9   : > { %3768 = vmatpush3.bf16.xpose.msk.msra.mxu0 %vm7207_vm2, %v3763_v28  ;;  %3784 = vmatpush3.bf16.xpose.msk.msra.mxu1 %vm7207_vm2, %v3763_v28 }
 0x2c0   : > { %3696 = vmatmul.mubr.msk.f32.vlgmr.msra.gmra.mrb[16].mxu0 %vm271_vm0, %v3048_v57  ;;  %3702 = vmatmul.mubr.msk.f32.vlgmr.msra.gmra.mrb[0].mxu1 %vm271_vm0, %v3052_v56  ;;  %v3084_v7 = vpop.permute.xlu1 %3083  ;;  %v3119_v18 = vpop.permute.xlu0 %3118 }
 0x2c1   : > { %3698 = vmatprep.mubr.msk.f32.mxu0 %vm271_vm0, %v3049_v62  ;;  %3704 = vmatprep.mubr.msk.f32.mxu1 %vm271_vm0, %v3053_v51 }
 0x2c4   : > { %3699 = vmatmul.mubr.msk.f32.gmra.mrb[18].mxu0 %vm271_vm0, %v3050_v53  ;;  %3705 = vmatmul.mubr.msk.f32.gmra.mrb[2].mxu1 %vm271_vm0, %v3054_v52  ;;  %v3089_v46 = vpop.permute.xlu1 %3088  ;;  %v3129_v27 = vpop.permute.xlu0 %3128 }
 0x2c5   : > { %3707 = vmatprep.mubr.msk.f32.mxu1 %vm271_vm0, %v3055_v12 }
 0x2c8   : > { %3708 = vmatmul.mubr.msk.f32.gmra.mrb[4].mxu1 %vm271_vm0, %v3056_v25  ;;  %v3094_v23 = vpop.permute.xlu1 %3093 }
 0x2c9   : > { %3710 = vmatprep.mubr.msk.f32.mxu1 %vm271_vm0, %v3057_v21 }
 0x2cc   : > { %3711 = vmatmul.mubr.msk.f32.gmra.mrb[6].mxu1 %vm271_vm0, %v3058_v29  ;;  %v3099_v38 = vpop.permute.xlu1 %3098 }
 0x2d0   : > { %v3104_v31 = vpop.permute.xlu1 %3103 }
 0x2d4   : > { %v3109_v22 = vpop.permute.xlu1 %3108 }
 0x2d8   : > { %v3114_v33 = vpop.permute.xlu1 %3113 }
 0x2dc   : > { %v3124_v20 = vpop.permute.xlu1 %3123 }
 0x393   : > { %v3697_v4 = vpop.f32.mrb[16].mxu0  ;;  %v3703_v11 = vpop.f32.mrb[0].mxu1 }
 0x394   : > { %v3287_v0 = vadd.f32 %v3697_v4, %v3079_v59  ;;  %v3307_v43 = vadd.f32 %v3703_v11, %v3099_v38  ;;  %v3301_v17 = vpop.f32.mrb[1].mxu1  ;;  %v3281_v60 = vpop.f32.mrb[17].mxu0 }
 0x395   : > { %v3302_v45 = vadd.f32 %v3301_v17, %v3094_v23  ;;  %v3282_v15 = vadd.f32 %v3281_v60, %v3074_v16 }
 0x396   : > { %3341 = vst [vmem:[%s7376_s14 + $0x8] sm:$0xff] %v3287_v0  ;;  %3345 = vst [vmem:[%s7376_s14 + $0x28] sm:$0xff] %v3307_v43 }
 0x397   : > { %3344 = vst [vmem:[%s7376_s14 + $0x20] sm:$0xff] %v3302_v45  ;;  %3340 = vst [vmem:[%s7376_s14] sm:$0xff] %v3282_v15  ;;  %v3700_v42 = vpop.f32.mrb[18].mxu0  ;;  %v3706_v24 = vpop.f32.mrb[2].mxu1 }
 0x398   : > { %v3297_v58 = vadd.f32 %v3700_v42, %v3089_v46  ;;  %v3317_v41 = vadd.f32 %v3706_v24, %v3109_v22  ;;  %v3291_v39 = vpop.f32.mrb[19].mxu0  ;;  %v3311_v1 = vpop.f32.mrb[3].mxu1 }
 0x399   : > { %v3292_v36 = vadd.f32 %v3291_v39, %v3084_v7  ;;  %v3312_v32 = vadd.f32 %v3311_v1, %v3104_v31 }
 0x39a   : > { %3343 = vst [vmem:[%s7376_s14 + $0x18] sm:$0xff] %v3297_v58  ;;  %3347 = vst [vmem:[%s7376_s14 + $0x38] sm:$0xff] %v3317_v41 }
 0x39b   : > { %3342 = vst [vmem:[%s7376_s14 + $0x10] sm:$0xff] %v3292_v36  ;;  %3346 = vst [vmem:[%s7376_s14 + $0x30] sm:$0xff] %v3312_v32  ;;  %v3709_v19 = vpop.f32.mrb[4].mxu1 }
 0x39c   : > { %v3327_v5 = vadd.f32 %v3709_v19, %v3119_v18  ;;  %v3321_v35 = vpop.f32.mrb[5].mxu1 }
 0x39d   : > { %v3322_v49 = vadd.f32 %v3321_v35, %v3114_v33 }
 0x39e   : > { %3349 = vst [vmem:[%s7376_s14 + $0x48] sm:$0xff] %v3327_v5 }
 0x39f   : > { %3348 = vst [vmem:[%s7376_s14 + $0x40] sm:$0xff] %v3322_v49  ;;  %v3712_v37 = vpop.f32.mrb[6].mxu1 }
 0x3a0   : > { %v3337_v9 = vadd.f32 %v3712_v37, %v3129_v27  ;;  %v3331_v6 = vpop.f32.mrb[7].mxu1 }
 0x3a1   : > { %v3332_v14 = vadd.f32 %v3331_v6, %v3124_v20 }
 0x3a2   : > { %3351 = vst [vmem:[%s7376_s14 + $0x58] sm:$0xff] %v3337_v9 }
 0x3a3   : > { %3350 = vst [vmem:[%s7376_s14 + $0x50] sm:$0xff] %v3332_v14 }
 0x3a4   : > { %4148 = shalt.err (!%p4145_p3)
}
 0x3a5   : > { %s4149_s9 = scalar_lea.hbm %s7395_s18, 1536  ;;  %s4153_s12 = scalar_lea.hbm %s7448_s6, 6144 }
 0x3a6   : > { %p4150_p4 = scmp.ne.s32.totalorder %s7395_s18, %s4149_s9  ;;  %p4154_p9 = scmp.lt.u32.totalorder %s7395_s18, %s7448_s6 }
 0x3a7   : > { %p4155_p10 = scmp.lt.u32.totalorder %s4153_s12, %s4149_s9  ;;  %p4157_p12 = scmp.lt.u32.totalorder %s4149_s9, %s7395_s18 }
 0x3a8   : > { %p4151_p7 = pnand %p4150_p4, %p4277_p5 }
 0x3a9   : > { %p4156_p11 = por %p4155_p10, %p4154_p9 }
 0x3aa   : > { %p4152_p8 = pneg %p4151_p7 }
 0x3ab   : > { %p4158_p13 = por %p4157_p12, %p4156_p11 }
 0x3ad   : > { %p4159_p0 = pnand %p4158_p13, %p4152_p8 }
 0x3af   : > { %4162 = shalt.err (!%p4159_p0)
}
 0x3b0   : > { %s4202_s26 = smov 128   ;;  %s4203_s16 = smov 8  }
 0x3b1   : > { %3787 = dma.vmem_to_hbm [thread:$0]  (%p4277_p5), %s7390_s15, 1536, %s7395_s18, %s7401_s25, %s4202_s26, %s4202_s26, %s4203_s16  }
 0x3b2 PF: > { %p3793_p1 = scmp.ge.s32.totalorder %s4197_s24, 2  ;;  %s3381_s17 = sand.u32 1, %s4185_s21  }
 0x3b3   : > { %s3382_s19 = scalar_lea.sflag [#allocation4], %s3381_s17 }
 0x3b4   : > { %p3790_p2 = pnand %p3793_p1, %p4281_p6 }
 0x3b6   : > { %4180 = dma.done.wait (!%p3790_p2), %s3382_s19, 1536  }
 0x3b7   : > { %4182 = vsyncadd (!%p3790_p2), %s3382_s19, 4294965760  ;;  %p16_p3 = scmp.ge.s32.totalorder %s4264_s27, 6   ;;  %s8059_s21 = smov %s4189_s22 }
 0x3b8   : > { %s8060_s22 = smov %s4193_s23  ;;  %s8061_s23 = smov %s4275_s30 }
 0x3b9   : > { %s8062_s24 = smov %s4264_s27  ;;  %18 = sbr.rel (!%p16_p3) target bundleno = 3 (0x3), region = 128 }
 0x3c0   :  { %3387 = vsyncpa [#allocation4], 1 }
 0x3c1   :  { %3389 = vsyncpa [#allocation4 + $0x1], 1 }

</bundles_post_ra>
